<compile_context>
chip_gen: v6e
topology: v6e:2x2x1
jax: 0.10.0
libtpu: 0.0.40
codegen_flags: <defaults>
</compile_context>

<pallas_src>
import functools

import jax
import jax.numpy as jnp
from jax import lax
from jax.experimental import pallas as pl
from jax.experimental.pallas import tpu as pltpu


# ---------------------------------------------------------------------------
# Fused kernel: Conv1D(len 6, stride 2) + GRU-input projection + batched GRU
# recurrence + streaming self-attention + l2-normalize.
# ---------------------------------------------------------------------------
def _speech_encoder_kernel(x_ref, wim_ref, bc_ref, wih_ref, bi_ref, whh_ref,
                           bhn_ref, wa_ref, ba_ref, ua_ref, uc_ref,
                           o_ref,
                           h_sc, hblk_sc, m_sc, l_sc, ctx_sc,
                           *, TQ, BB, H):
    t_blk = pl.program_id(1)
    M = TQ * BB
    bf = jnp.bfloat16

    @pl.when(t_blk == 0)
    def _init():
        h_sc[...] = jnp.zeros_like(h_sc)
        m_sc[...] = jnp.full_like(m_sc, -jnp.inf)
        l_sc[...] = jnp.zeros_like(l_sc)
        ctx_sc[...] = jnp.zeros_like(ctx_sc)

    # ---- Conv1D (len 6 / stride 2) + GRU input projection, M = TQ*BB --------
    # x layout is (T/2, BB, 2V): window shifts are outer-dim offsets (free).
    base = pl.multiple_of(t_blk * TQ, TQ)
    conv = None
    for k in range(3):                       # accumulated matmuls, no im2col concat
        xk = x_ref[pl.ds(base + k, TQ), :, :]               # (TQ, BB, 2V) f32
        xk = xk.reshape(M, xk.shape[-1]).astype(bf)          # free reshape (BB % 8 == 0)
        pk = jnp.dot(xk, wim_ref[k], preferred_element_type=jnp.float32)
        conv = pk if conv is None else conv + pk
    conv = conv + bc_ref[...]                                 # (M, F) f32
    gx = jnp.dot(conv.astype(bf), wih_ref[...],
                 preferred_element_type=jnp.float32) + bi_ref[...]   # (M, 3H) f32

    # ---- batched GRU recurrence: only (BB,H)@(H,3H) stays on the serial path --
    whh = whh_ref[...]                # (H, 3H) f32 (f32 so error does not compound)
    bhn = bhn_ref[...]                # (1, H)  f32 (n-gate hidden bias)
    h = h_sc[...]                     # (BB, H) f32
    for q in range(TQ):               # static unroll
        gh = jnp.dot(h, whh, preferred_element_type=jnp.float32)     # (BB, 3H)
        gxq = gx[q * BB:(q + 1) * BB, :]
        r = jax.nn.sigmoid(gxq[:, 0 * H:1 * H] + gh[:, 0 * H:1 * H])
        z = jax.nn.sigmoid(gxq[:, 1 * H:2 * H] + gh[:, 1 * H:2 * H])
        n = jnp.tanh(gxq[:, 2 * H:3 * H] + r * (gh[:, 2 * H:3 * H] + bhn))
        h = (1.0 - z) * n + z * h
        hblk_sc[pl.ds(q * BB, BB), :] = h
    h_sc[...] = h

    # ---- streaming (online-softmax) self-attention over this time block -----
    hs = hblk_sc[...]                                          # (M, H) f32
    s = jnp.tanh(jnp.dot(hs.astype(bf), wa_ref[...],
                         preferred_element_type=jnp.float32) + ba_ref[...])  # (M, A)
    e = jnp.sum(s * ua_ref[...], axis=1, keepdims=True) + uc_ref[0, 0]       # (M, 1)

    m = m_sc[...]
    l = l_sc[...]
    ctx = ctx_sc[...]
    for q in range(TQ):
        e_q = e[q * BB:(q + 1) * BB, :]                        # (BB, 1)
        m_new = jnp.maximum(m, e_q)
        scale = jnp.exp(m - m_new)
        p = jnp.exp(e_q - m_new)
        l = scale * l + p
        ctx = scale * ctx + p * hs[q * BB:(q + 1) * BB, :]
        m = m_new
    m_sc[...] = m
    l_sc[...] = l
    ctx_sc[...] = ctx

    # ---- final block: softmax normalization + F.normalize(p=2, dim=1) -------
    @pl.when(t_blk == pl.num_programs(1) - 1)
    def _finish():
        pooled = ctx_sc[...] / l_sc[...]                       # (BB, H)
        nrm = jnp.sqrt(jnp.sum(pooled * pooled, axis=1, keepdims=True))
        o_ref[...] = pooled / jnp.maximum(nrm, 1e-12)


def speech_encoder(params, x, *, size, tq=16, b_blk=None):
    """x: (B, T, size_vocab) f32 -> (B, size) l2-normalized embedding."""
    B0, T, V = x.shape
    Kf, _, F = params["w_conv"].shape
    H = size
    H3 = 3 * H
    A = params["w_attn"].shape[0]
    assert Kf == 6 and T % 2 == 0, "filter_length=6, stride=2, even T expected"
    Tp = (T - Kf) // 2 + 1

    # pick a time-block size dividing T'  (TODO(synk): masking for ragged tails)
    if Tp % tq != 0:
        tq = next(d for d in (32, 16, 8, 4, 2, 1) if Tp % d == 0)

    # pad batch to a sublane multiple so (TQ, BB, .) -> (TQ*BB, .) reshapes are free
    pad_b = (-B0) % 8
    if pad_b:
        x = jnp.concatenate([x, jnp.zeros((pad_b, T, V), x.dtype)], axis=0)
    B = B0 + pad_b
    if b_blk is None:
        b_blk = B
    assert B % b_blk == 0 and b_blk % 8 == 0

    # (B, T, V) -> (T/2, B, 2V): stride-2 frame pairs on lanes, time outermost.
    x2t = jnp.transpose(x.reshape(B, T // 2, 2 * V), (1, 0, 2))

    bf = jnp.bfloat16
    f32 = jnp.float32
    wim = params["w_conv"].reshape(3, 2 * V, F).astype(bf)      # paired im2col weights
    bc = params["b_conv"].reshape(1, F).astype(f32)
    wih = jnp.transpose(params["w_ih"]).astype(bf)              # (F, 3H)
    bhh = params["b_hh"].astype(f32)
    # r/z hidden biases are additive with b_ih; only the n-gate bias stays in-loop.
    bi = (params["b_ih"].astype(f32)
          + jnp.concatenate([bhh[:2 * H], jnp.zeros((H,), f32)])).reshape(1, H3)
    bhn = bhh[2 * H:].reshape(1, H)
    whh = jnp.transpose(params["w_hh"]).astype(f32)             # (H, 3H), f32 recurrence
    wa = jnp.transpose(params["w_attn"]).astype(bf)             # (H, A)
    ba = params["b_attn"].reshape(1, A).astype(f32)
    ua = params["u_attn"].reshape(1, A).astype(f32)
    uc = jnp.reshape(params["u_bias"], (1, 1)).astype(f32)

    grid = (B // b_blk, Tp // tq)
    const = lambda bt, t: (0, 0)
    kern = functools.partial(_speech_encoder_kernel, TQ=tq, BB=b_blk, H=H)
    out = pl.pallas_call(
        kern,
        out_shape=jax.ShapeDtypeStruct((B, H), f32),
        grid=grid,
        in_specs=[
            pl.BlockSpec((T // 2, b_blk, 2 * V), lambda bt, t: (0, bt, 0)),
            pl.BlockSpec((3, 2 * V, F), lambda bt, t: (0, 0, 0)),
            pl.BlockSpec((1, F), const),
            pl.BlockSpec((F, H3), const),
            pl.BlockSpec((1, H3), const),
            pl.BlockSpec((H, H3), const),
            pl.BlockSpec((1, H), const),
            pl.BlockSpec((H, A), const),
            pl.BlockSpec((1, A), const),
            pl.BlockSpec((1, A), const),
            pl.BlockSpec(memory_space=pltpu.MemorySpace.SMEM),
        ],
        out_specs=pl.BlockSpec((b_blk, H), lambda bt, t: (bt, 0)),
        scratch_shapes=[
            pltpu.VMEM((b_blk, H), f32),          # h carry
            pltpu.VMEM((tq * b_blk, H), f32),     # hidden states of current block
            pltpu.VMEM((b_blk, 1), f32),          # online-softmax running max
            pltpu.VMEM((b_blk, 1), f32),          # online-softmax normalizer
            pltpu.VMEM((b_blk, H), f32),          # context accumulator
        ],
        compiler_params=pltpu.CompilerParams(
            dimension_semantics=("parallel", "arbitrary"),
            vmem_limit_bytes=32 * 1024 * 1024),
    )(x2t, wim, bc, wih, bi, whh, bhn, wa, ba, ua, uc)
    # Dropout(p=0.0) is the identity.
    return out[:B0]


# ---------------------------------------------------------------------------
# Parameter init + pure-JAX f32 reference (correctness check)
# ---------------------------------------------------------------------------
def init_params(key, *, size_vocab, size, filter_length, filter_size, size_attn):
    ks = jax.random.split(key, 8)
    nrm = lambda k, shape, s: jax.random.normal(k, shape, jnp.float32) * s
    return dict(
        w_conv=nrm(ks[0], (filter_length, size_vocab, filter_size),
                   (filter_length * size_vocab) ** -0.5),
        b_conv=jnp.full((filter_size,), 0.01, jnp.float32),
        w_ih=nrm(ks[1], (3 * size, filter_size), filter_size ** -0.5),
        w_hh=nrm(ks[2], (3 * size, size), size ** -0.5),
        b_ih=nrm(ks[3], (3 * size,), 0.05),
        b_hh=nrm(ks[4], (3 * size,), 0.05),
        w_attn=nrm(ks[5], (size_attn, size), size ** -0.5),
        b_attn=jnp.full((size_attn,), 0.01, jnp.float32),
        u_attn=nrm(ks[6], (size_attn,), size_attn ** -0.5),
        u_bias=jnp.zeros((), jnp.float32),
    )


def _ref_conv1d(x, w, b):
    y = lax.conv_general_dilated(x, w, window_strides=(2,), padding=((0, 0),),
                                 dimension_numbers=("NWC", "WIO", "NWC"))
    return y + b


def _ref_gru(seq, w_ih, w_hh, b_ih, b_hh, H):
    def step(h, x_t):
        gi = x_t @ w_ih.T + b_ih
        gh = h @ w_hh.T + b_hh
        r = jax.nn.sigmoid(gi[:, :H] + gh[:, :H])
        z = jax.nn.sigmoid(gi[:, H:2 * H] + gh[:, H:2 * H])
        n = jnp.tanh(gi[:, 2 * H:] + r * gh[:, 2 * H:])
        h_new = (1.0 - z) * n + z * h
        return h_new, h_new

    h0 = jnp.zeros((seq.shape[0], H), jnp.float32)
    _, hs = lax.scan(step, h0, jnp.transpose(seq, (1, 0, 2)))
    return jnp.transpose(hs, (1, 0, 2))


def _ref_self_attention(hs, w_a, b_a, u, c):
    s = jnp.tanh(hs @ w_a.T + b_a)                    # (B, T, A)
    e = s @ u[:, None] + c                            # (B, T, 1)
    alpha = jax.nn.softmax(e, axis=1)
    return jnp.sum(alpha * hs, axis=1)                # (B, H)


def _ref_l2normalize(x):
    n = jnp.sqrt(jnp.sum(x * x, axis=1, keepdims=True))
    return x / jnp.maximum(n, 1e-12)


def reference_forward(params, x, *, size):
    h = _ref_conv1d(x, params["w_conv"], params["b_conv"])
    h = _ref_gru(h, params["w_ih"], params["w_hh"],
                 params["b_ih"], params["b_hh"], size)
    ctx = _ref_self_attention(h, params["w_attn"], params["b_attn"],
                              params["u_attn"], params["u_bias"])
    return _ref_l2normalize(ctx)


if __name__ == "__main__":
    B, T = 8, 68                       # T' = (68 - 6)//2 + 1 = 32 -> two TQ=16 blocks
    SIZE_VOCAB, FILTER_LEN, FILTER_SIZE = 64, 6, 64
    SIZE, SIZE_ATTN = 128, 128         # hidden=128 keeps gate slices vreg-aligned

    key = jax.random.PRNGKey(0)
    kx, kp = jax.random.split(key)
    x = jax.random.normal(kx, (B, T, SIZE_VOCAB), jnp.float32)
    params = init_params(kp, size_vocab=SIZE_VOCAB, size=SIZE,
                         filter_length=FILTER_LEN, filter_size=FILTER_SIZE,
                         size_attn=SIZE_ATTN)

    out = speech_encoder(params, x, size=SIZE)
    out = jax.block_until_ready(out)

    assert out.shape == (B, SIZE), out.shape
    assert bool(jnp.isfinite(out).all())
    norms = jnp.sqrt(jnp.sum(out * out, axis=1))
    assert bool(jnp.all(jnp.abs(norms - 1.0) < 1e-3)), norms

    ref = reference_forward(params, x, size=SIZE)
    err = float(jnp.max(jnp.abs(out - ref)))
    assert err < 5e-2, f"max abs error {err}"   # bf16 MXU operands vs f32 reference

    print("KERNEL_OK")
</pallas_src>

<mosaic_0001>
module attributes {stable_mosaic.version = 11 : i64} {
  func.func @_speech_encoder_kernel(%arg0: i32, %arg1: i32, %arg2: memref<34x8x128xf32, #tpu.memory_space<vmem>>, %arg3: memref<3x128x64xbf16, #tpu.memory_space<vmem>>, %arg4: memref<1x64xf32, #tpu.memory_space<vmem>>, %arg5: memref<64x384xbf16, #tpu.memory_space<vmem>>, %arg6: memref<1x384xf32, #tpu.memory_space<vmem>>, %arg7: memref<128x384xf32, #tpu.memory_space<vmem>>, %arg8: memref<1x128xf32, #tpu.memory_space<vmem>>, %arg9: memref<128x128xbf16, #tpu.memory_space<vmem>>, %arg10: memref<1x128xf32, #tpu.memory_space<vmem>>, %arg11: memref<1x128xf32, #tpu.memory_space<vmem>>, %arg12: memref<1x1xf32, #tpu.memory_space<smem>>, %arg13: memref<8x128xf32, #tpu.memory_space<vmem>>, %arg14: memref<8x128xf32, #tpu.memory_space<vmem>>, %arg15: memref<128x128xf32, #tpu.memory_space<vmem>>, %arg16: memref<8x1xf32, #tpu.memory_space<vmem>>, %arg17: memref<8x1xf32, #tpu.memory_space<vmem>>, %arg18: memref<8x128xf32, #tpu.memory_space<vmem>>) attributes {dimension_semantics = [#tpu.dimension_semantics<parallel>, #tpu.dimension_semantics<arbitrary>], iteration_bounds = array<i64: 1, 2>, scalar_prefetch = 0 : i64, scratch_operands = 5 : i64, tpu.core_type = #tpu.core_type<tc>, window_params = [{transform_indices = @transform_0, window_bounds = array<i64: 34, 8, 128>}, {pipeline_mode = #tpu.pipeline_mode<synchronous>, transform_indices = @transform_1, window_bounds = array<i64: 3, 128, 64>}, {pipeline_mode = #tpu.pipeline_mode<synchronous>, transform_indices = @transform_2, window_bounds = array<i64: 1, 64>}, {pipeline_mode = #tpu.pipeline_mode<synchronous>, transform_indices = @transform_3, window_bounds = array<i64: 64, 384>}, {pipeline_mode = #tpu.pipeline_mode<synchronous>, transform_indices = @transform_4, window_bounds = array<i64: 1, 384>}, {pipeline_mode = #tpu.pipeline_mode<synchronous>, transform_indices = @transform_5, window_bounds = array<i64: 128, 384>}, {pipeline_mode = #tpu.pipeline_mode<synchronous>, transform_indices = @transform_6, window_bounds = array<i64: 1, 128>}, {pipeline_mode = #tpu.pipeline_mode<synchronous>, transform_indices = @transform_7, window_bounds = array<i64: 128, 128>}, {pipeline_mode = #tpu.pipeline_mode<synchronous>, transform_indices = @transform_8, window_bounds = array<i64: 1, 128>}, {pipeline_mode = #tpu.pipeline_mode<synchronous>, transform_indices = @transform_9, window_bounds = array<i64: 1, 128>}, {transform_indices = @transform_10, window_bounds = array<i64: 1, 1>}, {transform_indices = @transform_11, window_bounds = array<i64: 8, 128>}]} {
    %c0_i32 = arith.constant 0 : i32
    %0 = arith.cmpi eq, %arg1, %c0_i32 : i32
    %1 = arith.extui %0 : i1 to i32
    %c0_i32_0 = arith.constant 0 : i32
    %2 = arith.cmpi ne, %1, %c0_i32_0 : i32
    scf.if %2 {
      %cst_138 = arith.constant 0.000000e+00 : f32
      %789 = vector.broadcast %cst_138 : f32 to vector<8x128xf32>
      %c0_139 = arith.constant 0 : index
      %c0_140 = arith.constant 0 : index
      %790 = vector.load %arg14[%c0_139, %c0_140] : memref<8x128xf32, #tpu.memory_space<vmem>>, vector<8x128xf32>
      tpu.vector_store %arg14[%c0_139, %c0_140], %789 {strides = array<i32>} : memref<8x128xf32, #tpu.memory_space<vmem>>, vector<8x128xf32>,
      %cst_141 = arith.constant 0xFF800000 : f32
      %791 = vector.broadcast %cst_141 : f32 to vector<8x1xf32>
      %c0_142 = arith.constant 0 : index
      %c0_143 = arith.constant 0 : index
      %792 = vector.load %arg16[%c0_142, %c0_143] : memref<8x1xf32, #tpu.memory_space<vmem>>, vector<8x1xf32>
      tpu.vector_store %arg16[%c0_142, %c0_143], %791 {strides = array<i32>} : memref<8x1xf32, #tpu.memory_space<vmem>>, vector<8x1xf32>,
      %cst_144 = arith.constant 0.000000e+00 : f32
      %793 = vector.broadcast %cst_144 : f32 to vector<8x1xf32>
      %c0_145 = arith.constant 0 : index
      %c0_146 = arith.constant 0 : index
      %794 = vector.load %arg17[%c0_145, %c0_146] : memref<8x1xf32, #tpu.memory_space<vmem>>, vector<8x1xf32>
      tpu.vector_store %arg17[%c0_145, %c0_146], %793 {strides = array<i32>} : memref<8x1xf32, #tpu.memory_space<vmem>>, vector<8x1xf32>,
      %cst_147 = arith.constant 0.000000e+00 : f32
      %795 = vector.broadcast %cst_147 : f32 to vector<8x128xf32>
      %c0_148 = arith.constant 0 : index
      %c0_149 = arith.constant 0 : index
      %796 = vector.load %arg18[%c0_148, %c0_149] : memref<8x128xf32, #tpu.memory_space<vmem>>, vector<8x128xf32>
      tpu.vector_store %arg18[%c0_148, %c0_149], %795 {strides = array<i32>} : memref<8x128xf32, #tpu.memory_space<vmem>>, vector<8x128xf32>,
    } else {
    }
    %c16_i32 = arith.constant 16 : i32
    %3 = arith.muli %arg1, %c16_i32 : i32
    %4 = tpu.assume_multiple %3, 16 : i32
    %c0_i32_1 = arith.constant 0 : i32
    %5 = arith.addi %4, %c0_i32_1 : i32
    %6 = arith.index_cast %5 : i32 to index
    %c0 = arith.constant 0 : index
    %c0_2 = arith.constant 0 : index
    %7 = vector.load %arg2[%6, %c0, %c0_2] : memref<34x8x128xf32, #tpu.memory_space<vmem>>, vector<16x8x128xf32>
    %8 = vector.shape_cast %7 : vector<16x8x128xf32> to vector<128x128xf32>
    %9 = arith.truncf %8 : vector<128x128xf32> to vector<128x128xbf16>
    %c0_3 = arith.constant 0 : index
    %c0_4 = arith.constant 0 : index
    %c0_5 = arith.constant 0 : index
    %10 = vector.load %arg3[%c0_3, %c0_4, %c0_5] : memref<3x128x64xbf16, #tpu.memory_space<vmem>>, vector<1x128x64xbf16>
    %11 = vector.shape_cast %10 : vector<1x128x64xbf16> to vector<128x64xbf16>
    %cst = arith.constant dense<0.000000e+00> : vector<128x64xf32>
    %12 = tpu.matmul %9, %11, %cst {dimension_numbers = #tpu.dot_dimension_numbers<[1], [0], [0], [1], [0, 0, 1, 1], [], []>} : vector<128x128xbf16>, vector<128x64xbf16>, vector<128x64xf32> -> vector<128x64xf32>
    %c1_i32 = arith.constant 1 : i32
    %13 = arith.addi %4, %c1_i32 : i32
    %14 = arith.index_cast %13 : i32 to index
    %c0_6 = arith.constant 0 : index
    %c0_7 = arith.constant 0 : index
    %15 = vector.load %arg2[%14, %c0_6, %c0_7] : memref<34x8x128xf32, #tpu.memory_space<vmem>>, vector<16x8x128xf32>
    %16 = vector.shape_cast %15 : vector<16x8x128xf32> to vector<128x128xf32>
    %17 = arith.truncf %16 : vector<128x128xf32> to vector<128x128xbf16>
    %c1 = arith.constant 1 : index
    %c0_8 = arith.constant 0 : index
    %c0_9 = arith.constant 0 : index
    %18 = vector.load %arg3[%c1, %c0_8, %c0_9] : memref<3x128x64xbf16, #tpu.memory_space<vmem>>, vector<1x128x64xbf16>
    %19 = vector.shape_cast %18 : vector<1x128x64xbf16> to vector<128x64xbf16>
    %cst_10 = arith.constant dense<0.000000e+00> : vector<128x64xf32>
    %20 = tpu.matmul %17, %19, %cst_10 {dimension_numbers = #tpu.dot_dimension_numbers<[1], [0], [0], [1], [0, 0, 1, 1], [], []>} : vector<128x128xbf16>, vector<128x64xbf16>, vector<128x64xf32> -> vector<128x64xf32>
    %21 = arith.addf %12, %20 : vector<128x64xf32>
    %c2_i32 = arith.constant 2 : i32
    %22 = arith.addi %4, %c2_i32 : i32
    %23 = arith.index_cast %22 : i32 to index
    %c0_11 = arith.constant 0 : index
    %c0_12 = arith.constant 0 : index
    %24 = vector.load %arg2[%23, %c0_11, %c0_12] : memref<34x8x128xf32, #tpu.memory_space<vmem>>, vector<16x8x128xf32>
    %25 = vector.shape_cast %24 : vector<16x8x128xf32> to vector<128x128xf32>
    %26 = arith.truncf %25 : vector<128x128xf32> to vector<128x128xbf16>
    %c2 = arith.constant 2 : index
    %c0_13 = arith.constant 0 : index
    %c0_14 = arith.constant 0 : index
    %27 = vector.load %arg3[%c2, %c0_13, %c0_14] : memref<3x128x64xbf16, #tpu.memory_space<vmem>>, vector<1x128x64xbf16>
    %28 = vector.shape_cast %27 : vector<1x128x64xbf16> to vector<128x64xbf16>
    %cst_15 = arith.constant dense<0.000000e+00> : vector<128x64xf32>
    %29 = tpu.matmul %26, %28, %cst_15 {dimension_numbers = #tpu.dot_dimension_numbers<[1], [0], [0], [1], [0, 0, 1, 1], [], []>} : vector<128x128xbf16>, vector<128x64xbf16>, vector<128x64xf32> -> vector<128x64xf32>
    %30 = arith.addf %21, %29 : vector<128x64xf32>
    %c0_16 = arith.constant 0 : index
    %c0_17 = arith.constant 0 : index
    %31 = vector.load %arg4[%c0_16, %c0_17] : memref<1x64xf32, #tpu.memory_space<vmem>>, vector<1x64xf32>
    %32 = vector.broadcast %31 : vector<1x64xf32> to vector<128x64xf32>
    %33 = arith.addf %30, %32 : vector<128x64xf32>
    %34 = arith.truncf %33 : vector<128x64xf32> to vector<128x64xbf16>
    %c0_18 = arith.constant 0 : index
    %c0_19 = arith.constant 0 : index
    %35 = vector.load %arg5[%c0_18, %c0_19] : memref<64x384xbf16, #tpu.memory_space<vmem>>, vector<64x384xbf16>
    %cst_20 = arith.constant dense<0.000000e+00> : vector<128x384xf32>
    %36 = tpu.matmul %34, %35, %cst_20 {dimension_numbers = #tpu.dot_dimension_numbers<[1], [0], [0], [1], [0, 0, 1, 1], [], []>} : vector<128x64xbf16>, vector<64x384xbf16>, vector<128x384xf32> -> vector<128x384xf32>
    %c0_21 = arith.constant 0 : index
    %c0_22 = arith.constant 0 : index
    %37 = vector.load %arg6[%c0_21, %c0_22] : memref<1x384xf32, #tpu.memory_space<vmem>>, vector<1x384xf32>
    %38 = vector.broadcast %37 : vector<1x384xf32> to vector<128x384xf32>
    %39 = arith.addf %36, %38 : vector<128x384xf32>
    %c0_23 = arith.constant 0 : index
    %c0_24 = arith.constant 0 : index
    %40 = vector.load %arg7[%c0_23, %c0_24] : memref<128x384xf32, #tpu.memory_space<vmem>>, vector<128x384xf32>
    %c0_25 = arith.constant 0 : index
    %c0_26 = arith.constant 0 : index
    %41 = vector.load %arg8[%c0_25, %c0_26] : memref<1x128xf32, #tpu.memory_space<vmem>>, vector<1x128xf32>
    %c0_27 = arith.constant 0 : index
    %c0_28 = arith.constant 0 : index
    %42 = vector.load %arg14[%c0_27, %c0_28] : memref<8x128xf32, #tpu.memory_space<vmem>>, vector<8x128xf32>
    %cst_29 = arith.constant dense<0.000000e+00> : vector<8x384xf32>
    %43 = tpu.matmul %42, %40, %cst_29 {dimension_numbers = #tpu.dot_dimension_numbers<[1], [0], [0], [1], [0, 0, 1, 1], [], []>} : vector<8x128xf32>, vector<128x384xf32>, vector<8x384xf32> -> vector<8x384xf32>
    %44 = vector.extract_strided_slice %39 {offsets = [0, 0], sizes = [8, 384], strides = [1, 1]} : vector<128x384xf32> to vector<8x384xf32>
    %45 = vector.extract_strided_slice %44 {offsets = [0, 0], sizes = [8, 128], strides = [1, 1]} : vector<8x384xf32> to vector<8x128xf32>
    %46 = vector.extract_strided_slice %43 {offsets = [0, 0], sizes = [8, 128], strides = [1, 1]} : vector<8x384xf32> to vector<8x128xf32>
    %47 = arith.addf %45, %46 : vector<8x128xf32>
    %48 = arith.negf %47 : vector<8x128xf32>
    %49 = math.exp %48 : vector<8x128xf32>
    %cst_30 = arith.constant 1.000000e+00 : f32
    %50 = vector.broadcast %cst_30 : f32 to vector<8x128xf32>
    %51 = arith.addf %50, %49 : vector<8x128xf32>
    %52 = arith.divf %50, %51 : vector<8x128xf32>
    %53 = vector.extract_strided_slice %44 {offsets = [0, 128], sizes = [8, 128], strides = [1, 1]} : vector<8x384xf32> to vector<8x128xf32>
    %54 = vector.extract_strided_slice %43 {offsets = [0, 128], sizes = [8, 128], strides = [1, 1]} : vector<8x384xf32> to vector<8x128xf32>
    %55 = arith.addf %53, %54 : vector<8x128xf32>
    %56 = arith.negf %55 : vector<8x128xf32>
    %57 = math.exp %56 : vector<8x128xf32>
    %cst_31 = arith.constant 1.000000e+00 : f32
    %58 = vector.broadcast %cst_31 : f32 to vector<8x128xf32>
    %59 = arith.addf %58, %57 : vector<8x128xf32>
    %60 = arith.divf %58, %59 : vector<8x128xf32>
    %61 = vector.extract_strided_slice %44 {offsets = [0, 256], sizes = [8, 128], strides = [1, 1]} : vector<8x384xf32> to vector<8x128xf32>
    %62 = vector.extract_strided_slice %43 {offsets = [0, 256], sizes = [8, 128], strides = [1, 1]} : vector<8x384xf32> to vector<8x128xf32>
    %63 = vector.broadcast %41 : vector<1x128xf32> to vector<8x128xf32>
    %64 = arith.addf %62, %63 : vector<8x128xf32>
    %65 = arith.mulf %52, %64 : vector<8x128xf32>
    %66 = arith.addf %61, %65 : vector<8x128xf32>
    %67 = math.tanh %66 : vector<8x128xf32>
    %cst_32 = arith.constant 1.000000e+00 : f32
    %68 = vector.broadcast %cst_32 : f32 to vector<8x128xf32>
    %69 = arith.subf %68, %60 : vector<8x128xf32>
    %70 = arith.mulf %69, %67 : vector<8x128xf32>
    %71 = arith.mulf %60, %42 : vector<8x128xf32>
    %72 = arith.addf %70, %71 : vector<8x128xf32>
    %c0_33 = arith.constant 0 : index
    %c0_34 = arith.constant 0 : index
    %73 = vector.load %arg15[%c0_33, %c0_34] : memref<128x128xf32, #tpu.memory_space<vmem>>, vector<8x128xf32>
    tpu.vector_store %arg15[%c0_33, %c0_34], %72 {strides = array<i32>} : memref<128x128xf32, #tpu.memory_space<vmem>>, vector<8x128xf32>,
    %cst_35 = arith.constant dense<0.000000e+00> : vector<8x384xf32>
    %74 = tpu.matmul %72, %40, %cst_35 {dimension_numbers = #tpu.dot_dimension_numbers<[1], [0], [0], [1], [0, 0, 1, 1], [], []>} : vector<8x128xf32>, vector<128x384xf32>, vector<8x384xf32> -> vector<8x384xf32>
    %75 = vector.extract_strided_slice %39 {offsets = [8, 0], sizes = [8, 384], strides = [1, 1]} : vector<128x384xf32> to vector<8x384xf32>
    %76 = vector.extract_strided_slice %75 {offsets = [0, 0], sizes = [8, 128], strides = [1, 1]} : vector<8x384xf32> to vector<8x128xf32>
    %77 = vector.extract_strided_slice %74 {offsets = [0, 0], sizes = [8, 128], strides = [1, 1]} : vector<8x384xf32> to vector<8x128xf32>
    %78 = arith.addf %76, %77 : vector<8x128xf32>
    %79 = arith.negf %78 : vector<8x128xf32>
    %80 = math.exp %79 : vector<8x128xf32>
    %cst_36 = arith.constant 1.000000e+00 : f32
    %81 = vector.broadcast %cst_36 : f32 to vector<8x128xf32>
    %82 = arith.addf %81, %80 : vector<8x128xf32>
    %83 = arith.divf %81, %82 : vector<8x128xf32>
    %84 = vector.extract_strided_slice %75 {offsets = [0, 128], sizes = [8, 128], strides = [1, 1]} : vector<8x384xf32> to vector<8x128xf32>
    %85 = vector.extract_strided_slice %74 {offsets = [0, 128], sizes = [8, 128], strides = [1, 1]} : vector<8x384xf32> to vector<8x128xf32>
    %86 = arith.addf %84, %85 : vector<8x128xf32>
    %87 = arith.negf %86 : vector<8x128xf32>
    %88 = math.exp %87 : vector<8x128xf32>
    %cst_37 = arith.constant 1.000000e+00 : f32
    %89 = vector.broadcast %cst_37 : f32 to vector<8x128xf32>
    %90 = arith.addf %89, %88 : vector<8x128xf32>
    %91 = arith.divf %89, %90 : vector<8x128xf32>
    %92 = vector.extract_strided_slice %75 {offsets = [0, 256], sizes = [8, 128], strides = [1, 1]} : vector<8x384xf32> to vector<8x128xf32>
    %93 = vector.extract_strided_slice %74 {offsets = [0, 256], sizes = [8, 128], strides = [1, 1]} : vector<8x384xf32> to vector<8x128xf32>
    %94 = vector.broadcast %41 : vector<1x128xf32> to vector<8x128xf32>
    %95 = arith.addf %93, %94 : vector<8x128xf32>
    %96 = arith.mulf %83, %95 : vector<8x128xf32>
    %97 = arith.addf %92, %96 : vector<8x128xf32>
    %98 = math.tanh %97 : vector<8x128xf32>
    %cst_38 = arith.constant 1.000000e+00 : f32
    %99 = vector.broadcast %cst_38 : f32 to vector<8x128xf32>
    %100 = arith.subf %99, %91 : vector<8x128xf32>
    %101 = arith.mulf %100, %98 : vector<8x128xf32>
    %102 = arith.mulf %91, %72 : vector<8x128xf32>
    %103 = arith.addf %101, %102 : vector<8x128xf32>
    %c8 = arith.constant 8 : index
    %c0_39 = arith.constant 0 : index
    %104 = vector.load %arg15[%c8, %c0_39] : memref<128x128xf32, #tpu.memory_space<vmem>>, vector<8x128xf32>
    tpu.vector_store %arg15[%c8, %c0_39], %103 {strides = array<i32>} : memref<128x128xf32, #tpu.memory_space<vmem>>, vector<8x128xf32>,
    %cst_40 = arith.constant dense<0.000000e+00> : vector<8x384xf32>
    %105 = tpu.matmul %103, %40, %cst_40 {dimension_numbers = #tpu.dot_dimension_numbers<[1], [0], [0], [1], [0, 0, 1, 1], [], []>} : vector<8x128xf32>, vector<128x384xf32>, vector<8x384xf32> -> vector<8x384xf32>
    %106 = vector.extract_strided_slice %39 {offsets = [16, 0], sizes = [8, 384], strides = [1, 1]} : vector<128x384xf32> to vector<8x384xf32>
    %107 = vector.extract_strided_slice %106 {offsets = [0, 0], sizes = [8, 128], strides = [1, 1]} : vector<8x384xf32> to vector<8x128xf32>
    %108 = vector.extract_strided_slice %105 {offsets = [0, 0], sizes = [8, 128], strides = [1, 1]} : vector<8x384xf32> to vector<8x128xf32>
    %109 = arith.addf %107, %108 : vector<8x128xf32>
    %110 = arith.negf %109 : vector<8x128xf32>
    %111 = math.exp %110 : vector<8x128xf32>
    %cst_41 = arith.constant 1.000000e+00 : f32
    %112 = vector.broadcast %cst_41 : f32 to vector<8x128xf32>
    %113 = arith.addf %112, %111 : vector<8x128xf32>
    %114 = arith.divf %112, %113 : vector<8x128xf32>
    %115 = vector.extract_strided_slice %106 {offsets = [0, 128], sizes = [8, 128], strides = [1, 1]} : vector<8x384xf32> to vector<8x128xf32>
    %116 = vector.extract_strided_slice %105 {offsets = [0, 128], sizes = [8, 128], strides = [1, 1]} : vector<8x384xf32> to vector<8x128xf32>
    %117 = arith.addf %115, %116 : vector<8x128xf32>
    %118 = arith.negf %117 : vector<8x128xf32>
    %119 = math.exp %118 : vector<8x128xf32>
    %cst_42 = arith.constant 1.000000e+00 : f32
    %120 = vector.broadcast %cst_42 : f32 to vector<8x128xf32>
    %121 = arith.addf %120, %119 : vector<8x128xf32>
    %122 = arith.divf %120, %121 : vector<8x128xf32>
    %123 = vector.extract_strided_slice %106 {offsets = [0, 256], sizes = [8, 128], strides = [1, 1]} : vector<8x384xf32> to vector<8x128xf32>
    %124 = vector.extract_strided_slice %105 {offsets = [0, 256], sizes = [8, 128], strides = [1, 1]} : vector<8x384xf32> to vector<8x128xf32>
    %125 = vector.broadcast %41 : vector<1x128xf32> to vector<8x128xf32>
    %126 = arith.addf %124, %125 : vector<8x128xf32>
    %127 = arith.mulf %114, %126 : vector<8x128xf32>
    %128 = arith.addf %123, %127 : vector<8x128xf32>
    %129 = math.tanh %128 : vector<8x128xf32>
    %cst_43 = arith.constant 1.000000e+00 : f32
    %130 = vector.broadcast %cst_43 : f32 to vector<8x128xf32>
    %131 = arith.subf %130, %122 : vector<8x128xf32>
    %132 = arith.mulf %131, %129 : vector<8x128xf32>
    %133 = arith.mulf %122, %103 : vector<8x128xf32>
    %134 = arith.addf %132, %133 : vector<8x128xf32>
    %c16 = arith.constant 16 : index
    %c0_44 = arith.constant 0 : index
    %135 = vector.load %arg15[%c16, %c0_44] : memref<128x128xf32, #tpu.memory_space<vmem>>, vector<8x128xf32>
    tpu.vector_store %arg15[%c16, %c0_44], %134 {strides = array<i32>} : memref<128x128xf32, #tpu.memory_space<vmem>>, vector<8x128xf32>,
    %cst_45 = arith.constant dense<0.000000e+00> : vector<8x384xf32>
    %136 = tpu.matmul %134, %40, %cst_45 {dimension_numbers = #tpu.dot_dimension_numbers<[1], [0], [0], [1], [0, 0, 1, 1], [], []>} : vector<8x128xf32>, vector<128x384xf32>, vector<8x384xf32> -> vector<8x384xf32>
    %137 = vector.extract_strided_slice %39 {offsets = [24, 0], sizes = [8, 384], strides = [1, 1]} : vector<128x384xf32> to vector<8x384xf32>
    %138 = vector.extract_strided_slice %137 {offsets = [0, 0], sizes = [8, 128], strides = [1, 1]} : vector<8x384xf32> to vector<8x128xf32>
    %139 = vector.extract_strided_slice %136 {offsets = [0, 0], sizes = [8, 128], strides = [1, 1]} : vector<8x384xf32> to vector<8x128xf32>
    %140 = arith.addf %138, %139 : vector<8x128xf32>
    %141 = arith.negf %140 : vector<8x128xf32>
    %142 = math.exp %141 : vector<8x128xf32>
    %cst_46 = arith.constant 1.000000e+00 : f32
    %143 = vector.broadcast %cst_46 : f32 to vector<8x128xf32>
    %144 = arith.addf %143, %142 : vector<8x128xf32>
    %145 = arith.divf %143, %144 : vector<8x128xf32>
    %146 = vector.extract_strided_slice %137 {offsets = [0, 128], sizes = [8, 128], strides = [1, 1]} : vector<8x384xf32> to vector<8x128xf32>
    %147 = vector.extract_strided_slice %136 {offsets = [0, 128], sizes = [8, 128], strides = [1, 1]} : vector<8x384xf32> to vector<8x128xf32>
    %148 = arith.addf %146, %147 : vector<8x128xf32>
    %149 = arith.negf %148 : vector<8x128xf32>
    %150 = math.exp %149 : vector<8x128xf32>
    %cst_47 = arith.constant 1.000000e+00 : f32
    %151 = vector.broadcast %cst_47 : f32 to vector<8x128xf32>
    %152 = arith.addf %151, %150 : vector<8x128xf32>
    %153 = arith.divf %151, %152 : vector<8x128xf32>
    %154 = vector.extract_strided_slice %137 {offsets = [0, 256], sizes = [8, 128], strides = [1, 1]} : vector<8x384xf32> to vector<8x128xf32>
    %155 = vector.extract_strided_slice %136 {offsets = [0, 256], sizes = [8, 128], strides = [1, 1]} : vector<8x384xf32> to vector<8x128xf32>
    %156 = vector.broadcast %41 : vector<1x128xf32> to vector<8x128xf32>
    %157 = arith.addf %155, %156 : vector<8x128xf32>
    %158 = arith.mulf %145, %157 : vector<8x128xf32>
    %159 = arith.addf %154, %158 : vector<8x128xf32>
    %160 = math.tanh %159 : vector<8x128xf32>
    %cst_48 = arith.constant 1.000000e+00 : f32
    %161 = vector.broadcast %cst_48 : f32 to vector<8x128xf32>
    %162 = arith.subf %161, %153 : vector<8x128xf32>
    %163 = arith.mulf %162, %160 : vector<8x128xf32>
    %164 = arith.mulf %153, %134 : vector<8x128xf32>
    %165 = arith.addf %163, %164 : vector<8x128xf32>
    %c24 = arith.constant 24 : index
    %c0_49 = arith.constant 0 : index
    %166 = vector.load %arg15[%c24, %c0_49] : memref<128x128xf32, #tpu.memory_space<vmem>>, vector<8x128xf32>
    tpu.vector_store %arg15[%c24, %c0_49], %165 {strides = array<i32>} : memref<128x128xf32, #tpu.memory_space<vmem>>, vector<8x128xf32>,
    %cst_50 = arith.constant dense<0.000000e+00> : vector<8x384xf32>
    %167 = tpu.matmul %165, %40, %cst_50 {dimension_numbers = #tpu.dot_dimension_numbers<[1], [0], [0], [1], [0, 0, 1, 1], [], []>} : vector<8x128xf32>, vector<128x384xf32>, vector<8x384xf32> -> vector<8x384xf32>
    %168 = vector.extract_strided_slice %39 {offsets = [32, 0], sizes = [8, 384], strides = [1, 1]} : vector<128x384xf32> to vector<8x384xf32>
    %169 = vector.extract_strided_slice %168 {offsets = [0, 0], sizes = [8, 128], strides = [1, 1]} : vector<8x384xf32> to vector<8x128xf32>
    %170 = vector.extract_strided_slice %167 {offsets = [0, 0], sizes = [8, 128], strides = [1, 1]} : vector<8x384xf32> to vector<8x128xf32>
    %171 = arith.addf %169, %170 : vector<8x128xf32>
    %172 = arith.negf %171 : vector<8x128xf32>
    %173 = math.exp %172 : vector<8x128xf32>
    %cst_51 = arith.constant 1.000000e+00 : f32
    %174 = vector.broadcast %cst_51 : f32 to vector<8x128xf32>
    %175 = arith.addf %174, %173 : vector<8x128xf32>
    %176 = arith.divf %174, %175 : vector<8x128xf32>
    %177 = vector.extract_strided_slice %168 {offsets = [0, 128], sizes = [8, 128], strides = [1, 1]} : vector<8x384xf32> to vector<8x128xf32>
    %178 = vector.extract_strided_slice %167 {offsets = [0, 128], sizes = [8, 128], strides = [1, 1]} : vector<8x384xf32> to vector<8x128xf32>
    %179 = arith.addf %177, %178 : vector<8x128xf32>
    %180 = arith.negf %179 : vector<8x128xf32>
    %181 = math.exp %180 : vector<8x128xf32>
    %cst_52 = arith.constant 1.000000e+00 : f32
    %182 = vector.broadcast %cst_52 : f32 to vector<8x128xf32>
    %183 = arith.addf %182, %181 : vector<8x128xf32>
    %184 = arith.divf %182, %183 : vector<8x128xf32>
    %185 = vector.extract_strided_slice %168 {offsets = [0, 256], sizes = [8, 128], strides = [1, 1]} : vector<8x384xf32> to vector<8x128xf32>
    %186 = vector.extract_strided_slice %167 {offsets = [0, 256], sizes = [8, 128], strides = [1, 1]} : vector<8x384xf32> to vector<8x128xf32>
    %187 = vector.broadcast %41 : vector<1x128xf32> to vector<8x128xf32>
    %188 = arith.addf %186, %187 : vector<8x128xf32>
    %189 = arith.mulf %176, %188 : vector<8x128xf32>
    %190 = arith.addf %185, %189 : vector<8x128xf32>
    %191 = math.tanh %190 : vector<8x128xf32>
    %cst_53 = arith.constant 1.000000e+00 : f32
    %192 = vector.broadcast %cst_53 : f32 to vector<8x128xf32>
    %193 = arith.subf %192, %184 : vector<8x128xf32>
    %194 = arith.mulf %193, %191 : vector<8x128xf32>
    %195 = arith.mulf %184, %165 : vector<8x128xf32>
    %196 = arith.addf %194, %195 : vector<8x128xf32>
    %c32 = arith.constant 32 : index
    %c0_54 = arith.constant 0 : index
    %197 = vector.load %arg15[%c32, %c0_54] : memref<128x128xf32, #tpu.memory_space<vmem>>, vector<8x128xf32>
    tpu.vector_store %arg15[%c32, %c0_54], %196 {strides = array<i32>} : memref<128x128xf32, #tpu.memory_space<vmem>>, vector<8x128xf32>,
    %cst_55 = arith.constant dense<0.000000e+00> : vector<8x384xf32>
    %198 = tpu.matmul %196, %40, %cst_55 {dimension_numbers = #tpu.dot_dimension_numbers<[1], [0], [0], [1], [0, 0, 1, 1], [], []>} : vector<8x128xf32>, vector<128x384xf32>, vector<8x384xf32> -> vector<8x384xf32>
    %199 = vector.extract_strided_slice %39 {offsets = [40, 0], sizes = [8, 384], strides = [1, 1]} : vector<128x384xf32> to vector<8x384xf32>
    %200 = vector.extract_strided_slice %199 {offsets = [0, 0], sizes = [8, 128], strides = [1, 1]} : vector<8x384xf32> to vector<8x128xf32>
    %201 = vector.extract_strided_slice %198 {offsets = [0, 0], sizes = [8, 128], strides = [1, 1]} : vector<8x384xf32> to vector<8x128xf32>
    %202 = arith.addf %200, %201 : vector<8x128xf32>
    %203 = arith.negf %202 : vector<8x128xf32>
    %204 = math.exp %203 : vector<8x128xf32>
    %cst_56 = arith.constant 1.000000e+00 : f32
    %205 = vector.broadcast %cst_56 : f32 to vector<8x128xf32>
    %206 = arith.addf %205, %204 : vector<8x128xf32>
    %207 = arith.divf %205, %206 : vector<8x128xf32>
    %208 = vector.extract_strided_slice %199 {offsets = [0, 128], sizes = [8, 128], strides = [1, 1]} : vector<8x384xf32> to vector<8x128xf32>
    %209 = vector.extract_strided_slice %198 {offsets = [0, 128], sizes = [8, 128], strides = [1, 1]} : vector<8x384xf32> to vector<8x128xf32>
    %210 = arith.addf %208, %209 : vector<8x128xf32>
    %211 = arith.negf %210 : vector<8x128xf32>
    %212 = math.exp %211 : vector<8x128xf32>
    %cst_57 = arith.constant 1.000000e+00 : f32
    %213 = vector.broadcast %cst_57 : f32 to vector<8x128xf32>
    %214 = arith.addf %213, %212 : vector<8x128xf32>
    %215 = arith.divf %213, %214 : vector<8x128xf32>
    %216 = vector.extract_strided_slice %199 {offsets = [0, 256], sizes = [8, 128], strides = [1, 1]} : vector<8x384xf32> to vector<8x128xf32>
    %217 = vector.extract_strided_slice %198 {offsets = [0, 256], sizes = [8, 128], strides = [1, 1]} : vector<8x384xf32> to vector<8x128xf32>
    %218 = vector.broadcast %41 : vector<1x128xf32> to vector<8x128xf32>
    %219 = arith.addf %217, %218 : vector<8x128xf32>
    %220 = arith.mulf %207, %219 : vector<8x128xf32>
    %221 = arith.addf %216, %220 : vector<8x128xf32>
    %222 = math.tanh %221 : vector<8x128xf32>
    %cst_58 = arith.constant 1.000000e+00 : f32
    %223 = vector.broadcast %cst_58 : f32 to vector<8x128xf32>
    %224 = arith.subf %223, %215 : vector<8x128xf32>
    %225 = arith.mulf %224, %222 : vector<8x128xf32>
    %226 = arith.mulf %215, %196 : vector<8x128xf32>
    %227 = arith.addf %225, %226 : vector<8x128xf32>
    %c40 = arith.constant 40 : index
    %c0_59 = arith.constant 0 : index
    %228 = vector.load %arg15[%c40, %c0_59] : memref<128x128xf32, #tpu.memory_space<vmem>>, vector<8x128xf32>
    tpu.vector_store %arg15[%c40, %c0_59], %227 {strides = array<i32>} : memref<128x128xf32, #tpu.memory_space<vmem>>, vector<8x128xf32>,
    %cst_60 = arith.constant dense<0.000000e+00> : vector<8x384xf32>
    %229 = tpu.matmul %227, %40, %cst_60 {dimension_numbers = #tpu.dot_dimension_numbers<[1], [0], [0], [1], [0, 0, 1, 1], [], []>} : vector<8x128xf32>, vector<128x384xf32>, vector<8x384xf32> -> vector<8x384xf32>
    %230 = vector.extract_strided_slice %39 {offsets = [48, 0], sizes = [8, 384], strides = [1, 1]} : vector<128x384xf32> to vector<8x384xf32>
    %231 = vector.extract_strided_slice %230 {offsets = [0, 0], sizes = [8, 128], strides = [1, 1]} : vector<8x384xf32> to vector<8x128xf32>
    %232 = vector.extract_strided_slice %229 {offsets = [0, 0], sizes = [8, 128], strides = [1, 1]} : vector<8x384xf32> to vector<8x128xf32>
    %233 = arith.addf %231, %232 : vector<8x128xf32>
    %234 = arith.negf %233 : vector<8x128xf32>
    %235 = math.exp %234 : vector<8x128xf32>
    %cst_61 = arith.constant 1.000000e+00 : f32
    %236 = vector.broadcast %cst_61 : f32 to vector<8x128xf32>
    %237 = arith.addf %236, %235 : vector<8x128xf32>
    %238 = arith.divf %236, %237 : vector<8x128xf32>
    %239 = vector.extract_strided_slice %230 {offsets = [0, 128], sizes = [8, 128], strides = [1, 1]} : vector<8x384xf32> to vector<8x128xf32>
    %240 = vector.extract_strided_slice %229 {offsets = [0, 128], sizes = [8, 128], strides = [1, 1]} : vector<8x384xf32> to vector<8x128xf32>
    %241 = arith.addf %239, %240 : vector<8x128xf32>
    %242 = arith.negf %241 : vector<8x128xf32>
    %243 = math.exp %242 : vector<8x128xf32>
    %cst_62 = arith.constant 1.000000e+00 : f32
    %244 = vector.broadcast %cst_62 : f32 to vector<8x128xf32>
    %245 = arith.addf %244, %243 : vector<8x128xf32>
    %246 = arith.divf %244, %245 : vector<8x128xf32>
    %247 = vector.extract_strided_slice %230 {offsets = [0, 256], sizes = [8, 128], strides = [1, 1]} : vector<8x384xf32> to vector<8x128xf32>
    %248 = vector.extract_strided_slice %229 {offsets = [0, 256], sizes = [8, 128], strides = [1, 1]} : vector<8x384xf32> to vector<8x128xf32>
    %249 = vector.broadcast %41 : vector<1x128xf32> to vector<8x128xf32>
    %250 = arith.addf %248, %249 : vector<8x128xf32>
    %251 = arith.mulf %238, %250 : vector<8x128xf32>
    %252 = arith.addf %247, %251 : vector<8x128xf32>
    %253 = math.tanh %252 : vector<8x128xf32>
    %cst_63 = arith.constant 1.000000e+00 : f32
    %254 = vector.broadcast %cst_63 : f32 to vector<8x128xf32>
    %255 = arith.subf %254, %246 : vector<8x128xf32>
    %256 = arith.mulf %255, %253 : vector<8x128xf32>
    %257 = arith.mulf %246, %227 : vector<8x128xf32>
    %258 = arith.addf %256, %257 : vector<8x128xf32>
    %c48 = arith.constant 48 : index
    %c0_64 = arith.constant 0 : index
    %259 = vector.load %arg15[%c48, %c0_64] : memref<128x128xf32, #tpu.memory_space<vmem>>, vector<8x128xf32>
    tpu.vector_store %arg15[%c48, %c0_64], %258 {strides = array<i32>} : memref<128x128xf32, #tpu.memory_space<vmem>>, vector<8x128xf32>,
    %cst_65 = arith.constant dense<0.000000e+00> : vector<8x384xf32>
    %260 = tpu.matmul %258, %40, %cst_65 {dimension_numbers = #tpu.dot_dimension_numbers<[1], [0], [0], [1], [0, 0, 1, 1], [], []>} : vector<8x128xf32>, vector<128x384xf32>, vector<8x384xf32> -> vector<8x384xf32>
    %261 = vector.extract_strided_slice %39 {offsets = [56, 0], sizes = [8, 384], strides = [1, 1]} : vector<128x384xf32> to vector<8x384xf32>
    %262 = vector.extract_strided_slice %261 {offsets = [0, 0], sizes = [8, 128], strides = [1, 1]} : vector<8x384xf32> to vector<8x128xf32>
    %263 = vector.extract_strided_slice %260 {offsets = [0, 0], sizes = [8, 128], strides = [1, 1]} : vector<8x384xf32> to vector<8x128xf32>
    %264 = arith.addf %262, %263 : vector<8x128xf32>
    %265 = arith.negf %264 : vector<8x128xf32>
    %266 = math.exp %265 : vector<8x128xf32>
    %cst_66 = arith.constant 1.000000e+00 : f32
    %267 = vector.broadcast %cst_66 : f32 to vector<8x128xf32>
    %268 = arith.addf %267, %266 : vector<8x128xf32>
    %269 = arith.divf %267, %268 : vector<8x128xf32>
    %270 = vector.extract_strided_slice %261 {offsets = [0, 128], sizes = [8, 128], strides = [1, 1]} : vector<8x384xf32> to vector<8x128xf32>
    %271 = vector.extract_strided_slice %260 {offsets = [0, 128], sizes = [8, 128], strides = [1, 1]} : vector<8x384xf32> to vector<8x128xf32>
    %272 = arith.addf %270, %271 : vector<8x128xf32>
    %273 = arith.negf %272 : vector<8x128xf32>
    %274 = math.exp %273 : vector<8x128xf32>
    %cst_67 = arith.constant 1.000000e+00 : f32
    %275 = vector.broadcast %cst_67 : f32 to vector<8x128xf32>
    %276 = arith.addf %275, %274 : vector<8x128xf32>
    %277 = arith.divf %275, %276 : vector<8x128xf32>
    %278 = vector.extract_strided_slice %261 {offsets = [0, 256], sizes = [8, 128], strides = [1, 1]} : vector<8x384xf32> to vector<8x128xf32>
    %279 = vector.extract_strided_slice %260 {offsets = [0, 256], sizes = [8, 128], strides = [1, 1]} : vector<8x384xf32> to vector<8x128xf32>
    %280 = vector.broadcast %41 : vector<1x128xf32> to vector<8x128xf32>
    %281 = arith.addf %279, %280 : vector<8x128xf32>
    %282 = arith.mulf %269, %281 : vector<8x128xf32>
    %283 = arith.addf %278, %282 : vector<8x128xf32>
    %284 = math.tanh %283 : vector<8x128xf32>
    %cst_68 = arith.constant 1.000000e+00 : f32
    %285 = vector.broadcast %cst_68 : f32 to vector<8x128xf32>
    %286 = arith.subf %285, %277 : vector<8x128xf32>
    %287 = arith.mulf %286, %284 : vector<8x128xf32>
    %288 = arith.mulf %277, %258 : vector<8x128xf32>
    %289 = arith.addf %287, %288 : vector<8x128xf32>
    %c56 = arith.constant 56 : index
    %c0_69 = arith.constant 0 : index
    %290 = vector.load %arg15[%c56, %c0_69] : memref<128x128xf32, #tpu.memory_space<vmem>>, vector<8x128xf32>
    tpu.vector_store %arg15[%c56, %c0_69], %289 {strides = array<i32>} : memref<128x128xf32, #tpu.memory_space<vmem>>, vector<8x128xf32>,
    %cst_70 = arith.constant dense<0.000000e+00> : vector<8x384xf32>
    %291 = tpu.matmul %289, %40, %cst_70 {dimension_numbers = #tpu.dot_dimension_numbers<[1], [0], [0], [1], [0, 0, 1, 1], [], []>} : vector<8x128xf32>, vector<128x384xf32>, vector<8x384xf32> -> vector<8x384xf32>
    %292 = vector.extract_strided_slice %39 {offsets = [64, 0], sizes = [8, 384], strides = [1, 1]} : vector<128x384xf32> to vector<8x384xf32>
    %293 = vector.extract_strided_slice %292 {offsets = [0, 0], sizes = [8, 128], strides = [1, 1]} : vector<8x384xf32> to vector<8x128xf32>
    %294 = vector.extract_strided_slice %291 {offsets = [0, 0], sizes = [8, 128], strides = [1, 1]} : vector<8x384xf32> to vector<8x128xf32>
    %295 = arith.addf %293, %294 : vector<8x128xf32>
    %296 = arith.negf %295 : vector<8x128xf32>
    %297 = math.exp %296 : vector<8x128xf32>
    %cst_71 = arith.constant 1.000000e+00 : f32
    %298 = vector.broadcast %cst_71 : f32 to vector<8x128xf32>
    %299 = arith.addf %298, %297 : vector<8x128xf32>
    %300 = arith.divf %298, %299 : vector<8x128xf32>
    %301 = vector.extract_strided_slice %292 {offsets = [0, 128], sizes = [8, 128], strides = [1, 1]} : vector<8x384xf32> to vector<8x128xf32>
    %302 = vector.extract_strided_slice %291 {offsets = [0, 128], sizes = [8, 128], strides = [1, 1]} : vector<8x384xf32> to vector<8x128xf32>
    %303 = arith.addf %301, %302 : vector<8x128xf32>
    %304 = arith.negf %303 : vector<8x128xf32>
    %305 = math.exp %304 : vector<8x128xf32>
    %cst_72 = arith.constant 1.000000e+00 : f32
    %306 = vector.broadcast %cst_72 : f32 to vector<8x128xf32>
    %307 = arith.addf %306, %305 : vector<8x128xf32>
    %308 = arith.divf %306, %307 : vector<8x128xf32>
    %309 = vector.extract_strided_slice %292 {offsets = [0, 256], sizes = [8, 128], strides = [1, 1]} : vector<8x384xf32> to vector<8x128xf32>
    %310 = vector.extract_strided_slice %291 {offsets = [0, 256], sizes = [8, 128], strides = [1, 1]} : vector<8x384xf32> to vector<8x128xf32>
    %311 = vector.broadcast %41 : vector<1x128xf32> to vector<8x128xf32>
    %312 = arith.addf %310, %311 : vector<8x128xf32>
    %313 = arith.mulf %300, %312 : vector<8x128xf32>
    %314 = arith.addf %309, %313 : vector<8x128xf32>
    %315 = math.tanh %314 : vector<8x128xf32>
    %cst_73 = arith.constant 1.000000e+00 : f32
    %316 = vector.broadcast %cst_73 : f32 to vector<8x128xf32>
    %317 = arith.subf %316, %308 : vector<8x128xf32>
    %318 = arith.mulf %317, %315 : vector<8x128xf32>
    %319 = arith.mulf %308, %289 : vector<8x128xf32>
    %320 = arith.addf %318, %319 : vector<8x128xf32>
    %c64 = arith.constant 64 : index
    %c0_74 = arith.constant 0 : index
    %321 = vector.load %arg15[%c64, %c0_74] : memref<128x128xf32, #tpu.memory_space<vmem>>, vector<8x128xf32>
    tpu.vector_store %arg15[%c64, %c0_74], %320 {strides = array<i32>} : memref<128x128xf32, #tpu.memory_space<vmem>>, vector<8x128xf32>,
    %cst_75 = arith.constant dense<0.000000e+00> : vector<8x384xf32>
    %322 = tpu.matmul %320, %40, %cst_75 {dimension_numbers = #tpu.dot_dimension_numbers<[1], [0], [0], [1], [0, 0, 1, 1], [], []>} : vector<8x128xf32>, vector<128x384xf32>, vector<8x384xf32> -> vector<8x384xf32>
    %323 = vector.extract_strided_slice %39 {offsets = [72, 0], sizes = [8, 384], strides = [1, 1]} : vector<128x384xf32> to vector<8x384xf32>
    %324 = vector.extract_strided_slice %323 {offsets = [0, 0], sizes = [8, 128], strides = [1, 1]} : vector<8x384xf32> to vector<8x128xf32>
    %325 = vector.extract_strided_slice %322 {offsets = [0, 0], sizes = [8, 128], strides = [1, 1]} : vector<8x384xf32> to vector<8x128xf32>
    %326 = arith.addf %324, %325 : vector<8x128xf32>
    %327 = arith.negf %326 : vector<8x128xf32>
    %328 = math.exp %327 : vector<8x128xf32>
    %cst_76 = arith.constant 1.000000e+00 : f32
    %329 = vector.broadcast %cst_76 : f32 to vector<8x128xf32>
    %330 = arith.addf %329, %328 : vector<8x128xf32>
    %331 = arith.divf %329, %330 : vector<8x128xf32>
    %332 = vector.extract_strided_slice %323 {offsets = [0, 128], sizes = [8, 128], strides = [1, 1]} : vector<8x384xf32> to vector<8x128xf32>
    %333 = vector.extract_strided_slice %322 {offsets = [0, 128], sizes = [8, 128], strides = [1, 1]} : vector<8x384xf32> to vector<8x128xf32>
    %334 = arith.addf %332, %333 : vector<8x128xf32>
    %335 = arith.negf %334 : vector<8x128xf32>
    %336 = math.exp %335 : vector<8x128xf32>
    %cst_77 = arith.constant 1.000000e+00 : f32
    %337 = vector.broadcast %cst_77 : f32 to vector<8x128xf32>
    %338 = arith.addf %337, %336 : vector<8x128xf32>
    %339 = arith.divf %337, %338 : vector<8x128xf32>
    %340 = vector.extract_strided_slice %323 {offsets = [0, 256], sizes = [8, 128], strides = [1, 1]} : vector<8x384xf32> to vector<8x128xf32>
    %341 = vector.extract_strided_slice %322 {offsets = [0, 256], sizes = [8, 128], strides = [1, 1]} : vector<8x384xf32> to vector<8x128xf32>
    %342 = vector.broadcast %41 : vector<1x128xf32> to vector<8x128xf32>
    %343 = arith.addf %341, %342 : vector<8x128xf32>
    %344 = arith.mulf %331, %343 : vector<8x128xf32>
    %345 = arith.addf %340, %344 : vector<8x128xf32>
    %346 = math.tanh %345 : vector<8x128xf32>
    %cst_78 = arith.constant 1.000000e+00 : f32
    %347 = vector.broadcast %cst_78 : f32 to vector<8x128xf32>
    %348 = arith.subf %347, %339 : vector<8x128xf32>
    %349 = arith.mulf %348, %346 : vector<8x128xf32>
    %350 = arith.mulf %339, %320 : vector<8x128xf32>
    %351 = arith.addf %349, %350 : vector<8x128xf32>
    %c72 = arith.constant 72 : index
    %c0_79 = arith.constant 0 : index
    %352 = vector.load %arg15[%c72, %c0_79] : memref<128x128xf32, #tpu.memory_space<vmem>>, vector<8x128xf32>
    tpu.vector_store %arg15[%c72, %c0_79], %351 {strides = array<i32>} : memref<128x128xf32, #tpu.memory_space<vmem>>, vector<8x128xf32>,
    %cst_80 = arith.constant dense<0.000000e+00> : vector<8x384xf32>
    %353 = tpu.matmul %351, %40, %cst_80 {dimension_numbers = #tpu.dot_dimension_numbers<[1], [0], [0], [1], [0, 0, 1, 1], [], []>} : vector<8x128xf32>, vector<128x384xf32>, vector<8x384xf32> -> vector<8x384xf32>
    %354 = vector.extract_strided_slice %39 {offsets = [80, 0], sizes = [8, 384], strides = [1, 1]} : vector<128x384xf32> to vector<8x384xf32>
    %355 = vector.extract_strided_slice %354 {offsets = [0, 0], sizes = [8, 128], strides = [1, 1]} : vector<8x384xf32> to vector<8x128xf32>
    %356 = vector.extract_strided_slice %353 {offsets = [0, 0], sizes = [8, 128], strides = [1, 1]} : vector<8x384xf32> to vector<8x128xf32>
    %357 = arith.addf %355, %356 : vector<8x128xf32>
    %358 = arith.negf %357 : vector<8x128xf32>
    %359 = math.exp %358 : vector<8x128xf32>
    %cst_81 = arith.constant 1.000000e+00 : f32
    %360 = vector.broadcast %cst_81 : f32 to vector<8x128xf32>
    %361 = arith.addf %360, %359 : vector<8x128xf32>
    %362 = arith.divf %360, %361 : vector<8x128xf32>
    %363 = vector.extract_strided_slice %354 {offsets = [0, 128], sizes = [8, 128], strides = [1, 1]} : vector<8x384xf32> to vector<8x128xf32>
    %364 = vector.extract_strided_slice %353 {offsets = [0, 128], sizes = [8, 128], strides = [1, 1]} : vector<8x384xf32> to vector<8x128xf32>
    %365 = arith.addf %363, %364 : vector<8x128xf32>
    %366 = arith.negf %365 : vector<8x128xf32>
    %367 = math.exp %366 : vector<8x128xf32>
    %cst_82 = arith.constant 1.000000e+00 : f32
    %368 = vector.broadcast %cst_82 : f32 to vector<8x128xf32>
    %369 = arith.addf %368, %367 : vector<8x128xf32>
    %370 = arith.divf %368, %369 : vector<8x128xf32>
    %371 = vector.extract_strided_slice %354 {offsets = [0, 256], sizes = [8, 128], strides = [1, 1]} : vector<8x384xf32> to vector<8x128xf32>
    %372 = vector.extract_strided_slice %353 {offsets = [0, 256], sizes = [8, 128], strides = [1, 1]} : vector<8x384xf32> to vector<8x128xf32>
    %373 = vector.broadcast %41 : vector<1x128xf32> to vector<8x128xf32>
    %374 = arith.addf %372, %373 : vector<8x128xf32>
    %375 = arith.mulf %362, %374 : vector<8x128xf32>
    %376 = arith.addf %371, %375 : vector<8x128xf32>
    %377 = math.tanh %376 : vector<8x128xf32>
    %cst_83 = arith.constant 1.000000e+00 : f32
    %378 = vector.broadcast %cst_83 : f32 to vector<8x128xf32>
    %379 = arith.subf %378, %370 : vector<8x128xf32>
    %380 = arith.mulf %379, %377 : vector<8x128xf32>
    %381 = arith.mulf %370, %351 : vector<8x128xf32>
    %382 = arith.addf %380, %381 : vector<8x128xf32>
    %c80 = arith.constant 80 : index
    %c0_84 = arith.constant 0 : index
    %383 = vector.load %arg15[%c80, %c0_84] : memref<128x128xf32, #tpu.memory_space<vmem>>, vector<8x128xf32>
    tpu.vector_store %arg15[%c80, %c0_84], %382 {strides = array<i32>} : memref<128x128xf32, #tpu.memory_space<vmem>>, vector<8x128xf32>,
    %cst_85 = arith.constant dense<0.000000e+00> : vector<8x384xf32>
    %384 = tpu.matmul %382, %40, %cst_85 {dimension_numbers = #tpu.dot_dimension_numbers<[1], [0], [0], [1], [0, 0, 1, 1], [], []>} : vector<8x128xf32>, vector<128x384xf32>, vector<8x384xf32> -> vector<8x384xf32>
    %385 = vector.extract_strided_slice %39 {offsets = [88, 0], sizes = [8, 384], strides = [1, 1]} : vector<128x384xf32> to vector<8x384xf32>
    %386 = vector.extract_strided_slice %385 {offsets = [0, 0], sizes = [8, 128], strides = [1, 1]} : vector<8x384xf32> to vector<8x128xf32>
    %387 = vector.extract_strided_slice %384 {offsets = [0, 0], sizes = [8, 128], strides = [1, 1]} : vector<8x384xf32> to vector<8x128xf32>
    %388 = arith.addf %386, %387 : vector<8x128xf32>
    %389 = arith.negf %388 : vector<8x128xf32>
    %390 = math.exp %389 : vector<8x128xf32>
    %cst_86 = arith.constant 1.000000e+00 : f32
    %391 = vector.broadcast %cst_86 : f32 to vector<8x128xf32>
    %392 = arith.addf %391, %390 : vector<8x128xf32>
    %393 = arith.divf %391, %392 : vector<8x128xf32>
    %394 = vector.extract_strided_slice %385 {offsets = [0, 128], sizes = [8, 128], strides = [1, 1]} : vector<8x384xf32> to vector<8x128xf32>
    %395 = vector.extract_strided_slice %384 {offsets = [0, 128], sizes = [8, 128], strides = [1, 1]} : vector<8x384xf32> to vector<8x128xf32>
    %396 = arith.addf %394, %395 : vector<8x128xf32>
    %397 = arith.negf %396 : vector<8x128xf32>
    %398 = math.exp %397 : vector<8x128xf32>
    %cst_87 = arith.constant 1.000000e+00 : f32
    %399 = vector.broadcast %cst_87 : f32 to vector<8x128xf32>
    %400 = arith.addf %399, %398 : vector<8x128xf32>
    %401 = arith.divf %399, %400 : vector<8x128xf32>
    %402 = vector.extract_strided_slice %385 {offsets = [0, 256], sizes = [8, 128], strides = [1, 1]} : vector<8x384xf32> to vector<8x128xf32>
    %403 = vector.extract_strided_slice %384 {offsets = [0, 256], sizes = [8, 128], strides = [1, 1]} : vector<8x384xf32> to vector<8x128xf32>
    %404 = vector.broadcast %41 : vector<1x128xf32> to vector<8x128xf32>
    %405 = arith.addf %403, %404 : vector<8x128xf32>
    %406 = arith.mulf %393, %405 : vector<8x128xf32>
    %407 = arith.addf %402, %406 : vector<8x128xf32>
    %408 = math.tanh %407 : vector<8x128xf32>
    %cst_88 = arith.constant 1.000000e+00 : f32
    %409 = vector.broadcast %cst_88 : f32 to vector<8x128xf32>
    %410 = arith.subf %409, %401 : vector<8x128xf32>
    %411 = arith.mulf %410, %408 : vector<8x128xf32>
    %412 = arith.mulf %401, %382 : vector<8x128xf32>
    %413 = arith.addf %411, %412 : vector<8x128xf32>
    %c88 = arith.constant 88 : index
    %c0_89 = arith.constant 0 : index
    %414 = vector.load %arg15[%c88, %c0_89] : memref<128x128xf32, #tpu.memory_space<vmem>>, vector<8x128xf32>
    tpu.vector_store %arg15[%c88, %c0_89], %413 {strides = array<i32>} : memref<128x128xf32, #tpu.memory_space<vmem>>, vector<8x128xf32>,
    %cst_90 = arith.constant dense<0.000000e+00> : vector<8x384xf32>
    %415 = tpu.matmul %413, %40, %cst_90 {dimension_numbers = #tpu.dot_dimension_numbers<[1], [0], [0], [1], [0, 0, 1, 1], [], []>} : vector<8x128xf32>, vector<128x384xf32>, vector<8x384xf32> -> vector<8x384xf32>
    %416 = vector.extract_strided_slice %39 {offsets = [96, 0], sizes = [8, 384], strides = [1, 1]} : vector<128x384xf32> to vector<8x384xf32>
    %417 = vector.extract_strided_slice %416 {offsets = [0, 0], sizes = [8, 128], strides = [1, 1]} : vector<8x384xf32> to vector<8x128xf32>
    %418 = vector.extract_strided_slice %415 {offsets = [0, 0], sizes = [8, 128], strides = [1, 1]} : vector<8x384xf32> to vector<8x128xf32>
    %419 = arith.addf %417, %418 : vector<8x128xf32>
    %420 = arith.negf %419 : vector<8x128xf32>
    %421 = math.exp %420 : vector<8x128xf32>
    %cst_91 = arith.constant 1.000000e+00 : f32
    %422 = vector.broadcast %cst_91 : f32 to vector<8x128xf32>
    %423 = arith.addf %422, %421 : vector<8x128xf32>
    %424 = arith.divf %422, %423 : vector<8x128xf32>
    %425 = vector.extract_strided_slice %416 {offsets = [0, 128], sizes = [8, 128], strides = [1, 1]} : vector<8x384xf32> to vector<8x128xf32>
    %426 = vector.extract_strided_slice %415 {offsets = [0, 128], sizes = [8, 128], strides = [1, 1]} : vector<8x384xf32> to vector<8x128xf32>
    %427 = arith.addf %425, %426 : vector<8x128xf32>
    %428 = arith.negf %427 : vector<8x128xf32>
    %429 = math.exp %428 : vector<8x128xf32>
    %cst_92 = arith.constant 1.000000e+00 : f32
    %430 = vector.broadcast %cst_92 : f32 to vector<8x128xf32>
    %431 = arith.addf %430, %429 : vector<8x128xf32>
    %432 = arith.divf %430, %431 : vector<8x128xf32>
    %433 = vector.extract_strided_slice %416 {offsets = [0, 256], sizes = [8, 128], strides = [1, 1]} : vector<8x384xf32> to vector<8x128xf32>
    %434 = vector.extract_strided_slice %415 {offsets = [0, 256], sizes = [8, 128], strides = [1, 1]} : vector<8x384xf32> to vector<8x128xf32>
    %435 = vector.broadcast %41 : vector<1x128xf32> to vector<8x128xf32>
    %436 = arith.addf %434, %435 : vector<8x128xf32>
    %437 = arith.mulf %424, %436 : vector<8x128xf32>
    %438 = arith.addf %433, %437 : vector<8x128xf32>
    %439 = math.tanh %438 : vector<8x128xf32>
    %cst_93 = arith.constant 1.000000e+00 : f32
    %440 = vector.broadcast %cst_93 : f32 to vector<8x128xf32>
    %441 = arith.subf %440, %432 : vector<8x128xf32>
    %442 = arith.mulf %441, %439 : vector<8x128xf32>
    %443 = arith.mulf %432, %413 : vector<8x128xf32>
    %444 = arith.addf %442, %443 : vector<8x128xf32>
    %c96 = arith.constant 96 : index
    %c0_94 = arith.constant 0 : index
    %445 = vector.load %arg15[%c96, %c0_94] : memref<128x128xf32, #tpu.memory_space<vmem>>, vector<8x128xf32>
    tpu.vector_store %arg15[%c96, %c0_94], %444 {strides = array<i32>} : memref<128x128xf32, #tpu.memory_space<vmem>>, vector<8x128xf32>,
    %cst_95 = arith.constant dense<0.000000e+00> : vector<8x384xf32>
    %446 = tpu.matmul %444, %40, %cst_95 {dimension_numbers = #tpu.dot_dimension_numbers<[1], [0], [0], [1], [0, 0, 1, 1], [], []>} : vector<8x128xf32>, vector<128x384xf32>, vector<8x384xf32> -> vector<8x384xf32>
    %447 = vector.extract_strided_slice %39 {offsets = [104, 0], sizes = [8, 384], strides = [1, 1]} : vector<128x384xf32> to vector<8x384xf32>
    %448 = vector.extract_strided_slice %447 {offsets = [0, 0], sizes = [8, 128], strides = [1, 1]} : vector<8x384xf32> to vector<8x128xf32>
    %449 = vector.extract_strided_slice %446 {offsets = [0, 0], sizes = [8, 128], strides = [1, 1]} : vector<8x384xf32> to vector<8x128xf32>
    %450 = arith.addf %448, %449 : vector<8x128xf32>
    %451 = arith.negf %450 : vector<8x128xf32>
    %452 = math.exp %451 : vector<8x128xf32>
    %cst_96 = arith.constant 1.000000e+00 : f32
    %453 = vector.broadcast %cst_96 : f32 to vector<8x128xf32>
    %454 = arith.addf %453, %452 : vector<8x128xf32>
    %455 = arith.divf %453, %454 : vector<8x128xf32>
    %456 = vector.extract_strided_slice %447 {offsets = [0, 128], sizes = [8, 128], strides = [1, 1]} : vector<8x384xf32> to vector<8x128xf32>
    %457 = vector.extract_strided_slice %446 {offsets = [0, 128], sizes = [8, 128], strides = [1, 1]} : vector<8x384xf32> to vector<8x128xf32>
    %458 = arith.addf %456, %457 : vector<8x128xf32>
    %459 = arith.negf %458 : vector<8x128xf32>
    %460 = math.exp %459 : vector<8x128xf32>
    %cst_97 = arith.constant 1.000000e+00 : f32
    %461 = vector.broadcast %cst_97 : f32 to vector<8x128xf32>
    %462 = arith.addf %461, %460 : vector<8x128xf32>
    %463 = arith.divf %461, %462 : vector<8x128xf32>
    %464 = vector.extract_strided_slice %447 {offsets = [0, 256], sizes = [8, 128], strides = [1, 1]} : vector<8x384xf32> to vector<8x128xf32>
    %465 = vector.extract_strided_slice %446 {offsets = [0, 256], sizes = [8, 128], strides = [1, 1]} : vector<8x384xf32> to vector<8x128xf32>
    %466 = vector.broadcast %41 : vector<1x128xf32> to vector<8x128xf32>
    %467 = arith.addf %465, %466 : vector<8x128xf32>
    %468 = arith.mulf %455, %467 : vector<8x128xf32>
    %469 = arith.addf %464, %468 : vector<8x128xf32>
    %470 = math.tanh %469 : vector<8x128xf32>
    %cst_98 = arith.constant 1.000000e+00 : f32
    %471 = vector.broadcast %cst_98 : f32 to vector<8x128xf32>
    %472 = arith.subf %471, %463 : vector<8x128xf32>
    %473 = arith.mulf %472, %470 : vector<8x128xf32>
    %474 = arith.mulf %463, %444 : vector<8x128xf32>
    %475 = arith.addf %473, %474 : vector<8x128xf32>
    %c104 = arith.constant 104 : index
    %c0_99 = arith.constant 0 : index
    %476 = vector.load %arg15[%c104, %c0_99] : memref<128x128xf32, #tpu.memory_space<vmem>>, vector<8x128xf32>
    tpu.vector_store %arg15[%c104, %c0_99], %475 {strides = array<i32>} : memref<128x128xf32, #tpu.memory_space<vmem>>, vector<8x128xf32>,
    %cst_100 = arith.constant dense<0.000000e+00> : vector<8x384xf32>
    %477 = tpu.matmul %475, %40, %cst_100 {dimension_numbers = #tpu.dot_dimension_numbers<[1], [0], [0], [1], [0, 0, 1, 1], [], []>} : vector<8x128xf32>, vector<128x384xf32>, vector<8x384xf32> -> vector<8x384xf32>
    %478 = vector.extract_strided_slice %39 {offsets = [112, 0], sizes = [8, 384], strides = [1, 1]} : vector<128x384xf32> to vector<8x384xf32>
    %479 = vector.extract_strided_slice %478 {offsets = [0, 0], sizes = [8, 128], strides = [1, 1]} : vector<8x384xf32> to vector<8x128xf32>
    %480 = vector.extract_strided_slice %477 {offsets = [0, 0], sizes = [8, 128], strides = [1, 1]} : vector<8x384xf32> to vector<8x128xf32>
    %481 = arith.addf %479, %480 : vector<8x128xf32>
    %482 = arith.negf %481 : vector<8x128xf32>
    %483 = math.exp %482 : vector<8x128xf32>
    %cst_101 = arith.constant 1.000000e+00 : f32
    %484 = vector.broadcast %cst_101 : f32 to vector<8x128xf32>
    %485 = arith.addf %484, %483 : vector<8x128xf32>
    %486 = arith.divf %484, %485 : vector<8x128xf32>
    %487 = vector.extract_strided_slice %478 {offsets = [0, 128], sizes = [8, 128], strides = [1, 1]} : vector<8x384xf32> to vector<8x128xf32>
    %488 = vector.extract_strided_slice %477 {offsets = [0, 128], sizes = [8, 128], strides = [1, 1]} : vector<8x384xf32> to vector<8x128xf32>
    %489 = arith.addf %487, %488 : vector<8x128xf32>
    %490 = arith.negf %489 : vector<8x128xf32>
    %491 = math.exp %490 : vector<8x128xf32>
    %cst_102 = arith.constant 1.000000e+00 : f32
    %492 = vector.broadcast %cst_102 : f32 to vector<8x128xf32>
    %493 = arith.addf %492, %491 : vector<8x128xf32>
    %494 = arith.divf %492, %493 : vector<8x128xf32>
    %495 = vector.extract_strided_slice %478 {offsets = [0, 256], sizes = [8, 128], strides = [1, 1]} : vector<8x384xf32> to vector<8x128xf32>
    %496 = vector.extract_strided_slice %477 {offsets = [0, 256], sizes = [8, 128], strides = [1, 1]} : vector<8x384xf32> to vector<8x128xf32>
    %497 = vector.broadcast %41 : vector<1x128xf32> to vector<8x128xf32>
    %498 = arith.addf %496, %497 : vector<8x128xf32>
    %499 = arith.mulf %486, %498 : vector<8x128xf32>
    %500 = arith.addf %495, %499 : vector<8x128xf32>
    %501 = math.tanh %500 : vector<8x128xf32>
    %cst_103 = arith.constant 1.000000e+00 : f32
    %502 = vector.broadcast %cst_103 : f32 to vector<8x128xf32>
    %503 = arith.subf %502, %494 : vector<8x128xf32>
    %504 = arith.mulf %503, %501 : vector<8x128xf32>
    %505 = arith.mulf %494, %475 : vector<8x128xf32>
    %506 = arith.addf %504, %505 : vector<8x128xf32>
    %c112 = arith.constant 112 : index
    %c0_104 = arith.constant 0 : index
    %507 = vector.load %arg15[%c112, %c0_104] : memref<128x128xf32, #tpu.memory_space<vmem>>, vector<8x128xf32>
    tpu.vector_store %arg15[%c112, %c0_104], %506 {strides = array<i32>} : memref<128x128xf32, #tpu.memory_space<vmem>>, vector<8x128xf32>,
    %cst_105 = arith.constant dense<0.000000e+00> : vector<8x384xf32>
    %508 = tpu.matmul %506, %40, %cst_105 {dimension_numbers = #tpu.dot_dimension_numbers<[1], [0], [0], [1], [0, 0, 1, 1], [], []>} : vector<8x128xf32>, vector<128x384xf32>, vector<8x384xf32> -> vector<8x384xf32>
    %509 = vector.extract_strided_slice %39 {offsets = [120, 0], sizes = [8, 384], strides = [1, 1]} : vector<128x384xf32> to vector<8x384xf32>
    %510 = vector.extract_strided_slice %509 {offsets = [0, 0], sizes = [8, 128], strides = [1, 1]} : vector<8x384xf32> to vector<8x128xf32>
    %511 = vector.extract_strided_slice %508 {offsets = [0, 0], sizes = [8, 128], strides = [1, 1]} : vector<8x384xf32> to vector<8x128xf32>
    %512 = arith.addf %510, %511 : vector<8x128xf32>
    %513 = arith.negf %512 : vector<8x128xf32>
    %514 = math.exp %513 : vector<8x128xf32>
    %cst_106 = arith.constant 1.000000e+00 : f32
    %515 = vector.broadcast %cst_106 : f32 to vector<8x128xf32>
    %516 = arith.addf %515, %514 : vector<8x128xf32>
    %517 = arith.divf %515, %516 : vector<8x128xf32>
    %518 = vector.extract_strided_slice %509 {offsets = [0, 128], sizes = [8, 128], strides = [1, 1]} : vector<8x384xf32> to vector<8x128xf32>
    %519 = vector.extract_strided_slice %508 {offsets = [0, 128], sizes = [8, 128], strides = [1, 1]} : vector<8x384xf32> to vector<8x128xf32>
    %520 = arith.addf %518, %519 : vector<8x128xf32>
    %521 = arith.negf %520 : vector<8x128xf32>
    %522 = math.exp %521 : vector<8x128xf32>
    %cst_107 = arith.constant 1.000000e+00 : f32
    %523 = vector.broadcast %cst_107 : f32 to vector<8x128xf32>
    %524 = arith.addf %523, %522 : vector<8x128xf32>
    %525 = arith.divf %523, %524 : vector<8x128xf32>
    %526 = vector.extract_strided_slice %509 {offsets = [0, 256], sizes = [8, 128], strides = [1, 1]} : vector<8x384xf32> to vector<8x128xf32>
    %527 = vector.extract_strided_slice %508 {offsets = [0, 256], sizes = [8, 128], strides = [1, 1]} : vector<8x384xf32> to vector<8x128xf32>
    %528 = vector.broadcast %41 : vector<1x128xf32> to vector<8x128xf32>
    %529 = arith.addf %527, %528 : vector<8x128xf32>
    %530 = arith.mulf %517, %529 : vector<8x128xf32>
    %531 = arith.addf %526, %530 : vector<8x128xf32>
    %532 = math.tanh %531 : vector<8x128xf32>
    %cst_108 = arith.constant 1.000000e+00 : f32
    %533 = vector.broadcast %cst_108 : f32 to vector<8x128xf32>
    %534 = arith.subf %533, %525 : vector<8x128xf32>
    %535 = arith.mulf %534, %532 : vector<8x128xf32>
    %536 = arith.mulf %525, %506 : vector<8x128xf32>
    %537 = arith.addf %535, %536 : vector<8x128xf32>
    %c120 = arith.constant 120 : index
    %c0_109 = arith.constant 0 : index
    %538 = vector.load %arg15[%c120, %c0_109] : memref<128x128xf32, #tpu.memory_space<vmem>>, vector<8x128xf32>
    tpu.vector_store %arg15[%c120, %c0_109], %537 {strides = array<i32>} : memref<128x128xf32, #tpu.memory_space<vmem>>, vector<8x128xf32>,
    %c0_110 = arith.constant 0 : index
    %c0_111 = arith.constant 0 : index
    %539 = vector.load %arg14[%c0_110, %c0_111] : memref<8x128xf32, #tpu.memory_space<vmem>>, vector<8x128xf32>
    tpu.vector_store %arg14[%c0_110, %c0_111], %537 {strides = array<i32>} : memref<8x128xf32, #tpu.memory_space<vmem>>, vector<8x128xf32>,
    %c0_112 = arith.constant 0 : index
    %c0_113 = arith.constant 0 : index
    %540 = vector.load %arg15[%c0_112, %c0_113] : memref<128x128xf32, #tpu.memory_space<vmem>>, vector<128x128xf32>
    %541 = arith.truncf %540 : vector<128x128xf32> to vector<128x128xbf16>
    %c0_114 = arith.constant 0 : index
    %c0_115 = arith.constant 0 : index
    %542 = vector.load %arg9[%c0_114, %c0_115] : memref<128x128xbf16, #tpu.memory_space<vmem>>, vector<128x128xbf16>
    %cst_116 = arith.constant dense<0.000000e+00> : vector<128x128xf32>
    %543 = tpu.matmul %541, %542, %cst_116 {dimension_numbers = #tpu.dot_dimension_numbers<[1], [0], [0], [1], [0, 0, 1, 1], [], []>} : vector<128x128xbf16>, vector<128x128xbf16>, vector<128x128xf32> -> vector<128x128xf32>
    %c0_117 = arith.constant 0 : index
    %c0_118 = arith.constant 0 : index
    %544 = vector.load %arg10[%c0_117, %c0_118] : memref<1x128xf32, #tpu.memory_space<vmem>>, vector<1x128xf32>
    %545 = vector.broadcast %544 : vector<1x128xf32> to vector<128x128xf32>
    %546 = arith.addf %543, %545 : vector<128x128xf32>
    %547 = math.tanh %546 : vector<128x128xf32>
    %c0_119 = arith.constant 0 : index
    %c0_120 = arith.constant 0 : index
    %548 = vector.load %arg11[%c0_119, %c0_120] : memref<1x128xf32, #tpu.memory_space<vmem>>, vector<1x128xf32>
    %549 = vector.broadcast %548 : vector<1x128xf32> to vector<128x128xf32>
    %550 = arith.mulf %547, %549 : vector<128x128xf32>
    %cst_121 = arith.constant dense<0.000000e+00> : vector<128xf32>
    %551 = vector.multi_reduction <add>, %550, %cst_121 [1] : vector<128x128xf32> to vector<128xf32>
    %552 = vector.shape_cast %551 : vector<128xf32> to vector<128x1xf32>
    %c0_122 = arith.constant 0 : index
    %c0_123 = arith.constant 0 : index
    %553 = memref.load %arg12[%c0_122, %c0_123] : memref<1x1xf32, #tpu.memory_space<smem>>
    %554 = vector.broadcast %553 : f32 to vector<128x1xf32>
    %555 = arith.addf %552, %554 : vector<128x1xf32>
    %c0_124 = arith.constant 0 : index
    %c0_125 = arith.constant 0 : index
    %556 = vector.load %arg16[%c0_124, %c0_125] : memref<8x1xf32, #tpu.memory_space<vmem>>, vector<8x1xf32>
    %c0_126 = arith.constant 0 : index
    %c0_127 = arith.constant 0 : index
    %557 = vector.load %arg17[%c0_126, %c0_127] : memref<8x1xf32, #tpu.memory_space<vmem>>, vector<8x1xf32>
    %c0_128 = arith.constant 0 : index
    %c0_129 = arith.constant 0 : index
    %558 = vector.load %arg18[%c0_128, %c0_129] : memref<8x128xf32, #tpu.memory_space<vmem>>, vector<8x128xf32>
    %559 = vector.extract_strided_slice %555 {offsets = [0, 0], sizes = [8, 1], strides = [1, 1]} : vector<128x1xf32> to vector<8x1xf32>
    %560 = arith.maximumf %556, %559 : vector<8x1xf32>
    %561 = arith.subf %556, %560 : vector<8x1xf32>
    %562 = math.exp %561 : vector<8x1xf32>
    %563 = arith.subf %559, %560 : vector<8x1xf32>
    %564 = math.exp %563 : vector<8x1xf32>
    %565 = arith.mulf %562, %557 : vector<8x1xf32>
    %566 = arith.addf %565, %564 : vector<8x1xf32>
    %567 = vector.broadcast %562 : vector<8x1xf32> to vector<8x128xf32>
    %568 = arith.mulf %567, %558 : vector<8x128xf32>
    %569 = vector.extract_strided_slice %540 {offsets = [0, 0], sizes = [8, 128], strides = [1, 1]} : vector<128x128xf32> to vector<8x128xf32>
    %570 = vector.broadcast %564 : vector<8x1xf32> to vector<8x128xf32>
    %571 = arith.mulf %570, %569 : vector<8x128xf32>
    %572 = arith.addf %568, %571 : vector<8x128xf32>
    %573 = vector.extract_strided_slice %555 {offsets = [8, 0], sizes = [8, 1], strides = [1, 1]} : vector<128x1xf32> to vector<8x1xf32>
    %574 = arith.maximumf %560, %573 : vector<8x1xf32>
    %575 = arith.subf %560, %574 : vector<8x1xf32>
    %576 = math.exp %575 : vector<8x1xf32>
    %577 = arith.subf %573, %574 : vector<8x1xf32>
    %578 = math.exp %577 : vector<8x1xf32>
    %579 = arith.mulf %576, %566 : vector<8x1xf32>
    %580 = arith.addf %579, %578 : vector<8x1xf32>
    %581 = vector.broadcast %576 : vector<8x1xf32> to vector<8x128xf32>
    %582 = arith.mulf %581, %572 : vector<8x128xf32>
    %583 = vector.extract_strided_slice %540 {offsets = [8, 0], sizes = [8, 128], strides = [1, 1]} : vector<128x128xf32> to vector<8x128xf32>
    %584 = vector.broadcast %578 : vector<8x1xf32> to vector<8x128xf32>
    %585 = arith.mulf %584, %583 : vector<8x128xf32>
    %586 = arith.addf %582, %585 : vector<8x128xf32>
    %587 = vector.extract_strided_slice %555 {offsets = [16, 0], sizes = [8, 1], strides = [1, 1]} : vector<128x1xf32> to vector<8x1xf32>
    %588 = arith.maximumf %574, %587 : vector<8x1xf32>
    %589 = arith.subf %574, %588 : vector<8x1xf32>
    %590 = math.exp %589 : vector<8x1xf32>
    %591 = arith.subf %587, %588 : vector<8x1xf32>
    %592 = math.exp %591 : vector<8x1xf32>
    %593 = arith.mulf %590, %580 : vector<8x1xf32>
    %594 = arith.addf %593, %592 : vector<8x1xf32>
    %595 = vector.broadcast %590 : vector<8x1xf32> to vector<8x128xf32>
    %596 = arith.mulf %595, %586 : vector<8x128xf32>
    %597 = vector.extract_strided_slice %540 {offsets = [16, 0], sizes = [8, 128], strides = [1, 1]} : vector<128x128xf32> to vector<8x128xf32>
    %598 = vector.broadcast %592 : vector<8x1xf32> to vector<8x128xf32>
    %599 = arith.mulf %598, %597 : vector<8x128xf32>
    %600 = arith.addf %596, %599 : vector<8x128xf32>
    %601 = vector.extract_strided_slice %555 {offsets = [24, 0], sizes = [8, 1], strides = [1, 1]} : vector<128x1xf32> to vector<8x1xf32>
    %602 = arith.maximumf %588, %601 : vector<8x1xf32>
    %603 = arith.subf %588, %602 : vector<8x1xf32>
    %604 = math.exp %603 : vector<8x1xf32>
    %605 = arith.subf %601, %602 : vector<8x1xf32>
    %606 = math.exp %605 : vector<8x1xf32>
    %607 = arith.mulf %604, %594 : vector<8x1xf32>
    %608 = arith.addf %607, %606 : vector<8x1xf32>
    %609 = vector.broadcast %604 : vector<8x1xf32> to vector<8x128xf32>
    %610 = arith.mulf %609, %600 : vector<8x128xf32>
    %611 = vector.extract_strided_slice %540 {offsets = [24, 0], sizes = [8, 128], strides = [1, 1]} : vector<128x128xf32> to vector<8x128xf32>
    %612 = vector.broadcast %606 : vector<8x1xf32> to vector<8x128xf32>
    %613 = arith.mulf %612, %611 : vector<8x128xf32>
    %614 = arith.addf %610, %613 : vector<8x128xf32>
    %615 = vector.extract_strided_slice %555 {offsets = [32, 0], sizes = [8, 1], strides = [1, 1]} : vector<128x1xf32> to vector<8x1xf32>
    %616 = arith.maximumf %602, %615 : vector<8x1xf32>
    %617 = arith.subf %602, %616 : vector<8x1xf32>
    %618 = math.exp %617 : vector<8x1xf32>
    %619 = arith.subf %615, %616 : vector<8x1xf32>
    %620 = math.exp %619 : vector<8x1xf32>
    %621 = arith.mulf %618, %608 : vector<8x1xf32>
    %622 = arith.addf %621, %620 : vector<8x1xf32>
    %623 = vector.broadcast %618 : vector<8x1xf32> to vector<8x128xf32>
    %624 = arith.mulf %623, %614 : vector<8x128xf32>
    %625 = vector.extract_strided_slice %540 {offsets = [32, 0], sizes = [8, 128], strides = [1, 1]} : vector<128x128xf32> to vector<8x128xf32>
    %626 = vector.broadcast %620 : vector<8x1xf32> to vector<8x128xf32>
    %627 = arith.mulf %626, %625 : vector<8x128xf32>
    %628 = arith.addf %624, %627 : vector<8x128xf32>
    %629 = vector.extract_strided_slice %555 {offsets = [40, 0], sizes = [8, 1], strides = [1, 1]} : vector<128x1xf32> to vector<8x1xf32>
    %630 = arith.maximumf %616, %629 : vector<8x1xf32>
    %631 = arith.subf %616, %630 : vector<8x1xf32>
    %632 = math.exp %631 : vector<8x1xf32>
    %633 = arith.subf %629, %630 : vector<8x1xf32>
    %634 = math.exp %633 : vector<8x1xf32>
    %635 = arith.mulf %632, %622 : vector<8x1xf32>
    %636 = arith.addf %635, %634 : vector<8x1xf32>
    %637 = vector.broadcast %632 : vector<8x1xf32> to vector<8x128xf32>
    %638 = arith.mulf %637, %628 : vector<8x128xf32>
    %639 = vector.extract_strided_slice %540 {offsets = [40, 0], sizes = [8, 128], strides = [1, 1]} : vector<128x128xf32> to vector<8x128xf32>
    %640 = vector.broadcast %634 : vector<8x1xf32> to vector<8x128xf32>
    %641 = arith.mulf %640, %639 : vector<8x128xf32>
    %642 = arith.addf %638, %641 : vector<8x128xf32>
    %643 = vector.extract_strided_slice %555 {offsets = [48, 0], sizes = [8, 1], strides = [1, 1]} : vector<128x1xf32> to vector<8x1xf32>
    %644 = arith.maximumf %630, %643 : vector<8x1xf32>
    %645 = arith.subf %630, %644 : vector<8x1xf32>
    %646 = math.exp %645 : vector<8x1xf32>
    %647 = arith.subf %643, %644 : vector<8x1xf32>
    %648 = math.exp %647 : vector<8x1xf32>
    %649 = arith.mulf %646, %636 : vector<8x1xf32>
    %650 = arith.addf %649, %648 : vector<8x1xf32>
    %651 = vector.broadcast %646 : vector<8x1xf32> to vector<8x128xf32>
    %652 = arith.mulf %651, %642 : vector<8x128xf32>
    %653 = vector.extract_strided_slice %540 {offsets = [48, 0], sizes = [8, 128], strides = [1, 1]} : vector<128x128xf32> to vector<8x128xf32>
    %654 = vector.broadcast %648 : vector<8x1xf32> to vector<8x128xf32>
    %655 = arith.mulf %654, %653 : vector<8x128xf32>
    %656 = arith.addf %652, %655 : vector<8x128xf32>
    %657 = vector.extract_strided_slice %555 {offsets = [56, 0], sizes = [8, 1], strides = [1, 1]} : vector<128x1xf32> to vector<8x1xf32>
    %658 = arith.maximumf %644, %657 : vector<8x1xf32>
    %659 = arith.subf %644, %658 : vector<8x1xf32>
    %660 = math.exp %659 : vector<8x1xf32>
    %661 = arith.subf %657, %658 : vector<8x1xf32>
    %662 = math.exp %661 : vector<8x1xf32>
    %663 = arith.mulf %660, %650 : vector<8x1xf32>
    %664 = arith.addf %663, %662 : vector<8x1xf32>
    %665 = vector.broadcast %660 : vector<8x1xf32> to vector<8x128xf32>
    %666 = arith.mulf %665, %656 : vector<8x128xf32>
    %667 = vector.extract_strided_slice %540 {offsets = [56, 0], sizes = [8, 128], strides = [1, 1]} : vector<128x128xf32> to vector<8x128xf32>
    %668 = vector.broadcast %662 : vector<8x1xf32> to vector<8x128xf32>
    %669 = arith.mulf %668, %667 : vector<8x128xf32>
    %670 = arith.addf %666, %669 : vector<8x128xf32>
    %671 = vector.extract_strided_slice %555 {offsets = [64, 0], sizes = [8, 1], strides = [1, 1]} : vector<128x1xf32> to vector<8x1xf32>
    %672 = arith.maximumf %658, %671 : vector<8x1xf32>
    %673 = arith.subf %658, %672 : vector<8x1xf32>
    %674 = math.exp %673 : vector<8x1xf32>
    %675 = arith.subf %671, %672 : vector<8x1xf32>
    %676 = math.exp %675 : vector<8x1xf32>
    %677 = arith.mulf %674, %664 : vector<8x1xf32>
    %678 = arith.addf %677, %676 : vector<8x1xf32>
    %679 = vector.broadcast %674 : vector<8x1xf32> to vector<8x128xf32>
    %680 = arith.mulf %679, %670 : vector<8x128xf32>
    %681 = vector.extract_strided_slice %540 {offsets = [64, 0], sizes = [8, 128], strides = [1, 1]} : vector<128x128xf32> to vector<8x128xf32>
    %682 = vector.broadcast %676 : vector<8x1xf32> to vector<8x128xf32>
    %683 = arith.mulf %682, %681 : vector<8x128xf32>
    %684 = arith.addf %680, %683 : vector<8x128xf32>
    %685 = vector.extract_strided_slice %555 {offsets = [72, 0], sizes = [8, 1], strides = [1, 1]} : vector<128x1xf32> to vector<8x1xf32>
    %686 = arith.maximumf %672, %685 : vector<8x1xf32>
    %687 = arith.subf %672, %686 : vector<8x1xf32>
    %688 = math.exp %687 : vector<8x1xf32>
    %689 = arith.subf %685, %686 : vector<8x1xf32>
    %690 = math.exp %689 : vector<8x1xf32>
    %691 = arith.mulf %688, %678 : vector<8x1xf32>
    %692 = arith.addf %691, %690 : vector<8x1xf32>
    %693 = vector.broadcast %688 : vector<8x1xf32> to vector<8x128xf32>
    %694 = arith.mulf %693, %684 : vector<8x128xf32>
    %695 = vector.extract_strided_slice %540 {offsets = [72, 0], sizes = [8, 128], strides = [1, 1]} : vector<128x128xf32> to vector<8x128xf32>
    %696 = vector.broadcast %690 : vector<8x1xf32> to vector<8x128xf32>
    %697 = arith.mulf %696, %695 : vector<8x128xf32>
    %698 = arith.addf %694, %697 : vector<8x128xf32>
    %699 = vector.extract_strided_slice %555 {offsets = [80, 0], sizes = [8, 1], strides = [1, 1]} : vector<128x1xf32> to vector<8x1xf32>
    %700 = arith.maximumf %686, %699 : vector<8x1xf32>
    %701 = arith.subf %686, %700 : vector<8x1xf32>
    %702 = math.exp %701 : vector<8x1xf32>
    %703 = arith.subf %699, %700 : vector<8x1xf32>
    %704 = math.exp %703 : vector<8x1xf32>
    %705 = arith.mulf %702, %692 : vector<8x1xf32>
    %706 = arith.addf %705, %704 : vector<8x1xf32>
    %707 = vector.broadcast %702 : vector<8x1xf32> to vector<8x128xf32>
    %708 = arith.mulf %707, %698 : vector<8x128xf32>
    %709 = vector.extract_strided_slice %540 {offsets = [80, 0], sizes = [8, 128], strides = [1, 1]} : vector<128x128xf32> to vector<8x128xf32>
    %710 = vector.broadcast %704 : vector<8x1xf32> to vector<8x128xf32>
    %711 = arith.mulf %710, %709 : vector<8x128xf32>
    %712 = arith.addf %708, %711 : vector<8x128xf32>
    %713 = vector.extract_strided_slice %555 {offsets = [88, 0], sizes = [8, 1], strides = [1, 1]} : vector<128x1xf32> to vector<8x1xf32>
    %714 = arith.maximumf %700, %713 : vector<8x1xf32>
    %715 = arith.subf %700, %714 : vector<8x1xf32>
    %716 = math.exp %715 : vector<8x1xf32>
    %717 = arith.subf %713, %714 : vector<8x1xf32>
    %718 = math.exp %717 : vector<8x1xf32>
    %719 = arith.mulf %716, %706 : vector<8x1xf32>
    %720 = arith.addf %719, %718 : vector<8x1xf32>
    %721 = vector.broadcast %716 : vector<8x1xf32> to vector<8x128xf32>
    %722 = arith.mulf %721, %712 : vector<8x128xf32>
    %723 = vector.extract_strided_slice %540 {offsets = [88, 0], sizes = [8, 128], strides = [1, 1]} : vector<128x128xf32> to vector<8x128xf32>
    %724 = vector.broadcast %718 : vector<8x1xf32> to vector<8x128xf32>
    %725 = arith.mulf %724, %723 : vector<8x128xf32>
    %726 = arith.addf %722, %725 : vector<8x128xf32>
    %727 = vector.extract_strided_slice %555 {offsets = [96, 0], sizes = [8, 1], strides = [1, 1]} : vector<128x1xf32> to vector<8x1xf32>
    %728 = arith.maximumf %714, %727 : vector<8x1xf32>
    %729 = arith.subf %714, %728 : vector<8x1xf32>
    %730 = math.exp %729 : vector<8x1xf32>
    %731 = arith.subf %727, %728 : vector<8x1xf32>
    %732 = math.exp %731 : vector<8x1xf32>
    %733 = arith.mulf %730, %720 : vector<8x1xf32>
    %734 = arith.addf %733, %732 : vector<8x1xf32>
    %735 = vector.broadcast %730 : vector<8x1xf32> to vector<8x128xf32>
    %736 = arith.mulf %735, %726 : vector<8x128xf32>
    %737 = vector.extract_strided_slice %540 {offsets = [96, 0], sizes = [8, 128], strides = [1, 1]} : vector<128x128xf32> to vector<8x128xf32>
    %738 = vector.broadcast %732 : vector<8x1xf32> to vector<8x128xf32>
    %739 = arith.mulf %738, %737 : vector<8x128xf32>
    %740 = arith.addf %736, %739 : vector<8x128xf32>
    %741 = vector.extract_strided_slice %555 {offsets = [104, 0], sizes = [8, 1], strides = [1, 1]} : vector<128x1xf32> to vector<8x1xf32>
    %742 = arith.maximumf %728, %741 : vector<8x1xf32>
    %743 = arith.subf %728, %742 : vector<8x1xf32>
    %744 = math.exp %743 : vector<8x1xf32>
    %745 = arith.subf %741, %742 : vector<8x1xf32>
    %746 = math.exp %745 : vector<8x1xf32>
    %747 = arith.mulf %744, %734 : vector<8x1xf32>
    %748 = arith.addf %747, %746 : vector<8x1xf32>
    %749 = vector.broadcast %744 : vector<8x1xf32> to vector<8x128xf32>
    %750 = arith.mulf %749, %740 : vector<8x128xf32>
    %751 = vector.extract_strided_slice %540 {offsets = [104, 0], sizes = [8, 128], strides = [1, 1]} : vector<128x128xf32> to vector<8x128xf32>
    %752 = vector.broadcast %746 : vector<8x1xf32> to vector<8x128xf32>
    %753 = arith.mulf %752, %751 : vector<8x128xf32>
    %754 = arith.addf %750, %753 : vector<8x128xf32>
    %755 = vector.extract_strided_slice %555 {offsets = [112, 0], sizes = [8, 1], strides = [1, 1]} : vector<128x1xf32> to vector<8x1xf32>
    %756 = arith.maximumf %742, %755 : vector<8x1xf32>
    %757 = arith.subf %742, %756 : vector<8x1xf32>
    %758 = math.exp %757 : vector<8x1xf32>
    %759 = arith.subf %755, %756 : vector<8x1xf32>
    %760 = math.exp %759 : vector<8x1xf32>
    %761 = arith.mulf %758, %748 : vector<8x1xf32>
    %762 = arith.addf %761, %760 : vector<8x1xf32>
    %763 = vector.broadcast %758 : vector<8x1xf32> to vector<8x128xf32>
    %764 = arith.mulf %763, %754 : vector<8x128xf32>
    %765 = vector.extract_strided_slice %540 {offsets = [112, 0], sizes = [8, 128], strides = [1, 1]} : vector<128x128xf32> to vector<8x128xf32>
    %766 = vector.broadcast %760 : vector<8x1xf32> to vector<8x128xf32>
    %767 = arith.mulf %766, %765 : vector<8x128xf32>
    %768 = arith.addf %764, %767 : vector<8x128xf32>
    %769 = vector.extract_strided_slice %555 {offsets = [120, 0], sizes = [8, 1], strides = [1, 1]} : vector<128x1xf32> to vector<8x1xf32>
    %770 = arith.maximumf %756, %769 : vector<8x1xf32>
    %771 = arith.subf %756, %770 : vector<8x1xf32>
    %772 = math.exp %771 : vector<8x1xf32>
    %773 = arith.subf %769, %770 : vector<8x1xf32>
    %774 = math.exp %773 : vector<8x1xf32>
    %775 = arith.mulf %772, %762 : vector<8x1xf32>
    %776 = arith.addf %775, %774 : vector<8x1xf32>
    %777 = vector.broadcast %772 : vector<8x1xf32> to vector<8x128xf32>
    %778 = arith.mulf %777, %768 : vector<8x128xf32>
    %779 = vector.extract_strided_slice %540 {offsets = [120, 0], sizes = [8, 128], strides = [1, 1]} : vector<128x128xf32> to vector<8x128xf32>
    %780 = vector.broadcast %774 : vector<8x1xf32> to vector<8x128xf32>
    %781 = arith.mulf %780, %779 : vector<8x128xf32>
    %782 = arith.addf %778, %781 : vector<8x128xf32>
    %c0_130 = arith.constant 0 : index
    %c0_131 = arith.constant 0 : index
    %783 = vector.load %arg16[%c0_130, %c0_131] : memref<8x1xf32, #tpu.memory_space<vmem>>, vector<8x1xf32>
    tpu.vector_store %arg16[%c0_130, %c0_131], %770 {strides = array<i32>} : memref<8x1xf32, #tpu.memory_space<vmem>>, vector<8x1xf32>,
    %c0_132 = arith.constant 0 : index
    %c0_133 = arith.constant 0 : index
    %784 = vector.load %arg17[%c0_132, %c0_133] : memref<8x1xf32, #tpu.memory_space<vmem>>, vector<8x1xf32>
    tpu.vector_store %arg17[%c0_132, %c0_133], %776 {strides = array<i32>} : memref<8x1xf32, #tpu.memory_space<vmem>>, vector<8x1xf32>,
    %c0_134 = arith.constant 0 : index
    %c0_135 = arith.constant 0 : index
    %785 = vector.load %arg18[%c0_134, %c0_135] : memref<8x128xf32, #tpu.memory_space<vmem>>, vector<8x128xf32>
    tpu.vector_store %arg18[%c0_134, %c0_135], %782 {strides = array<i32>} : memref<8x128xf32, #tpu.memory_space<vmem>>, vector<8x128xf32>,
    %c1_i32_136 = arith.constant 1 : i32
    %786 = arith.cmpi eq, %arg1, %c1_i32_136 : i32
    %787 = arith.extui %786 : i1 to i32
    %c0_i32_137 = arith.constant 0 : i32
    %788 = arith.cmpi ne, %787, %c0_i32_137 : i32
    scf.if %788 {
      %c0_138 = arith.constant 0 : index
      %c0_139 = arith.constant 0 : index
      %789 = vector.load %arg18[%c0_138, %c0_139] : memref<8x128xf32, #tpu.memory_space<vmem>>, vector<8x128xf32>
      %c0_140 = arith.constant 0 : index
      %c0_141 = arith.constant 0 : index
      %790 = vector.load %arg17[%c0_140, %c0_141] : memref<8x1xf32, #tpu.memory_space<vmem>>, vector<8x1xf32>
      %791 = vector.broadcast %790 : vector<8x1xf32> to vector<8x128xf32>
      %792 = arith.divf %789, %791 : vector<8x128xf32>
      %793 = arith.mulf %792, %792 : vector<8x128xf32>
      %cst_142 = arith.constant dense<0.000000e+00> : vector<8xf32>
      %794 = vector.multi_reduction <add>, %793, %cst_142 [1] : vector<8x128xf32> to vector<8xf32>
      %795 = vector.shape_cast %794 : vector<8xf32> to vector<8x1xf32>
      %796 = math.sqrt %795 : vector<8x1xf32>
      %cst_143 = arith.constant 9.99999996E-13 : f32
      %797 = vector.broadcast %cst_143 : f32 to vector<8x1xf32>
      %798 = arith.maximumf %796, %797 : vector<8x1xf32>
      %799 = vector.broadcast %798 : vector<8x1xf32> to vector<8x128xf32>
      %800 = arith.divf %792, %799 : vector<8x128xf32>
      %c0_144 = arith.constant 0 : index
      %c0_145 = arith.constant 0 : index
      %801 = vector.load %arg13[%c0_144, %c0_145] : memref<8x128xf32, #tpu.memory_space<vmem>>, vector<8x128xf32>
      tpu.vector_store %arg13[%c0_144, %c0_145], %800 {strides = array<i32>} : memref<8x128xf32, #tpu.memory_space<vmem>>, vector<8x128xf32>,
    } else {
    }
    return
  }
  func.func @transform_0(%arg0: i32, %arg1: i32) -> (i32, i32, i32) {
    %c0_i32 = arith.constant 0 : i32
    %c0_i32_0 = arith.constant 0 : i32
    %c0_i32_1 = arith.constant 0 : i32
    return %c0_i32, %arg0, %c0_i32_0 : i32, i32, i32
  }
  func.func @transform_1(%arg0: i32, %arg1: i32) -> (i32, i32, i32) {
    %c0_i32 = arith.constant 0 : i32
    %c0_i32_0 = arith.constant 0 : i32
    %c0_i32_1 = arith.constant 0 : i32
    %c0_i32_2 = arith.constant 0 : i32
    return %c0_i32, %c0_i32_0, %c0_i32_1 : i32, i32, i32
  }
  func.func @transform_2(%arg0: i32, %arg1: i32) -> (i32, i32) {
    %c0_i32 = arith.constant 0 : i32
    %c0_i32_0 = arith.constant 0 : i32
    %c0_i32_1 = arith.constant 0 : i32
    return %c0_i32, %c0_i32_0 : i32, i32
  }
  func.func @transform_3(%arg0: i32, %arg1: i32) -> (i32, i32) {
    %c0_i32 = arith.constant 0 : i32
    %c0_i32_0 = arith.constant 0 : i32
    %c0_i32_1 = arith.constant 0 : i32
    return %c0_i32, %c0_i32_0 : i32, i32
  }
  func.func @transform_4(%arg0: i32, %arg1: i32) -> (i32, i32) {
    %c0_i32 = arith.constant 0 : i32
    %c0_i32_0 = arith.constant 0 : i32
    %c0_i32_1 = arith.constant 0 : i32
    return %c0_i32, %c0_i32_0 : i32, i32
  }
  func.func @transform_5(%arg0: i32, %arg1: i32) -> (i32, i32) {
    %c0_i32 = arith.constant 0 : i32
    %c0_i32_0 = arith.constant 0 : i32
    %c0_i32_1 = arith.constant 0 : i32
    return %c0_i32, %c0_i32_0 : i32, i32
  }
  func.func @transform_6(%arg0: i32, %arg1: i32) -> (i32, i32) {
    %c0_i32 = arith.constant 0 : i32
    %c0_i32_0 = arith.constant 0 : i32
    %c0_i32_1 = arith.constant 0 : i32
    return %c0_i32, %c0_i32_0 : i32, i32
  }
  func.func @transform_7(%arg0: i32, %arg1: i32) -> (i32, i32) {
    %c0_i32 = arith.constant 0 : i32
    %c0_i32_0 = arith.constant 0 : i32
    %c0_i32_1 = arith.constant 0 : i32
    return %c0_i32, %c0_i32_0 : i32, i32
  }
  func.func @transform_8(%arg0: i32, %arg1: i32) -> (i32, i32) {
    %c0_i32 = arith.constant 0 : i32
    %c0_i32_0 = arith.constant 0 : i32
    %c0_i32_1 = arith.constant 0 : i32
    return %c0_i32, %c0_i32_0 : i32, i32
  }
  func.func @transform_9(%arg0: i32, %arg1: i32) -> (i32, i32) {
    %c0_i32 = arith.constant 0 : i32
    %c0_i32_0 = arith.constant 0 : i32
    %c0_i32_1 = arith.constant 0 : i32
    return %c0_i32, %c0_i32_0 : i32, i32
  }
  func.func @transform_10(%arg0: i32, %arg1: i32) -> (i32, i32) {
    %c0_i32 = arith.constant 0 : i32
    %c0_i32_0 = arith.constant 0 : i32
    %c0_i32_1 = arith.constant 0 : i32
    return %c0_i32, %c0_i32_0 : i32, i32
  }
  func.func @transform_11(%arg0: i32, %arg1: i32) -> (i32, i32) {
    %c0_i32 = arith.constant 0 : i32
    %c0_i32_0 = arith.constant 0 : i32
    return %arg0, %c0_i32 : i32, i32
  }
}

</mosaic_0001>

<bundles_post_ra>
// kernel: tpu_custom_call.1
= control target key start
LH: loop header
LB: loop body
LE: loop exit
PB: predicated region body
PF: predicated region fallthrough
CT: control target
= control target key end

     0   :  { %s8925_s0 = inlined_call_operand.vmem [shape: f32[34,8,128], index: 0, kind: input, shape index: {}]   ;;  %s8926_s1 = inlined_call_operand.vmem [shape: bf16[3,128,64], index: 1, kind: input, shape index: {}]   ;;  %s8927_s2 = inlined_call_operand.vmem [shape: f32[1,64], index: 2, kind: input, shape index: {}]   ;;  %s8928_s3 = inlined_call_operand.hbm [shape: bf16[64,384], index: 3, kind: input, shape index: {}]   ;;  %s8929_s4 = inlined_call_operand.vmem [shape: f32[1,384], index: 4, kind: input, shape index: {}]   ;;  %s8930_s5 = inlined_call_operand.hbm [shape: f32[128,384], index: 5, kind: input, shape index: {}]   ;;  %s8931_s6 = inlined_call_operand.vmem [shape: f32[1,128], index: 6, kind: input, shape index: {}]   ;;  %s8932_s7 = inlined_call_operand.hbm [shape: bf16[128,128], index: 7, kind: input, shape index: {}]   ;;  %s8933_s8 = inlined_call_operand.vmem [shape: f32[1,128], index: 8, kind: input, shape index: {}]   ;;  %s8934_s9 = inlined_call_operand.vmem [shape: f32[1,128], index: 9, kind: input, shape index: {}]   ;;  %s8935_s10 = inlined_call_operand.<no memory space> [shape: f32[1,1], index: 10, kind: input, shape index: {}]   ;;  %s8936_s11 = inlined_call_operand.hbm [shape: f32[8,128], index: 11, kind: output, shape index: {}]  }
   0x1   :  { %16 = sst [smem:[#allocation7]] %s8935_s10 }
   0x2   :  { %17 = vsyncpa [#allocation9], 0 }
   0x3   :  { %18 = vsyncpa [#allocation12], 0 }
   0x4   :  { %19 = vsyncpa [#allocation10], 0  ;;  %s6786_s19 = smov 0   ;;  %s6788_s20 = smov 0  }
   0x5   :  { %s6790_s21 = smov 0  }
   0x6 LB: > { %s6707_s10 = smov [#allocation11]   ;;  %s4838_s23 = sadd.s32 4294967295, %s6705_s21   ;;  %s6705_s21 = sphi %s6790_s21, %s25_s21   ;;  %s6701_s20 = sphi %s6788_s20, %s9174_s20   ;;  %s6697_s19 = sphi %s6786_s19, %s9173_s19  }
   0x7   : > { %s345_s22 = sshll.u32 %s6707_s10, 4  ;;  %p4839_p0 = scmp.ge.s32.totalorder %s6705_s21, 1  ;;  %s346_s22 = int_to_ptr.vmem [resolvable:$true] %s345_s22 }
   0x8   : > { %p304_p1 = scmp.lt.s32.totalorder %s6705_s21, 3  ;;  %p6806_p2 = scmp.eq.s32.totalorder %s4838_s23, 0 }
   0x9   : > { %s34_s27 = sadd.s32 1, %s6701_s20  ;;  %s6708_s29 = smov [#allocation8]  }
   0xa   : > { %p6810_p3 = pnand %p4839_p0, %p304_p1  ;;  %p6823_p6 = scmp.ge.s32.totalorder %s34_s27, 2 }
   0xb   : > { %s329_s30 = sshll.u32 %s6708_s29, 4  ;;  %s6580_s12 = scalar_lea.vmem %s346_s22, 6144  ;;  %s330_s30 = int_to_ptr.vmem [resolvable:$true] %s329_s30 }
   0xc   : > { %p6099_p4 = pneg %p6810_p3  ;;  %p6581_p8 = scmp.ne.s32.totalorder %s346_s22, %s6580_s12 }
   0xd   : > { %p6588_p11 = scmp.lt.s32.totalorder %s346_s22, %s346_s22  ;;  %p6589_p12 = scmp.lt.s32.totalorder %s6580_s12, %s6580_s12 }
   0xe   : > { %p6818_p5 = pnand %p6806_p2, %p6099_p4 }
   0xf   : > { %p6590_p13 = por %p6589_p12, %p6588_p11 }
  0x10   : > { %p6571_p7 = pneg %p6818_p5 }
  0x12   : > { %p6583_p9 = pnand %p6581_p8, %p6571_p7 }
  0x14   : > { %p6584_p10 = pneg %p6583_p9 }
  0x16   : > { %p6591_p0 = pnand %p6590_p13, %p6584_p10 }
  0x18   : > { %6594 = shalt.err (!%p6591_p0)
}
  0x19   : > { %s6709_s13 = smov 384   ;;  %s6710_s14 = smov 24  }
  0x1a   : > { %6105 = dma.hbm_to_vmem [thread:$0]  (!%p6818_p5), %s8930_s5, 6144, %s346_s22, [#allocation12], %s6709_s13, %s6709_s13, %s6710_s14  }
  0x1b   : > { %s9176_s27 = smov (%p6823_p6, %s34_s27), 0  ;;  %s6606_s17 = scalar_lea.vmem %s330_s30, 1536 }
  0x1c   : > { %p6607_p1 = scmp.ne.s32.totalorder %s330_s30, %s6606_s17  ;;  %p6614_p9 = scmp.lt.s32.totalorder %s330_s30, %s330_s30 }
  0x1d   : > { %p6615_p10 = scmp.lt.s32.totalorder %s6606_s17, %s6606_s17 }
  0x1e   : > { %p6609_p4 = pnand %p6607_p1, %p6571_p7 }
  0x1f   : > { %p6616_p11 = por %p6615_p10, %p6614_p9 }
  0x20   : > { %p6610_p8 = pneg %p6609_p4 }
  0x22   : > { %p6617_p12 = pnand %p6616_p11, %p6610_p8 }
  0x24   : > { %6620 = shalt.err (!%p6617_p12)
}
  0x25   : > { %s6711_s18 = smov 192   ;;  %s6712_s10 = smov 12  }
  0x26   : > { %6102 = dma.hbm_to_vmem [thread:$0]  (!%p6818_p5), %s8928_s3, 1536, %s330_s30, [#allocation9], %s6711_s18, %s6711_s18, %s6712_s10  }
  0x27   : > { %s6713_s29 = smov [#allocation13]  }
  0x28   : > { %s361_s12 = sshll.u32 %s6713_s29, 4  ;;  %s362_s12 = int_to_ptr.vmem [resolvable:$true] %s361_s12 }
  0x29   : > { %s6632_s13 = scalar_lea.vmem %s362_s12, 1024  ;;  %p6640_p1 = scmp.lt.s32.totalorder %s362_s12, %s362_s12 }
  0x2a   : > { %p6633_p6 = scmp.ne.s32.totalorder %s362_s12, %s6632_s13  ;;  %p6641_p4 = scmp.lt.s32.totalorder %s6632_s13, %s6632_s13 }
  0x2c   : > { %p6635_p13 = pnand %p6633_p6, %p6571_p7  ;;  %p6642_p8 = por %p6641_p4, %p6640_p1 }
  0x2e   : > { %p6636_p0 = pneg %p6635_p13 }
  0x30   : > { %p6643_p9 = pnand %p6642_p8, %p6636_p0 }
  0x32   : > { %6646 = shalt.err (!%p6643_p9)
}
  0x33   : > { %s6714_s14 = smov 64   ;;  %s6715_s15 = smov 4  }
  0x34   : > { %6108 = dma.hbm_to_vmem [thread:$0]  (!%p6818_p5), %s8932_s7, 1024, %s362_s12, [#allocation12], %s6714_s14, %s6714_s14, %s6715_s15  }
  0x35   : > { %386 = sbr.rel (%p6810_p3) target bundleno = 5214 (0x145e), region = 64 }
  0x3a   : > { %6684 = dma.done.wait (%p6806_p2), [#allocation9], 1536  }
  0x3b   : > { %6686 = vsyncadd (%p6806_p2), [#allocation9], 4294965760 }
  0x3c   : > { %6688 = dma.done.wait (%p6806_p2), [#allocation12], 7168  }
  0x3d   : > { %6690 = vsyncadd (%p6806_p2), [#allocation12], 4294960128  ;;  %p4848_p7 = scmp.ne.s32.totalorder %s6697_s19, 0 }
  0x3f   : > { %436 = sbr.rel (%p4848_p7) target bundleno = 71 (0x47), region = 80 }
  0x44   : > { %vm438_vm0 = vcmask 7168   ;;  %v6716_v0 = vmov 0.0   ;;  %v6717_v1 = vmov -inf  }
  0x45   : > { %437 = vst [vmem:[#allocation2] sm:$0xff] %v6716_v0  ;;  %441 = vst [vmem:[#allocation6] sm:$0xff] %v6716_v0 }
  0x46   : > { %439 = vst.msk [vmem:[#allocation4] sm:$0xff] %vm438_vm0, %v6717_v1  ;;  %440 = vst.msk [vmem:[#allocation5] sm:$0xff] %vm438_vm0, %v6716_v0 }
  0x47 PF: > { %v6159_v2 = vld [vmem:[%s8926_s1 + $0x78] sm:$0xff]   ;;  %v6160_v3 = vld [vmem:[%s8926_s1 + $0x70] sm:$0xff]   ;;  %s5020_s24 = sshll.u32 %s6697_s19, 7  ;;  %v6161_v4 = vld [vmem:[%s8926_s1 + $0x68] sm:$0xff]   ;;  %vm1152_vm1 = vcmask 523264   ;;  %vm6720_vm2 = vmmov 0  }
  0x48   : > { %5371 = vmatprep.subr.bf16.mxu1 %v6159_v2  ;;  %s6881_s12 = scalar_lea.vmem %s8925_s0, %s5020_s24  ;;  %v6162_v5 = vld [vmem:[%s8926_s1 + $0x60] sm:$0xff]   ;;  %v6167_v6 = vld [vmem:[%s8926_s1 + $0xb8] sm:$0xff]   ;;  %v6169_v13 = vld [vmem:[%s8926_s1 + $0xb0] sm:$0xff]   ;;  %s4331_s29 = sld [smem:[#allocation7]]  ;;  %vm4704_vm3 = vcmask 7168  }
  0x49   : > { %5372 = vmatpush3.bf16.msra.mxu1 %v6159_v2  ;;  %v6890_v7 = vld [vmem:[%s6881_s12 + $0x8] sm:$0xff]  ;;  %v4854_v8 = vld [vmem:[%s6881_s12 + $0x10] sm:$0xff]  ;;  %v4855_v9 = vld [vmem:[%s6881_s12 + $0x18] sm:$0xff]  ;;  %5435 = vmatprep.subr.bf16.mxu0 %v6167_v6  ;;  %p5015_p2 = scmp.ne.s32.totalorder %s6697_s19, 1 }
  0x4a   : > { %5373 = vmatprep.subr.bf16.mxu1 %v6160_v3  ;;  %v504_v10 = vpack.c.bf16 %v4854_v8, %v6890_v7  ;;  %v6895_v11 = vpack.c.bf16 %v4855_v9, %v4854_v8  ;;  %v6163_v12 = vld [vmem:[%s8926_s1 + $0x58] sm:$0xff]   ;;  %5436 = vmatpush3.bf16.msra.mxu0 %v6167_v6  ;;  %v6171_v14 = vld [vmem:[%s8926_s1 + $0xa8] sm:$0xff]   ;;  %v6164_v15 = vld [vmem:[%s8926_s1 + $0x50] sm:$0xff]  }
  0x4b   : > { %5437 = vmatprep.subr.bf16.mxu0 %v6169_v13  ;;  %v6173_v16 = vld [vmem:[%s8926_s1 + $0xa0] sm:$0xff]   ;;  %v6165_v17 = vld [vmem:[%s8926_s1 + $0x48] sm:$0xff]   ;;  %v6175_v18 = vld [vmem:[%s8926_s1 + $0x98] sm:$0xff]  }
  0x4c   : > { %5387 = vmatprep.mubr.bf16.mxu1 %v504_v10  ;;  %5451 = vmatprep.mubr.bf16.mxu0 %v6895_v11  ;;  %v6166_v19 = vld [vmem:[%s8926_s1 + $0x40] sm:$0xff]   ;;  %v6177_v20 = vld [vmem:[%s8926_s1 + $0x90] sm:$0xff]   ;;  %v6168_v22 = vld [vmem:[%s8926_s1 + $0x38] sm:$0xff]  }
  0x4d   : > { %5374 = vmatpush3.bf16.msra.mxu1 %v6160_v3  ;;  %v4856_v21 = vld [vmem:[%s6881_s12 + $0x20] sm:$0xff]  ;;  %v4857_v23 = vld [vmem:[%s6881_s12 + $0x28] sm:$0xff]  ;;  %v4858_v24 = vld [vmem:[%s6881_s12 + $0x30] sm:$0xff] }
  0x4e   : > { %5375 = vmatprep.subr.bf16.mxu1 %v6161_v4  ;;  %5438 = vmatpush3.bf16.msra.mxu0 %v6169_v13  ;;  %v6179_v25 = vld [vmem:[%s8926_s1 + $0x88] sm:$0xff]   ;;  %v505_v26 = vpack.c.bf16 %v4856_v21, %v4855_v9  ;;  %v6170_v27 = vld [vmem:[%s8926_s1 + $0x30] sm:$0xff]   ;;  %v506_v28 = vpack.c.bf16 %v4858_v24, %v4857_v23  ;;  %v6181_v29 = vld [vmem:[%s8926_s1 + $0x80] sm:$0xff]   ;;  %v839_v38 = vpack.c.bf16 %v4857_v23, %v4856_v21  ;;  %v6718_v9 = vmov 0  }
  0x4f   : > { %5439 = vmatprep.subr.bf16.mxu0 %v6171_v14  ;;  %v4859_v30 = vld [vmem:[%s6881_s12 + $0x38] sm:$0xff]  ;;  %v4860_v31 = vld [vmem:[%s6881_s12 + $0x40] sm:$0xff]  ;;  %v6172_v32 = vld [vmem:[%s8926_s1 + $0x28] sm:$0xff]   ;;  %6158 = vset.pattern.permute.xlu1 %v6718_v9 }
  0x50   : > { %v4861_v33 = vld [vmem:[%s6881_s12 + $0x48] sm:$0xff]  ;;  %v4862_v34 = vld [vmem:[%s6881_s12 + $0x50] sm:$0xff]  ;;  %v507_v35 = vpack.c.bf16 %v4860_v31, %v4859_v30  ;;  %v6174_v37 = vld [vmem:[%s8926_s1 + $0x20] sm:$0xff]   ;;  %v840_v39 = vpack.c.bf16 %v4859_v30, %v4858_v24  ;;  %6157 = vset.pattern.permute.xlu0 %v6718_v9 }
  0x51   : > { %5376 = vmatpush3.bf16.msra.mxu1 %v6161_v4  ;;  %v508_v36 = vpack.c.bf16 %v4862_v34, %v4861_v33  ;;  %v4863_v40 = vld [vmem:[%s6881_s12 + $0x58] sm:$0xff]  ;;  %v4864_v41 = vld [vmem:[%s6881_s12 + $0x60] sm:$0xff]  ;;  %v4865_v43 = vld [vmem:[%s6881_s12 + $0x68] sm:$0xff]  ;;  %v841_v48 = vpack.c.bf16 %v4861_v33, %v4860_v31 }
  0x52   : > { %5377 = vmatprep.subr.bf16.mxu1 %v6162_v5  ;;  %5440 = vmatpush3.bf16.msra.mxu0 %v6171_v14  ;;  %v6176_v42 = vld [vmem:[%s8926_s1 + $0x18] sm:$0xff]   ;;  %v4866_v44 = vld [vmem:[%s6881_s12 + $0x70] sm:$0xff]  ;;  %v509_v45 = vpack.c.bf16 %v4864_v41, %v4863_v40  ;;  %v842_v49 = vpack.c.bf16 %v4863_v40, %v4862_v34  ;;  %v4868_v51 = vld [vmem:[%s6881_s12 + $0x80] sm:$0xff]  ;;  %v843_v57 = vpack.c.bf16 %v4865_v43, %v4864_v41 }
  0x53   : > { %5441 = vmatprep.subr.bf16.mxu0 %v6173_v16  ;;  %v510_v46 = vpack.c.bf16 %v4866_v44, %v4865_v43  ;;  %v6178_v47 = vld [vmem:[%s8926_s1 + $0x10] sm:$0xff]   ;;  %v4867_v50 = vld [vmem:[%s6881_s12 + $0x78] sm:$0xff]  ;;  %v6180_v52 = vld [vmem:[%s8926_s1 + $0x8] sm:$0xff]  }
  0x54   : > { %v445_v53 = vld [vmem:[%s6881_s12] sm:$0xff]  ;;  %v511_v54 = vpack.c.bf16 %v4868_v51, %v4867_v50  ;;  %v844_v58 = vpack.c.bf16 %v4867_v50, %v4866_v44  ;;  %v4918_v59 = vld [vmem:[%s6881_s12 + $0x88] sm:$0xff]  ;;  %v6186_v63 = vld [vmem:[#allocation8 + $0x50] ss:$12 sps:$4 sm:$0xff]  }
  0x55   : > { %5378 = vmatpush3.bf16.msra.mxu1 %v6162_v5  ;;  %v461_v55 = vpack.c.bf16 %v6890_v7, %v445_v53  ;;  %v6182_v56 = vld [vmem:[%s8926_s1] sm:$0xff]   ;;  %v845_v60 = vpack.c.bf16 %v4918_v59, %v4868_v51  ;;  %v6183_v61 = vld [vmem:[#allocation8 + $0x48] ss:$12 sps:$4 sm:$0xff]   ;;  %v6185_v62 = vld [vmem:[#allocation8 + $0x4c] ss:$12 sps:$4 sm:$0xff]  }
  0x56   : > { %5379 = vmatprep.subr.bf16.mxu1 %v6163_v12  ;;  %5442 = vmatpush3.bf16.msra.mxu0 %v6173_v16  ;;  %v6187_v0 = vld [vmem:[#allocation8 + $0x30] ss:$12 sps:$4 sm:$0xff]   ;;  %v6189_v1 = vld [vmem:[#allocation8 + $0x34] ss:$12 sps:$4 sm:$0xff]   ;;  %v6190_v2 = vld [vmem:[#allocation8 + $0x38] ss:$12 sps:$4 sm:$0xff]  }
  0x57   : > { %5443 = vmatprep.subr.bf16.mxu0 %v6175_v18  ;;  %v6191_v3 = vld [vmem:[#allocation8 + $0x18] ss:$12 sps:$4 sm:$0xff]   ;;  %v6193_v4 = vld [vmem:[#allocation8 + $0x1c] ss:$12 sps:$4 sm:$0xff]   ;;  %v6194_v5 = vld [vmem:[#allocation8 + $0x20] ss:$12 sps:$4 sm:$0xff]  }
  0x58   : > { %v6197_v6 = vld [vmem:[#allocation8 + $0x4] ss:$12 sps:$4 sm:$0xff]   ;;  %v6195_v7 = vld [vmem:[#allocation8] ss:$12 sps:$4 sm:$0xff]   ;;  %v6198_v8 = vld [vmem:[#allocation8 + $0x8] ss:$12 sps:$4 sm:$0xff]  }
  0x59   : > { %5380 = vmatpush3.bf16.msra.mxu1 %v6163_v12  ;;  %v6974_v10 = vld [vmem:[#allocation11 + $0x170] sm:$0xff]  ;;  %v7000_v50 = vld [vmem:[%s8927_s2] ss:$0 sm:$0xff] }
  0x5a   : > { %5381 = vmatprep.subr.bf16.mxu1 %v6164_v15  ;;  %5444 = vmatpush3.bf16.msra.mxu0 %v6175_v18 }
  0x5b   : > { %5445 = vmatprep.subr.bf16.mxu0 %v6177_v20 }
  0x5d   : > { %5382 = vmatpush3.bf16.msra.mxu1 %v6164_v15 }
  0x5e   : > { %5383 = vmatprep.subr.bf16.mxu1 %v6165_v17  ;;  %5446 = vmatpush3.bf16.msra.mxu0 %v6177_v20 }
  0x5f   : > { %5447 = vmatprep.subr.bf16.mxu0 %v6179_v25 }
  0x61   : > { %5384 = vmatpush3.bf16.msra.mxu1 %v6165_v17 }
  0x62   : > { %5385 = vmatprep.subr.bf16.mxu1 %v6166_v19  ;;  %5448 = vmatpush3.bf16.msra.mxu0 %v6179_v25 }
  0x63   : > { %5449 = vmatprep.subr.bf16.mxu0 %v6181_v29 }
  0x65   : > { %5386 = vmatpush3.bf16.msra.mxu1 %v6166_v19 }
  0x66   : > { %5403 = vmatprep.subr.bf16.mxu1 %v6168_v22  ;;  %5450 = vmatpush3.bf16.msra.mxu0 %v6181_v29 }
  0x67   : > { %5467 = vmatprep.subr.bf16.mxu0 %v6186_v63 }
  0x68   : > { %5388 = vmatmul.mubr.bf16.vlgmr.msra.gmra.mxu1 %v505_v26 }
  0x69   : > { %5404 = vmatpush3.bf16.msra.mxu1 %v6168_v22  ;;  %5391 = vmatprep.mubr.bf16.mxu1 %v506_v28 }
  0x6a   : > { %5405 = vmatprep.subr.bf16.mxu1 %v6170_v27  ;;  %5452 = vmatmul.mubr.bf16.vlgmr.msra.gmra.mxu0 %v839_v38 }
  0x6b   : > { %5455 = vmatprep.mubr.bf16.mxu0 %v840_v39  ;;  %5468 = vmatpush3.bf16.msra.mxu0 %v6186_v63  ;;  %v7006_v63 = vld [vmem:[#allocation11 + $0x178] sm:$0xff] }
  0x6c   : > { %5469 = vmatprep.subr.bf16.mxu0 %v6190_v2 }
  0x6d   : > { %5406 = vmatpush3.bf16.msra.mxu1 %v6170_v27 }
  0x6e   : > { %5407 = vmatprep.subr.bf16.mxu1 %v6172_v32 }
  0x6f   : > { %5470 = vmatpush3.bf16.msra.mxu0 %v6190_v2  ;;  %v7008_v2 = vld [vmem:[#allocation11 + $0x168] sm:$0xff] }
  0x70   : > { %5392 = vmatmul.mubr.bf16.gmra.mxu1 %v507_v35  ;;  %5471 = vmatprep.subr.bf16.mxu0 %v6194_v5 }
  0x71   : > { %5408 = vmatpush3.bf16.msra.mxu1 %v6172_v32  ;;  %5395 = vmatprep.mubr.bf16.mxu1 %v508_v36 }
  0x72   : > { %5409 = vmatprep.subr.bf16.mxu1 %v6174_v37  ;;  %5456 = vmatmul.mubr.bf16.gmra.mxu0 %v841_v48 }
  0x73   : > { %5459 = vmatprep.mubr.bf16.mxu0 %v842_v49  ;;  %5472 = vmatpush3.bf16.msra.mxu0 %v6194_v5 }
  0x74   : > { %5473 = vmatprep.subr.bf16.mxu0 %v6198_v8 }
  0x75   : > { %5410 = vmatpush3.bf16.msra.mxu1 %v6174_v37 }
  0x76   : > { %5411 = vmatprep.subr.bf16.mxu1 %v6176_v42 }
  0x77   : > { %5474 = vmatpush3.bf16.msra.mxu0 %v6198_v8 }
  0x78   : > { %5396 = vmatmul.mubr.bf16.gmra.mxu1 %v509_v45  ;;  %1437 = vmatprep.subr.mxu0 %v6974_v10 }
  0x79   : > { %5412 = vmatpush3.bf16.msra.mxu1 %v6176_v42  ;;  %5399 = vmatprep.mubr.bf16.mxu1 %v510_v46 }
  0x7a   : > { %5413 = vmatprep.subr.bf16.mxu1 %v6178_v47  ;;  %5460 = vmatmul.mubr.bf16.gmra.mxu0 %v843_v57 }
  0x7b   : > { %5463 = vmatprep.mubr.bf16.mxu0 %v844_v58 }
  0x7d   : > { %5414 = vmatpush3.bf16.msra.mxu1 %v6178_v47 }
  0x7e   : > { %5415 = vmatprep.subr.bf16.mxu1 %v6180_v52 }
  0x80   : > { %5400 = vmatmul.mubr.bf16.gmra.mxu1 %v511_v54 }
  0x81   : > { %5416 = vmatpush3.bf16.msra.mxu1 %v6180_v52  ;;  %5419 = vmatprep.mubr.bf16.mxu1 %v461_v55 }
  0x82   : > { %5417 = vmatprep.subr.bf16.mxu1 %v6182_v56  ;;  %5464 = vmatmul.mubr.bf16.gmra.mxu0 %v845_v60 }
  0x85   : > { %5418 = vmatpush3.bf16.msra.mxu1 %v6182_v56 }
  0x86   : > { %1185 = vmatprep.subr.bf16.mxu1 %v6185_v62 }
  0x88   : > { %5420 = vmatmul.mubr.bf16.vlgmr.msra.gmra.mxu1 %v6895_v11  ;;  %v8937_v11 = vmov 0.0  }
  0x89   : > { %5423 = vmatprep.mubr.bf16.mxu1 %v839_v38  ;;  %1186 = vmatpush1.bf16.msra.mxu1 %v6183_v61 }
  0x8a   : > { %1187 = vmatprep.subr.bf16.mxu1 %v6189_v1 }
  0x8d   : > { %1188 = vmatpush1.bf16.msra.mxu1 %v6187_v0 }
  0x8e   : > { %1189 = vmatprep.subr.bf16.mxu1 %v6193_v4 }
  0x90   : > { %5424 = vmatmul.mubr.bf16.gmra.mxu1 %v840_v39 }
  0x91   : > { %5427 = vmatprep.mubr.bf16.mxu1 %v841_v48  ;;  %1190 = vmatpush1.bf16.msra.mxu1 %v6191_v3 }
  0x92   : > { %1191 = vmatprep.subr.bf16.mxu1 %v6197_v6  ;;  %v7012_v6 = vld [vmem:[#allocation11 + $0x158] sm:$0xff] }
  0x95   : > { %1192 = vmatpush1.bf16.msra.mxu1 %v6195_v7  ;;  %v7014_v7 = vld [vmem:[#allocation11 + $0x160] sm:$0xff] }
  0x96   : > { %5491 = vmatprep.subr.mxu1 %v8937_v11 }
  0x98   : > { %5428 = vmatmul.mubr.bf16.gmra.mxu1 %v842_v49 }
  0x99   : > { %5431 = vmatprep.mubr.bf16.mxu1 %v843_v57 }
  0xa0   : > { %5432 = vmatmul.mubr.bf16.gmra.mxu1 %v844_v58 }
  0xa1   : > { %1209 = vmatprep.mubr.bf16.mxu1 %v6718_v9 }
 0x128   : > { %v5389_v12 = vpop.f32.mrf.mxu1 }
 0x12a   : > { %v611_v13 = vpop.f32.mrf.mxu1  ;;  %v5453_v18 = vpop.f32.mrf.mxu0 }
 0x12c   : > { %v5390_v14 = vpop.f32.mrf.mxu1  ;;  %v945_v20 = vpop.f32.mrf.mxu0 }
 0x12e   : > { %v614_v15 = vpop.f32.mrf.mxu1  ;;  %v5454_v22 = vpop.f32.mrf.mxu0 }
 0x130   : > { %v5393_v16 = vpop.f32.mrf.mxu1  ;;  %v948_v24 = vpop.f32.mrf.mxu0 }
 0x132   : > { %v627_v17 = vpop.f32.mrf.mxu1  ;;  %v5457_v27 = vpop.f32.mrf.mxu0 }
 0x134   : > { %v5394_v19 = vpop.f32.mrf.mxu1  ;;  %v961_v30 = vpop.f32.mrf.mxu0 }
 0x136   : > { %v630_v21 = vpop.f32.mrf.mxu1  ;;  %v5458_v33 = vpop.f32.mrf.mxu0 }
 0x138   : > { %v6979_v23 = vpop.f32.mrf.mxu1  ;;  %v964_v36 = vpop.f32.mrf.mxu0 }
 0x13a   : > { %v6981_v25 = vpop.f32.mrf.mxu1  ;;  %v6995_v41 = vpop.f32.mrf.mxu0 }
 0x13c   : > { %v6983_v26 = vpop.f32.mrf.mxu1  ;;  %v977_v49 = vpop.f32.mrf.mxu0 }
 0x13e   : > { %v6985_v28 = vpop.f32.mrf.mxu1  ;;  %v5462_v60 = vpop.f32.mrf.mxu0 }
 0x140   : > { %v6987_v29 = vpop.f32.mrf.mxu1 }
 0x142   : > { %v6989_v31 = vpop.f32.mrf.mxu1 }
 0x144   : > { %v6991_v32 = vpop.f32.mrf.mxu1 }
 0x146   : > { %v6993_v34 = vpop.f32.mrf.mxu1 }
 0x148   : > { %v5421_v35 = vpop.f32.mrf.mxu1 }
 0x149   : > { %v765_v39 = vadd.f32 %v5421_v35, %v5389_v12 }
 0x14a   : > { %v756_v37 = vpop.f32.mrf.mxu1 }
 0x14b   : > { %v757_v38 = vadd.f32 %v756_v37, %v611_v13  ;;  %v1010_v47 = vadd.f32 %v5453_v18, %v765_v39  ;;  %v980_v13 = vpop.f32.mrf.mxu0 }
 0x14c   : > { %v5422_v40 = vpop.f32.mrf.mxu1 }
 0x14d   : > { %v768_v42 = vadd.f32 %v5422_v40, %v5390_v14  ;;  %v1008_v44 = vadd.f32 %v945_v20, %v757_v38  ;;  %v1033_v57 = vadd.f32 %v7000_v50, %v1010_v47  ;;  %v7018_v14 = vld [vmem:[#allocation11 + $0x150] sm:$0xff]  ;;  %v7038_v35 = vpop.f32.mrf.mxu0  ;;  %v7045_v38 = vld [vmem:[#allocation11 + $0x148] sm:$0xff] }
 0x14e   : > { %v759_v43 = vpop.f32.mrf.mxu1 }
 0x14f   : > { %v1011_v45 = vadd.f32 %v5454_v22, %v768_v42  ;;  %v760_v46 = vadd.f32 %v759_v43, %v614_v15  ;;  %v1031_v54 = vadd.f32 %v7000_v50, %v1008_v44 }
 0x150   : > { %v5425_v48 = vpop.f32.mrf.mxu1 }
 0x151   : > { %v1009_v51 = vadd.f32 %v948_v24, %v760_v46  ;;  %v1034_v52 = vadd.f32 %v7000_v50, %v1011_v45  ;;  %v781_v58 = vadd.f32 %v5425_v48, %v5393_v16  ;;  %v7021_v16 = vld [vmem:[#allocation11 + $0x140] sm:$0xff]  ;;  %v7033_v24 = vld [vmem:[#allocation11 + $0x128] sm:$0xff]  ;;  %v993_v46 = vpop.f32.mrf.mxu0  ;;  %v7061_v48 = vld [vmem:[#allocation11 + $0xf8] sm:$0xff] }
 0x152   : > { %v772_v53 = vpop.f32.mrf.mxu1 }
 0x153   : > { %v1032_v55 = vadd.f32 %v7000_v50, %v1009_v51  ;;  %v773_v56 = vadd.f32 %v772_v53, %v627_v17  ;;  %v1048_v0 = vpack.c.bf16 %v1034_v52, %v1033_v57  ;;  %v1014_v8 = vadd.f32 %v5457_v27, %v781_v58  ;;  %v7068_v51 = vld [vmem:[#allocation11 + $0x130] sm:$0xff]  ;;  %v7072_v53 = vld [vmem:[#allocation11 + $0xe0] sm:$0xff]  ;;  %v7079_v57 = vld [vmem:[#allocation11 + $0xd8] sm:$0xff] }
 0x154   : > { %v5426_v59 = vpop.f32.mrf.mxu1 }
 0x155   : > { %v1047_v61 = vpack.c.bf16 %v1032_v55, %v1031_v54  ;;  %v784_v62 = vadd.f32 %v5426_v59, %v5394_v19  ;;  %v1012_v3 = vadd.f32 %v961_v30, %v773_v56  ;;  %v7026_v19 = vld [vmem:[#allocation11 + $0x138] sm:$0xff]  ;;  %v1037_v27 = vadd.f32 %v7000_v50, %v1014_v8  ;;  %v5466_v59 = vpop.f32.mrf.mxu0 }
 0x156   : > { %v775_v1 = vpop.f32.mrf.mxu1 }
 0x157   : > { %v1015_v4 = vadd.f32 %v5458_v33, %v784_v62  ;;  %v776_v5 = vadd.f32 %v775_v1, %v630_v21  ;;  %4956 = vmatmul.mubr.msk.bf16.vlgmr.msra.gmra.mxu1 %vm1152_vm1, %v1047_v61  ;;  %5475 = vmatprep.mubr.msk.bf16.mxu0 %vm1152_vm1, %v1047_v61  ;;  %v1035_v20 = vadd.f32 %v7000_v50, %v1012_v3  ;;  %v7084_v61 = vld [vmem:[#allocation11 + $0xc8] sm:$0xff]  ;;  %v7091_v1 = vld [vmem:[#allocation11 + $0xc0] sm:$0xff] }
 0x158   : > { %v5429_v12 = vpop.f32.mrf.mxu1  ;;  %5476 = vmatmul.mubr.msk.bf16.vlgmr.msra.gmra.mxu0 %vm1152_vm1, %v1048_v0  ;;  %5492 = vmatpush3.msra.mxu1 %v7006_v63 }
 0x159   : > { %v1013_v15 = vadd.f32 %v964_v36, %v776_v5  ;;  %1438 = vmatpush1.msra.mxu0 %v7008_v2  ;;  %5493 = vmatprep.subr.mxu1 %v8937_v11  ;;  %v1038_v17 = vadd.f32 %v7000_v50, %v1015_v4  ;;  %v797_v30 = vadd.f32 %v5429_v12, %v6979_v23  ;;  %v7050_v23 = vld [vmem:[#allocation11 + $0x110] sm:$0xff] }
 0x15a   : > { %v788_v18 = vpop.f32.mrf.mxu1  ;;  %1439 = vmatprep.subr.mxu0 %v7012_v6  ;;  %5494 = vmatpush3.msra.mxu1 %v7014_v7  ;;  %v7097_v5 = vld [vmem:[#allocation11 + $0xb0] sm:$0xff] }
 0x15b   : > { %v1036_v21 = vadd.f32 %v7000_v50, %v1013_v15  ;;  %v789_v22 = vadd.f32 %v788_v18, %v6981_v25  ;;  %1440 = vmatpush1.msra.mxu0 %v7018_v14  ;;  %1219 = vmatprep.mubr.bf16.mxu1 %v6718_v9  ;;  %v7043_v25 = vld [vmem:[#allocation11 + $0x120] sm:$0xff]  ;;  %v7047_v39 = vpack.c.bf16 %v1038_v17, %v1037_v27  ;;  %v7107_v15 = vld [vmem:[#allocation11 + $0x118] sm:$0xff] }
 0x15c   : > { %v5430_v33 = vpop.f32.mrf.mxu1  ;;  %1441 = vmatprep.subr.mxu0 %v7021_v16  ;;  %5495 = vmatprep.subr.mxu1 %v8937_v11  ;;  %v1018_v45 = vadd.f32 %v6995_v41, %v797_v30  ;;  %v7109_v17 = vld [vmem:[#allocation11 + $0x98] sm:$0xff] }
 0x15d   : > { %v1049_v36 = vpack.c.bf16 %v1036_v21, %v1035_v20  ;;  %v800_v37 = vadd.f32 %v5430_v33, %v6983_v26  ;;  %1442 = vmatpush1.msra.mxu0 %v7026_v19  ;;  %v1016_v42 = vadd.f32 %v977_v49, %v789_v22  ;;  %v7056_v26 = vld [vmem:[#allocation11 + $0x108] sm:$0xff]  ;;  %5496 = vmatpush3.msra.mxu1 %v7045_v38  ;;  %v7119_v21 = vld [vmem:[#allocation11 + $0x80] sm:$0xff] }
 0x15e   : > { %v791_v40 = vpop.f32.mrf.mxu1  ;;  %1443 = vmatprep.subr.mxu0 %v7033_v24  ;;  %5497 = vmatprep.subr.mxu1 %v8937_v11  ;;  %v1041_v58 = vadd.f32 %v7000_v50, %v1018_v45  ;;  %v7121_v22 = vld [vmem:[#allocation11 + $0x100] sm:$0xff]  ;;  %v7155_v45 = vld [vmem:[#allocation11 + $0xe8] sm:$0xff] }
 0x15f   : > { %v1019_v43 = vadd.f32 %v5462_v60, %v800_v37  ;;  %v792_v44 = vadd.f32 %v791_v40, %v6985_v28  ;;  %4957 = vmatmul.mubr.msk.bf16.gmra.mxu1 %vm1152_vm1, %v1048_v0  ;;  %5479 = vmatprep.mubr.msk.bf16.mxu0 %vm1152_vm1, %v1049_v36  ;;  %v7066_v28 = vld [vmem:[#allocation11 + $0xf0] sm:$0xff]  ;;  %v1039_v54 = vadd.f32 %v7000_v50, %v1016_v42  ;;  %v7139_v42 = vld [vmem:[#allocation11 + $0x60] sm:$0xff] }
 0x160   : > { %1444 = vmatpush1.msra.mxu0 %v7043_v25  ;;  %v5433_v47 = vpop.f32.mrf.mxu1  ;;  %5498 = vmatpush3.msra.mxu1 %v7068_v51 }
 0x161   : > { %v1017_v49 = vadd.f32 %v980_v13, %v792_v44  ;;  %5480 = vmatmul.mubr.msk.bf16.gmra.mxu0 %vm1152_vm1, %v7047_v39  ;;  %1445 = vmatprep.subr.mxu0 %v7050_v23  ;;  %v1042_v41 = vadd.f32 %v7000_v50, %v1019_v43  ;;  %v813_v0 = vadd.f32 %v5433_v47, %v6987_v29  ;;  %v7102_v29 = vld [vmem:[#allocation11 + $0xa8] sm:$0xff]  ;;  %v7143_v43 = vld [vmem:[#allocation11 + $0x50] sm:$0xff] }
 0x162   : > { %1446 = vmatpush1.msra.mxu0 %v7056_v26  ;;  %v804_v52 = vpop.f32.mrf.mxu1  ;;  %1229 = vmatprep.mubr.bf16.mxu1 %v6718_v9  ;;  %v7162_v47 = vld [vmem:[#allocation11 + $0x30] sm:$0xff] }
 0x163   : > { %v1040_v55 = vadd.f32 %v7000_v50, %v1017_v49  ;;  %v805_v56 = vadd.f32 %v804_v52, %v6989_v31  ;;  %1447 = vmatprep.subr.mxu0 %v7061_v48  ;;  %v7093_v3 = vpack.c.bf16 %v1042_v41, %v1041_v58  ;;  %v1022_v18 = vadd.f32 %v7038_v35, %v813_v0  ;;  %v7128_v35 = vld [vmem:[#allocation11 + $0x78] sm:$0xff]  ;;  %v7168_v49 = vld [vmem:[#allocation11 + $0xd0] sm:$0xff]  ;;  %v7176_v52 = vld [vmem:[#allocation11 + $0x8] sm:$0xff] }
 0x164   : > { %1448 = vmatpush1.msra.mxu0 %v7066_v28  ;;  %v5434_v60 = vpop.f32.mrf.mxu1  ;;  %5499 = vmatprep.subr.mxu1 %v8937_v11  ;;  %v7172_v41 = vld [vmem:[#allocation11 + $0x18] sm:$0xff]  ;;  %9005 = vst [vmem:[#allocation18_spill] sm:$0xff] %v7176_v52  ;;  %v7195_v58 = vld [vmem:[#allocation11 + $0xa0] sm:$0xff] }
 0x165   : > { %v7086_v62 = vpack.c.bf16 %v1040_v55, %v1039_v54  ;;  %v816_v31 = vadd.f32 %v5434_v60, %v6991_v32  ;;  %1449 = vmatprep.subr.mxu0 %v7072_v53  ;;  %v1020_v8 = vadd.f32 %v993_v46, %v805_v56  ;;  %v996_v32 = vpop.f32.mrf.mxu0  ;;  %5500 = vmatpush3.msra.mxu1 %v7107_v15  ;;  %v7157_v46 = vld [vmem:[#allocation11 + $0x38] sm:$0xff]  ;;  %v7180_v54 = vld [vmem:[#allocation11] sm:$0xff]  ;;  %v7206_v60 = vld [vmem:[#allocation11 + $0x70] sm:$0xff] }
 0x166   : > { %1450 = vmatpush1.msra.mxu0 %v7079_v57  ;;  %v807_v4 = vpop.f32.mrf.mxu1  ;;  %5501 = vmatprep.subr.mxu1 %v8937_v11  ;;  %v1045_v37 = vadd.f32 %v7000_v50, %v1022_v18  ;;  %9006 = vst [vmem:[#allocation19_spill] sm:$0xff] %v7180_v54  ;;  %v7184_v55 = vld [vmem:[#allocation2] sm:$0xff]  ;;  %v7189_v56 = vld [vmem:[#allocation11 + $0xb8] sm:$0xff] }
 0x167   : > { %v1023_v12 = vadd.f32 %v5466_v59, %v816_v31  ;;  %v808_v13 = vadd.f32 %v807_v4, %v6993_v34  ;;  %1451 = vmatprep.subr.mxu0 %v7084_v61  ;;  %4958 = vmatmul.mubr.msk.bf16.gmra.mxu1 %vm1152_vm1, %v1049_v36  ;;  %v7115_v34 = vld [vmem:[#allocation11 + $0x90] sm:$0xff]  ;;  %v1043_v27 = vadd.f32 %v7000_v50, %v1020_v8  ;;  %v7132_v36 = vld [vmem:[#allocation11 + $0x68] sm:$0xff]  ;;  %v7219_v0 = vld [vmem:[#allocation11 + $0x40] sm:$0xff] }
 0x168   : > { %5483 = vmatprep.mubr.msk.bf16.mxu0 %vm1152_vm1, %v7086_v62  ;;  %1452 = vmatpush1.msra.mxu0 %v7091_v1  ;;  %v7200_v59 = vld [vmem:[#allocation11 + $0x88] sm:$0xff]  ;;  %v1071_v8 = vld [vmem:[%s8929_s4] sm:$0x7] }
 0x169   : > { %v1021_v20 = vadd.f32 %v996_v32, %v808_v13  ;;  %5484 = vmatmul.mubr.msk.bf16.gmra.mxu0 %vm1152_vm1, %v7093_v3  ;;  %1453 = vmatprep.subr.mxu0 %v7097_v5  ;;  %v1046_v30 = vadd.f32 %v7000_v50, %v1023_v12  ;;  %v7225_v31 = vld [vmem:[#allocation11 + $0x28] sm:$0xff] }
 0x16a   : > { %1454 = vmatpush1.msra.mxu0 %v7102_v29  ;;  %5502 = vmatpush3.msra.mxu1 %v7121_v22  ;;  %9007 = vst [vmem:[#allocation20_spill] sm:$0xff] %v7225_v31 }
 0x16b   : > { %v1044_v33 = vadd.f32 %v7000_v50, %v1021_v20  ;;  %1455 = vmatprep.subr.mxu0 %v7109_v17  ;;  %1239 = vmatprep.mubr.bf16.mxu1 %v6718_v9  ;;  %v7145_v44 = vpack.c.bf16 %v1046_v30, %v1045_v37  ;;  %v7150_v50 = vld [vmem:[#allocation11 + $0x48] sm:$0xff] }
 0x16c   : > { %1456 = vmatpush1.msra.mxu0 %v7115_v34  ;;  %5503 = vmatprep.subr.mxu1 %v8937_v11 }
 0x16d   : > { %v7135_v40 = vpack.c.bf16 %v1044_v33, %v1043_v27  ;;  %1457 = vmatprep.subr.mxu0 %v7119_v21  ;;  %5504 = vmatpush3.msra.mxu1 %v7155_v45 }
 0x16e   : > { %1458 = vmatpush1.msra.mxu0 %v7128_v35  ;;  %5505 = vmatprep.subr.mxu1 %v8937_v11 }
 0x16f   : > { %1459 = vmatprep.subr.mxu0 %v7132_v36  ;;  %4959 = vmatmul.mubr.msk.bf16.gmra.mxu1 %vm1152_vm1, %v7047_v39  ;;  %v7166_v39 = vld [vmem:[#allocation11 + $0x20] sm:$0xff] }
 0x170   : > { %5487 = vmatprep.mubr.msk.bf16.mxu0 %vm1152_vm1, %v7135_v40  ;;  %1460 = vmatpush1.msra.mxu0 %v7139_v42 }
 0x171   : > { %5488 = vmatmul.mubr.msk.bf16.gmra.mxu0 %vm1152_vm1, %v7145_v44  ;;  %1461 = vmatprep.subr.mxu0 %v7143_v43 }
 0x172   : > { %1462 = vmatpush1.msra.mxu0 %v7150_v50  ;;  %5506 = vmatpush3.msra.mxu1 %v7168_v49 }
 0x173   : > { %1463 = vmatprep.subr.mxu0 %v7157_v46  ;;  %1249 = vmatprep.mubr.bf16.mxu1 %v6718_v9 }
 0x174   : > { %1464 = vmatpush1.msra.mxu0 %v7162_v47  ;;  %1501 = vmatprep.mubr.f32.mxu0 %v8937_v11 }
 0x175   : > { %1465 = vmatprep.subr.mxu0 %v7166_v39  ;;  %5507 = vmatprep.subr.mxu1 %v8937_v11 }
 0x176   : > { %1466 = vmatpush1.msra.mxu0 %v7172_v41  ;;  %5508 = vmatpush3.msra.mxu1 %v7189_v56 }
 0x177   : > { %1467 = vmatprep.subr.mxu0 %v7176_v52  ;;  %4960 = vmatmul.mubr.msk.bf16.gmra.mxu1 %vm1152_vm1, %v7086_v62  ;;  %v7214_v62 = vld [vmem:[#allocation11 + $0x58] sm:$0xff] }
 0x178   : > { %1468 = vmatpush1.msra.mxu0 %v7180_v54  ;;  %1259 = vmatprep.mubr.bf16.mxu1 %v6718_v9 }
 0x179   : > { %1502 = vmatmul.mubr.f32.vlgmr.msra.gmra.mxu0 %v7184_v55  ;;  %5509 = vmatprep.subr.mxu1 %v8937_v11 }
 0x17a   : > { %1607 = vmatprep.subr.mxu0 %v6974_v10  ;;  %5510 = vmatpush3.msra.mxu1 %v7195_v58 }
 0x17b   : > { %1608 = vmatpush1.msra.mxu0 %v7008_v2  ;;  %5511 = vmatprep.subr.mxu1 %v8937_v11 }
 0x17c   : > { %1609 = vmatprep.subr.mxu0 %v7012_v6  ;;  %5512 = vmatpush3.msra.mxu1 %v7200_v59 }
 0x17d   : > { %1610 = vmatpush1.msra.mxu0 %v7018_v14  ;;  %5513 = vmatprep.subr.mxu1 %v8937_v11 }
 0x17e   : > { %5514 = vmatpush3.msra.mxu1 %v7206_v60  ;;  %1611 = vmatprep.subr.mxu0 %v7021_v16 }
 0x17f   : > { %4961 = vmatmul.mubr.msk.bf16.gmra.mxu1 %vm1152_vm1, %v7093_v3  ;;  %5515 = vmatprep.subr.mxu1 %v8937_v11  ;;  %v7231_v3 = vld [vmem:[#allocation11 + $0x10] sm:$0xff] }
 0x180   : > { %1269 = vmatprep.mubr.bf16.mxu1 %v6718_v9  ;;  %5516 = vmatpush3.msra.mxu1 %v7214_v62  ;;  %9008 = vst [vmem:[#allocation21_spill] sm:$0xff] %v7231_v3 }
 0x181   : > { %1612 = vmatpush1.msra.mxu0 %v7026_v19  ;;  %5517 = vmatprep.subr.mxu1 %v8937_v11 }
 0x182   : > { %1613 = vmatprep.subr.mxu0 %v7033_v24  ;;  %5518 = vmatpush3.msra.mxu1 %v7219_v0 }
 0x183   : > { %1614 = vmatpush1.msra.mxu0 %v7043_v25  ;;  %5519 = vmatprep.subr.mxu1 %v8937_v11 }
 0x184   : > { %1615 = vmatprep.subr.mxu0 %v7050_v23  ;;  %5520 = vmatpush3.msra.mxu1 %v7225_v31 }
 0x185   : > { %1616 = vmatpush1.msra.mxu0 %v7056_v26  ;;  %5521 = vmatprep.subr.mxu1 %v8937_v11 }
 0x186   : > { %5522 = vmatpush3.msra.mxu1 %v7231_v3  ;;  %1617 = vmatprep.subr.mxu0 %v7061_v48 }
 0x187   : > { %4962 = vmatmul.mubr.msk.bf16.gmra.mxu1 %vm1152_vm1, %v7135_v40  ;;  %5526 = vmatprep.subr.mxu1 %v8937_v11 }
 0x188   : > { %1279 = vmatprep.mubr.bf16.mxu1 %v6718_v9  ;;  %1618 = vmatpush1.msra.mxu0 %v7066_v28  ;;  %v1073_v9 = vlaneseq }
 0x189   : > { %1671 = vmatprep.mubr.f32.mxu0 %v8937_v11  ;;  %1619 = vmatprep.subr.mxu0 %v7072_v53 }
 0x18a   : > { %1620 = vmatpush1.msra.mxu0 %v7079_v57 }
 0x18b   : > { %1621 = vmatprep.subr.mxu0 %v7084_v61 }
 0x18c   : > { %1622 = vmatpush1.msra.mxu0 %v7091_v1 }
 0x18d   : > { %1623 = vmatprep.subr.mxu0 %v7097_v5 }
 0x18e   : > { %1624 = vmatpush1.msra.mxu0 %v7102_v29 }
 0x18f   : > { %4963 = vmatmul.mubr.msk.bf16.gmra.mxu1 %vm1152_vm1, %v7145_v44  ;;  %1625 = vmatprep.subr.mxu0 %v7109_v17 }
 0x190   : > { %5523 = vmatprep.mubr.msk.f32.mxu1 %vm6720_vm2, %v8937_v11  ;;  %1626 = vmatpush1.msra.mxu0 %v7115_v34 }
 0x191   : > { %1627 = vmatprep.subr.mxu0 %v7119_v21 }
 0x192   : > { %1628 = vmatpush1.msra.mxu0 %v7128_v35 }
 0x193   : > { %1629 = vmatprep.subr.mxu0 %v7132_v36 }
 0x194   : > { %1630 = vmatpush1.msra.mxu0 %v7139_v42 }
 0x195   : > { %1631 = vmatprep.subr.mxu0 %v7143_v43 }
 0x196   : > { %1632 = vmatpush1.msra.mxu0 %v7150_v50 }
 0x197   : > { %5524 = vmatmul.mubr.f32.vlgmr.msra.gmra.mxu1 %v7184_v55  ;;  %1633 = vmatprep.subr.mxu0 %v7157_v46 }
 0x198   : > { %5527 = vmatpush3.msra.mxu1 %v7006_v63  ;;  %1634 = vmatpush1.msra.mxu0 %v7162_v47 }
 0x199   : > { %5528 = vmatprep.subr.mxu1 %v8937_v11  ;;  %1635 = vmatprep.subr.mxu0 %v7166_v39 }
 0x19a   : > { %5529 = vmatpush3.msra.mxu1 %v7014_v7  ;;  %1636 = vmatpush1.msra.mxu0 %v7172_v41 }
 0x19b   : > { %5530 = vmatprep.subr.mxu1 %v8937_v11  ;;  %1637 = vmatprep.subr.mxu0 %v7176_v52 }
 0x19c   : > { %5531 = vmatpush3.msra.mxu1 %v7045_v38  ;;  %1638 = vmatpush1.msra.mxu0 %v7180_v54 }
 0x19d   : > { %5532 = vmatprep.subr.mxu1 %v8937_v11  ;;  %5558 = vmatprep.mubr.msk.f32.mxu1 %vm6720_vm2, %v8937_v11 }
 0x19e   : > { %5533 = vmatpush3.msra.mxu1 %v7068_v51  ;;  %1771 = vmatprep.subr.mxu0 %v6974_v10  ;;  %v1074_v10 = vshrl.u32 %v1073_v9, 7 }
 0x19f   : > { %5534 = vmatprep.subr.mxu1 %v8937_v11 }
 0x1a0   : > { %5535 = vmatpush3.msra.mxu1 %v7107_v15  ;;  %v1083_v4 = vsub.s32 2, %v1074_v10  ;;  %v1075_v13 = vsub.s32 0, %v1074_v10  ;;  %v1079_v20 = vsub.s32 1, %v1074_v10 }
 0x1a1   : > { %5536 = vmatprep.subr.mxu1 %v8937_v11 }
 0x1a2   : > { %5537 = vmatpush3.msra.mxu1 %v7121_v22  ;;  %v7308_v12 = vrot.slane %v1071_v8, %v1083_v4  ;;  %v7317_v33 = vrot.slane %v1071_v8, %v1075_v13  ;;  %v7321_v44 = vrot.slane %v1071_v8, %v1079_v20 }
 0x1a3   : > { %5538 = vmatprep.subr.mxu1 %v8937_v11 }
 0x1a4   : > { %5539 = vmatpush3.msra.mxu1 %v7155_v45 }
 0x1a5   : > { %5540 = vmatprep.subr.mxu1 %v8937_v11 }
 0x1a6   : > { %5541 = vmatpush3.msra.mxu1 %v7168_v49 }
 0x1a7   : > { %5542 = vmatprep.subr.mxu1 %v8937_v11 }
 0x1a8   : > { %5543 = vmatpush3.msra.mxu1 %v7189_v56 }
 0x1a9   : > { %5544 = vmatprep.subr.mxu1 %v8937_v11 }
 0x1aa   : > { %5545 = vmatpush3.msra.mxu1 %v7195_v58 }
 0x1ab   : > { %5546 = vmatprep.subr.mxu1 %v8937_v11 }
 0x1ac   : > { %5547 = vmatpush3.msra.mxu1 %v7200_v59 }
 0x1ad   : > { %5548 = vmatprep.subr.mxu1 %v8937_v11 }
 0x1ae   : > { %5549 = vmatpush3.msra.mxu1 %v7206_v60 }
 0x1af   : > { %5550 = vmatprep.subr.mxu1 %v8937_v11 }
 0x1b0   : > { %5551 = vmatpush3.msra.mxu1 %v7214_v62 }
 0x1b1   : > { %5552 = vmatprep.subr.mxu1 %v8937_v11 }
 0x1b2   : > { %5553 = vmatpush3.msra.mxu1 %v7219_v0 }
 0x1b3   : > { %5554 = vmatprep.subr.mxu1 %v8937_v11 }
 0x1b4   : > { %5555 = vmatpush3.msra.mxu1 %v7225_v31 }
 0x1b5   : > { %5556 = vmatprep.subr.mxu1 %v8937_v11 }
 0x1b6   : > { %5557 = vmatpush3.msra.mxu1 %v7231_v3 }
 0x1b7   : > { %5561 = vmatprep.subr.mxu1 %v8937_v11 }
 0x217   : > { %v7310_v32 = vpop.f32.mrf.mxu1 }
 0x218   : > { %v5477_v18 = vpop.f32.mrf.mxu0 }
 0x219   : > { %v7313_v27 = vadd.f32 %v5477_v18, %v7308_v12  ;;  %v7315_v30 = vpop.f32.mrf.mxu1 }
 0x21a   : > { %v7319_v37 = vpop.f32.mrf.mxu0 }
 0x21b   : > { %9009 = vst [vmem:[#allocation22_spill] sm:$0xff] %v7313_v27  ;;  %v1215_v40 = vpop.f32.mrf.mxu1 }
 0x21c   : > { %v7324_v9 = vadd.f32 %v1215_v40, %v7317_v33  ;;  %v5478_v4 = vpop.f32.mrf.mxu0 }
 0x21d   : > { %v7327_v11 = vadd.f32 %v5478_v4, %v7308_v12  ;;  %v1217_v10 = vpop.f32.mrf.mxu1 }
 0x21e   : > { %9010 = vst [vmem:[#allocation23_spill] sm:$0xff] %v7324_v9  ;;  %v7330_v18 = vadd.f32 %v1217_v10, %v7321_v44  ;;  %v1327_v27 = vpop.f32.mrf.mxu0 }
 0x21f   : > { %9011 = vst [vmem:[#allocation24_spill] sm:$0xff] %v7327_v11  ;;  %v7333_v13 = vadd.f32 %v1327_v27, %v7308_v12  ;;  %v1221_v3 = vpop.f32.mrf.mxu1 }
 0x220   : > { %9012 = vst [vmem:[#allocation25_spill] sm:$0xff] %v7330_v18  ;;  %v7336_v54 = vadd.f32 %v1221_v3, %v7317_v33 }
 0x221   : > { %9013 = vst [vmem:[#allocation26_spill] sm:$0xff] %v7333_v13  ;;  %v5481_v8 = vpop.f32.mrf.mxu0  ;;  %v1223_v20 = vpop.f32.mrf.mxu1 }
 0x222   : > { %9014 = vst [vmem:[#allocation27_spill] sm:$0xff] %v7336_v54  ;;  %v7339_v40 = vadd.f32 %v5481_v8, %v7308_v12  ;;  %v7342_v4 = vadd.f32 %v1223_v20, %v7321_v44 }
 0x223   : > { %v1340_v11 = vpop.f32.mrf.mxu0  ;;  %v1225_v9 = vpop.f32.mrf.mxu1 }
 0x224   : > { %9015 = vst [vmem:[#allocation28_spill] sm:$0xff] %v7339_v40  ;;  %9016 = vst [vmem:[#allocation29_spill] sm:$0xff] %v7342_v4  ;;  %v7345_v10 = vadd.f32 %v1340_v11, %v7308_v12  ;;  %v7348_v27 = vadd.f32 %v1225_v9, %v7317_v33 }
 0x225   : > { %v5482_v13 = vpop.f32.mrf.mxu0  ;;  %v1227_v18 = vpop.f32.mrf.mxu1 }
 0x226   : > { %9017 = vst [vmem:[#allocation30_spill] sm:$0xff] %v7345_v10  ;;  %9018 = vst [vmem:[#allocation31_spill] sm:$0xff] %v7348_v27  ;;  %v7351_v3 = vadd.f32 %v5482_v13, %v7308_v12  ;;  %v7354_v54 = vadd.f32 %v1227_v18, %v7321_v44 }
 0x227   : > { %v1343_v8 = vpop.f32.mrf.mxu0  ;;  %v1231_v40 = vpop.f32.mrf.mxu1 }
 0x228   : > { %9019 = vst [vmem:[#allocation32_spill] sm:$0xff] %v7351_v3  ;;  %9020 = vst [vmem:[#allocation33_spill] sm:$0xff] %v7354_v54  ;;  %v7357_v20 = vadd.f32 %v1343_v8, %v7308_v12  ;;  %v7360_v4 = vadd.f32 %v1231_v40, %v7317_v33 }
 0x229   : > { %v5485_v11 = vpop.f32.mrf.mxu0  ;;  %v1233_v10 = vpop.f32.mrf.mxu1 }
 0x22a   : > { %9021 = vst [vmem:[#allocation34_spill] sm:$0xff] %v7357_v20  ;;  %9022 = vst [vmem:[#allocation35_spill] sm:$0xff] %v7360_v4  ;;  %v7363_v9 = vadd.f32 %v5485_v11, %v7308_v12  ;;  %v7366_v27 = vadd.f32 %v1233_v10, %v7321_v44 }
 0x22b   : > { %v1356_v13 = vpop.f32.mrf.mxu0  ;;  %v1235_v3 = vpop.f32.mrf.mxu1 }
 0x22c   : > { %9023 = vst [vmem:[#allocation36_spill] sm:$0xff] %v7363_v9  ;;  %9024 = vst [vmem:[#allocation37_spill] sm:$0xff] %v7366_v27  ;;  %v7369_v18 = vadd.f32 %v1356_v13, %v7308_v12  ;;  %v7372_v54 = vadd.f32 %v1235_v3, %v7317_v33 }
 0x22d   : > { %v5486_v8 = vpop.f32.mrf.mxu0  ;;  %v1237_v20 = vpop.f32.mrf.mxu1 }
 0x22e   : > { %9025 = vst [vmem:[#allocation38_spill] sm:$0xff] %v7369_v18  ;;  %9026 = vst [vmem:[#allocation39_spill] sm:$0xff] %v7372_v54  ;;  %v7375_v40 = vadd.f32 %v5486_v8, %v7308_v12  ;;  %v7378_v4 = vadd.f32 %v1237_v20, %v7321_v44 }
 0x22f   : > { %v1359_v11 = vpop.f32.mrf.mxu0  ;;  %v1241_v9 = vpop.f32.mrf.mxu1 }
 0x230   : > { %9027 = vst [vmem:[#allocation40_spill] sm:$0xff] %v7375_v40  ;;  %9028 = vst [vmem:[#allocation41_spill] sm:$0xff] %v7378_v4  ;;  %v7381_v10 = vadd.f32 %v1359_v11, %v7308_v12  ;;  %v7384_v27 = vadd.f32 %v1241_v9, %v7317_v33 }
 0x231   : > { %v5489_v13 = vpop.f32.mrf.mxu0  ;;  %v1243_v18 = vpop.f32.mrf.mxu1 }
 0x232   : > { %9029 = vst [vmem:[#allocation42_spill] sm:$0xff] %v7381_v10  ;;  %9030 = vst [vmem:[#allocation43_spill] sm:$0xff] %v7384_v27  ;;  %v7387_v3 = vadd.f32 %v5489_v13, %v7308_v12  ;;  %v7390_v54 = vadd.f32 %v1243_v18, %v7321_v44  ;;  %v1212_v18 = vadd.f32 %v7310_v32, %v7317_v33 }
 0x233   : > { %v1372_v8 = vpop.f32.mrf.mxu0  ;;  %v1245_v40 = vpop.f32.mrf.mxu1  ;;  %v1214_v32 = vadd.f32 %v7315_v30, %v7321_v44 }
 0x234   : > { %9031 = vst [vmem:[#allocation44_spill] sm:$0xff] %v7387_v3  ;;  %9032 = vst [vmem:[#allocation45_spill] sm:$0xff] %v7390_v54  ;;  %v7393_v20 = vadd.f32 %v1372_v8, %v7308_v12  ;;  %v7396_v4 = vadd.f32 %v1245_v40, %v7317_v33 }
 0x235   : > { %v5490_v11 = vpop.f32.mrf.mxu0  ;;  %v1247_v10 = vpop.f32.mrf.mxu1 }
 0x236   : > { %9033 = vst [vmem:[#allocation46_spill] sm:$0xff] %v7393_v20  ;;  %9034 = vst [vmem:[#allocation47_spill] sm:$0xff] %v7396_v4  ;;  %v7399_v9 = vadd.f32 %v5490_v11, %v7308_v12  ;;  %v7402_v27 = vadd.f32 %v1247_v10, %v7321_v44 }
 0x237   : > { %v1375_v13 = vpop.f32.mrf.mxu0  ;;  %v1251_v3 = vpop.f32.mrf.mxu1 }
 0x238   : > { %9035 = vst [vmem:[#allocation48_spill] sm:$0xff] %v7399_v9  ;;  %9036 = vst [vmem:[#allocation49_spill] sm:$0xff] %v7402_v27  ;;  %v7407_v54 = vadd.f32 %v1375_v13, %v7308_v12  ;;  %v7410_v8 = vadd.f32 %v1251_v3, %v7317_v33 }
 0x239   : > { %v1503_v40 = vpop.f32.mrf.mxu0  ;;  %v1253_v20 = vpop.f32.mrf.mxu1 }
 0x23a   : > { %9037 = vst [vmem:[#allocation50_spill] sm:$0xff] %v7407_v54  ;;  %9038 = vst [vmem:[#allocation51_spill] sm:$0xff] %v7410_v8  ;;  %v1578_v4 = vadd.f32 %v1503_v40, %v1212_v18  ;;  %v7413_v11 = vadd.f32 %v1253_v20, %v7321_v44 }
 0x23b   : > { %v1255_v9 = vpop.f32.mrf.mxu1  ;;  %v1505_v52 = vpop.f32.mrf.mxu0 }
 0x23c   : > { %9039 = vst [vmem:[#allocation52_spill] sm:$0xff] %v7413_v11  ;;  %v4972_v10 = vmul.f32 -1.442695, %v1578_v4  ;;  %v7416_v27 = vadd.f32 %v1255_v9, %v7317_v33  ;;  %v1585_v54 = vadd.f32 %v1505_v52, %v1214_v32 }
 0x23d   : > { %v1257_v31 = vpop.f32.mrf.mxu1 }
 0x23e   : > { %9040 = vst [vmem:[#allocation53_spill] sm:$0xff] %v7416_v27  ;;  %6207 = vpow2.f32 %v4972_v10  ;;  %v7421_v3 = vadd.f32 %v1257_v31, %v7321_v44  ;;  %v4973_v40 = vmul.f32 -1.442695, %v1585_v54 }
 0x23f   : > { %v1261_v13 = vpop.f32.mrf.mxu1 }
 0x240   : > { %9041 = vst [vmem:[#allocation54_spill] sm:$0xff] %v7421_v3  ;;  %v7424_v18 = vadd.f32 %v1261_v13, %v7317_v33  ;;  %6209 = vpow2.f32 %v4973_v40 }
 0x241   : > { %v1263_v20 = vpop.f32.mrf.mxu1 }
 0x242   : > { %9042 = vst [vmem:[#allocation55_spill] sm:$0xff] %v7424_v18  ;;  %v7427_v4 = vadd.f32 %v1263_v20, %v7321_v44 }
 0x243   : > { %v1265_v9 = vpop.f32.mrf.mxu1 }
 0x244   : > { %9043 = vst [vmem:[#allocation56_spill] sm:$0xff] %v7427_v4  ;;  %v7430_v27 = vadd.f32 %v1265_v9, %v7317_v33 }
 0x245   : > { %v1267_v11 = vpop.f32.mrf.mxu1 }
 0x246   : > { %9044 = vst [vmem:[#allocation57_spill] sm:$0xff] %v7430_v27  ;;  %v7433_v30 = vadd.f32 %v1267_v11, %v7321_v44 }
 0x247   : > { %v1271_v31 = vpop.f32.mrf.mxu1 }
 0x248   : > { %9045 = vst [vmem:[#allocation58_spill] sm:$0xff] %v7433_v30  ;;  %v7436_v52 = vadd.f32 %v1271_v31, %v7317_v33 }
 0x249   : > { %v1273_v10 = vpop.f32.mrf.mxu1 }
 0x24a   : > { %9046 = vst [vmem:[#allocation59_spill] sm:$0xff] %v7436_v52  ;;  %v7439_v32 = vadd.f32 %v1273_v10, %v7321_v44 }
 0x24b   : > { %v6208_v13 = vpop.eup %6207  ;;  %v1275_v20 = vpop.f32.mrf.mxu1 }
 0x24c   : > { %9047 = vst [vmem:[#allocation60_spill] sm:$0xff] %v7439_v32  ;;  %v1582_v4 = vadd.f32 1.0, %v6208_v13  ;;  %v7442_v54 = vadd.f32 %v1275_v20, %v7317_v33 }
 0x24d   : > { %v1277_v9 = vpop.f32.mrf.mxu1  ;;  %v6210_v13 = vpop.eup %6209 }
 0x24e   : > { %9048 = vst [vmem:[#allocation61_spill] sm:$0xff] %v7442_v54  ;;  %6211 = vrcp.f32 %v1582_v4  ;;  %v7445_v11 = vadd.f32 %v1277_v9, %v7321_v44  ;;  %v7459_v4 = vld [vmem:[%s8931_s6] ss:$0 sm:$0xff] }
 0x24f   : > { %v1281_v30 = vpop.f32.mrf.mxu1 }
 0x250   : > { %9049 = vst [vmem:[#allocation62_spill] sm:$0xff] %v7445_v11  ;;  %v7448_v40 = vadd.f32 %v1281_v30, %v7317_v33 }
 0x251   : > { %v1283_v31 = vpop.f32.mrf.mxu1 }
 0x252   : > { %9050 = vst [vmem:[#allocation63_spill] sm:$0xff] %v7448_v40  ;;  %v7451_v52 = vadd.f32 %v1283_v31, %v7321_v44  ;;  %v1589_v40 = vadd.f32 1.0, %v6210_v13 }
 0x253   : > { %v1285_v10 = vpop.f32.mrf.mxu1 }
 0x254   : > { %9051 = vst [vmem:[#allocation64_spill] sm:$0xff] %v7451_v52  ;;  %v7454_v32 = vadd.f32 %v1285_v10, %v7317_v33  ;;  %v1325_v33 = vadd.f32 %v7319_v37, %v7308_v12  ;;  %6213 = vrcp.f32 %v1589_v40  ;;  %v9055_v12 = vmov 0.0   ;;  %v9057_v37 = vld [vmem:[#allocation18_spill] sm:$0xff] }
 0x255   : > { %v1287_v20 = vpop.f32.mrf.mxu1 }
 0x256   : > { %9052 = vst [vmem:[#allocation65_spill] sm:$0xff] %v7454_v32  ;;  %v7462_v9 = vadd.f32 %v1287_v20, %v7321_v44 }
 0x257   : > { %v1574_v30 = vpop.f32.mrf.mxu1 }
 0x258   : > { %9053 = vst [vmem:[#allocation66_spill] sm:$0xff] %v7462_v9  ;;  %v1598_v11 = vadd.f32 %v7459_v4, %v1574_v30 }
 0x259   : > { %v5525_v31 = vpop.f32.mrf.mxu1 }
 0x25a   : > { %v9062_v31 = vld [vmem:[#allocation25_spill] sm:$0xff] }
 0x25b   : > { %v6212_v52 = vpop.eup %6211 }
 0x25c   : > { %v1599_v10 = vmul.f32 %v6212_v52, %v1598_v11 }
 0x25e   : > { %v1600_v32 = vadd.f32 %v1599_v10, %v1325_v33 }
 0x260   : > { %6215 = vtanh.f32 %v1600_v32 }
 0x261   : > { %v6214_v54 = vpop.eup %6213 }
 0x262   : > { %v1602_v27 = vsub.f32 1.0, %v6214_v54  ;;  %v1604_v44 = vmul.f32 %v6214_v54, %v7184_v55  ;;  %v9056_v55 = vld [vmem:[#allocation20_spill] sm:$0xff]  ;;  %v9061_v54 = vld [vmem:[#allocation23_spill] sm:$0xff] }
 0x26d   : > { %v6216_v18 = vpop.eup %6215 }
 0x26e   : > { %v1603_v3 = vmul.f32 %v6216_v18, %v1602_v27  ;;  %v9058_v27 = vld [vmem:[#allocation19_spill] sm:$0xff] }
 0x26f   : > { %v7537_v18 = vld [vmem:[#allocation11 + $0x170] sm:$0xff] }
 0x270   : > { %v7468_v20 = vadd.f32 %v1604_v44, %v1603_v3  ;;  %v9059_v3 = vld [vmem:[#allocation21_spill] sm:$0xff]  ;;  %9060 = vst [vmem:[#allocation68_spill] sm:$0xff] %v7537_v18 }
 0x272   : > { %9054 = vst [vmem:[#allocation67_spill] sm:$0xff] %v7468_v20  ;;  %1672 = vmatmul.mubr.f32.vlgmr.msra.gmra.mxu0 %v7468_v20  ;;  %5559 = vmatmul.mubr.f32.vlgmr.msra.gmra.mxu1 %v7468_v20 }
 0x273   : > { %1772 = vmatpush1.msra.mxu0 %v7008_v2  ;;  %5562 = vmatpush3.msra.mxu1 %v7006_v63 }
 0x274   : > { %1773 = vmatprep.subr.mxu0 %v7012_v6  ;;  %5563 = vmatprep.subr.mxu1 %v9055_v12 }
 0x275   : > { %1774 = vmatpush1.msra.mxu0 %v7018_v14  ;;  %5564 = vmatpush3.msra.mxu1 %v7014_v7 }
 0x276   : > { %1775 = vmatprep.subr.mxu0 %v7021_v16  ;;  %5565 = vmatprep.subr.mxu1 %v9055_v12 }
 0x277   : > { %1776 = vmatpush1.msra.mxu0 %v7026_v19  ;;  %5566 = vmatpush3.msra.mxu1 %v7045_v38 }
 0x278   : > { %1777 = vmatprep.subr.mxu0 %v7033_v24  ;;  %5567 = vmatprep.subr.mxu1 %v9055_v12 }
 0x279   : > { %1778 = vmatpush1.msra.mxu0 %v7043_v25  ;;  %5568 = vmatpush3.msra.mxu1 %v7068_v51 }
 0x27a   : > { %1779 = vmatprep.subr.mxu0 %v7050_v23  ;;  %5569 = vmatprep.subr.mxu1 %v9055_v12 }
 0x27b   : > { %1780 = vmatpush1.msra.mxu0 %v7056_v26  ;;  %5570 = vmatpush3.msra.mxu1 %v7107_v15 }
 0x27c   : > { %1781 = vmatprep.subr.mxu0 %v7061_v48  ;;  %5571 = vmatprep.subr.mxu1 %v9055_v12 }
 0x27d   : > { %1782 = vmatpush1.msra.mxu0 %v7066_v28  ;;  %5572 = vmatpush3.msra.mxu1 %v7121_v22 }
 0x27e   : > { %1783 = vmatprep.subr.mxu0 %v7072_v53  ;;  %5573 = vmatprep.subr.mxu1 %v9055_v12 }
 0x27f   : > { %1784 = vmatpush1.msra.mxu0 %v7079_v57  ;;  %5574 = vmatpush3.msra.mxu1 %v7155_v45 }
 0x280   : > { %1785 = vmatprep.subr.mxu0 %v7084_v61  ;;  %5575 = vmatprep.subr.mxu1 %v9055_v12 }
 0x281   : > { %1786 = vmatpush1.msra.mxu0 %v7091_v1  ;;  %5576 = vmatpush3.msra.mxu1 %v7168_v49 }
 0x282   : > { %1787 = vmatprep.subr.mxu0 %v7097_v5  ;;  %5577 = vmatprep.subr.mxu1 %v9055_v12 }
 0x283   : > { %1788 = vmatpush1.msra.mxu0 %v7102_v29  ;;  %5578 = vmatpush3.msra.mxu1 %v7189_v56 }
 0x284   : > { %1789 = vmatprep.subr.mxu0 %v7109_v17  ;;  %5579 = vmatprep.subr.mxu1 %v9055_v12 }
 0x285   : > { %1790 = vmatpush1.msra.mxu0 %v7115_v34  ;;  %5580 = vmatpush3.msra.mxu1 %v7195_v58 }
 0x286   : > { %1791 = vmatprep.subr.mxu0 %v7119_v21  ;;  %5581 = vmatprep.subr.mxu1 %v9055_v12 }
 0x287   : > { %1792 = vmatpush1.msra.mxu0 %v7128_v35  ;;  %5582 = vmatpush3.msra.mxu1 %v7200_v59 }
 0x288   : > { %1793 = vmatprep.subr.mxu0 %v7132_v36  ;;  %5583 = vmatprep.subr.mxu1 %v9055_v12 }
 0x289   : > { %1794 = vmatpush1.msra.mxu0 %v7139_v42  ;;  %5584 = vmatpush3.msra.mxu1 %v7206_v60 }
 0x28a   : > { %1795 = vmatprep.subr.mxu0 %v7143_v43  ;;  %5585 = vmatprep.subr.mxu1 %v9055_v12 }
 0x28b   : > { %1796 = vmatpush1.msra.mxu0 %v7150_v50  ;;  %5586 = vmatpush3.msra.mxu1 %v7214_v62 }
 0x28c   : > { %1797 = vmatprep.subr.mxu0 %v7157_v46  ;;  %5587 = vmatprep.subr.mxu1 %v9055_v12 }
 0x28d   : > { %1798 = vmatpush1.msra.mxu0 %v7162_v47  ;;  %5588 = vmatpush3.msra.mxu1 %v7219_v0 }
 0x28e   : > { %1799 = vmatprep.subr.mxu0 %v7166_v39  ;;  %5589 = vmatprep.subr.mxu1 %v9055_v12 }
 0x28f   : > { %1800 = vmatpush1.msra.mxu0 %v7172_v41  ;;  %5590 = vmatpush3.msra.mxu1 %v9056_v55  ;;  %v9063_v55 = vld [vmem:[#allocation26_spill] sm:$0xff] }
 0x290   : > { %1801 = vmatprep.subr.mxu0 %v9057_v37  ;;  %5591 = vmatprep.subr.mxu1 %v9055_v12 }
 0x291   : > { %1802 = vmatpush1.msra.mxu0 %v9058_v27  ;;  %1835 = vmatprep.mubr.f32.mxu0 %v9055_v12 }
 0x292   : > { %5592 = vmatpush3.msra.mxu1 %v9059_v3  ;;  %5593 = vmatprep.mubr.msk.f32.mxu1 %vm6720_vm2, %v9055_v12 }
 0x293   : > { %1935 = vmatprep.subr.mxu0 %v7537_v18  ;;  %5596 = vmatprep.subr.mxu1 %v9055_v12 }
 0x332   : > { %v1673_v52 = vpop.f32.mrf.mxu0  ;;  %v1744_v32 = vpop.f32.mrf.mxu1 }
 0x333   : > { %v1748_v11 = vadd.f32 %v1673_v52, %v9061_v54  ;;  %v1762_v18 = vadd.f32 %v7459_v4, %v1744_v32  ;;  %v7629_v32 = vld [vmem:[#allocation11 + $0x178] sm:$0xff] }
 0x334   : > { %v5560_v40 = vpop.f32.mrf.mxu1  ;;  %v1675_v30 = vpop.f32.mrf.mxu0 }
 0x335   : > { %v4975_v13 = vmul.f32 -1.442695, %v1748_v11  ;;  %v1755_v33 = vadd.f32 %v1675_v30, %v9062_v31 }
 0x337   : > { %6217 = vpow2.f32 %v4975_v13  ;;  %v4976_v10 = vmul.f32 -1.442695, %v1755_v33  ;;  %v7632_v33 = vld [vmem:[#allocation11 + $0x158] sm:$0xff] }
 0x339   : > { %6219 = vpow2.f32 %v4976_v10  ;;  %v7636_v10 = vld [vmem:[#allocation11 + $0x150] sm:$0xff] }
 0x344   : > { %v6218_v44 = vpop.eup %6217 }
 0x345   : > { %v1752_v9 = vadd.f32 1.0, %v6218_v44  ;;  %v7639_v44 = vld [vmem:[#allocation11 + $0x160] sm:$0xff] }
 0x346   : > { %v6220_v8 = vpop.eup %6219 }
 0x347   : > { %6221 = vrcp.f32 %v1752_v9  ;;  %v1759_v3 = vadd.f32 1.0, %v6220_v8 }
 0x349   : > { %6223 = vrcp.f32 %v1759_v3 }
 0x354   : > { %v6222_v27 = vpop.eup %6221 }
 0x355   : > { %v1763_v37 = vmul.f32 %v6222_v27, %v1762_v18  ;;  %v7626_v18 = vld [vmem:[#allocation11 + $0x168] sm:$0xff] }
 0x356   : > { %v6224_v54 = vpop.eup %6223 }
 0x357   : > { %v1764_v52 = vadd.f32 %v1763_v37, %v9063_v55  ;;  %v1766_v11 = vsub.f32 1.0, %v6224_v54  ;;  %v1768_v30 = vmul.f32 %v6224_v54, %v7468_v20  ;;  %v7646_v54 = vld [vmem:[#allocation11 + $0x138] sm:$0xff] }
 0x359   : > { %6225 = vtanh.f32 %v1764_v52  ;;  %v7642_v52 = vld [vmem:[#allocation11 + $0x140] sm:$0xff] }
 0x366   : > { %v6226_v40 = vpop.eup %6225 }
 0x367   : > { %v1767_v13 = vmul.f32 %v6226_v40, %v1766_v11  ;;  %v7649_v11 = vld [vmem:[#allocation11 + $0x148] sm:$0xff] }
 0x368   : > { %v7652_v40 = vld [vmem:[#allocation11 + $0x128] sm:$0xff] }
 0x369   : > { %v7546_v31 = vadd.f32 %v1768_v30, %v1767_v13  ;;  %v7656_v13 = vld [vmem:[#allocation11 + $0x120] sm:$0xff]  ;;  %v7659_v30 = vld [vmem:[#allocation11 + $0x130] sm:$0xff] }
 0x36b   : > { %9064 = vst [vmem:[#allocation23_spill] sm:$0xff] %v7546_v31  ;;  %1836 = vmatmul.mubr.f32.vlgmr.msra.gmra.mxu0 %v7546_v31  ;;  %5594 = vmatmul.mubr.f32.vlgmr.msra.gmra.mxu1 %v7546_v31 }
 0x36c   : > { %1936 = vmatpush1.msra.mxu0 %v7008_v2  ;;  %5597 = vmatpush3.msra.mxu1 %v7006_v63  ;;  %v9065_v63 = vld [vmem:[#allocation20_spill] sm:$0xff]  ;;  %v9066_v2 = vld [vmem:[#allocation18_spill] sm:$0xff] }
 0x36d   : > { %1937 = vmatprep.subr.mxu0 %v7012_v6  ;;  %5598 = vmatprep.subr.mxu1 %v9055_v12  ;;  %v9067_v6 = vld [vmem:[#allocation19_spill] sm:$0xff] }
 0x36e   : > { %1938 = vmatpush1.msra.mxu0 %v7018_v14  ;;  %5599 = vmatpush3.msra.mxu1 %v7014_v7  ;;  %v9068_v7 = vld [vmem:[#allocation21_spill] sm:$0xff]  ;;  %v9069_v14 = vld [vmem:[#allocation68_spill] sm:$0xff] }
 0x36f   : > { %1939 = vmatprep.subr.mxu0 %v7021_v16  ;;  %5600 = vmatprep.subr.mxu1 %v9055_v12 }
 0x370   : > { %1940 = vmatpush1.msra.mxu0 %v7026_v19  ;;  %5601 = vmatpush3.msra.mxu1 %v7045_v38 }
 0x371   : > { %1941 = vmatprep.subr.mxu0 %v7033_v24  ;;  %5602 = vmatprep.subr.mxu1 %v9055_v12  ;;  %v9070_v24 = vld [vmem:[#allocation27_spill] sm:$0xff] }
 0x372   : > { %1942 = vmatpush1.msra.mxu0 %v7043_v25  ;;  %5603 = vmatpush3.msra.mxu1 %v7068_v51 }
 0x373   : > { %1943 = vmatprep.subr.mxu0 %v7050_v23  ;;  %5604 = vmatprep.subr.mxu1 %v9055_v12 }
 0x374   : > { %1944 = vmatpush1.msra.mxu0 %v7056_v26  ;;  %5605 = vmatpush3.msra.mxu1 %v7107_v15 }
 0x375   : > { %1945 = vmatprep.subr.mxu0 %v7061_v48  ;;  %5606 = vmatprep.subr.mxu1 %v9055_v12  ;;  %v9071_v48 = vld [vmem:[#allocation29_spill] sm:$0xff] }
 0x376   : > { %1946 = vmatpush1.msra.mxu0 %v7066_v28  ;;  %5607 = vmatpush3.msra.mxu1 %v7121_v22 }
 0x377   : > { %1947 = vmatprep.subr.mxu0 %v7072_v53  ;;  %5608 = vmatprep.subr.mxu1 %v9055_v12 }
 0x378   : > { %1948 = vmatpush1.msra.mxu0 %v7079_v57  ;;  %5609 = vmatpush3.msra.mxu1 %v7155_v45 }
 0x379   : > { %1949 = vmatprep.subr.mxu0 %v7084_v61  ;;  %5610 = vmatprep.subr.mxu1 %v9055_v12 }
 0x37a   : > { %1950 = vmatpush1.msra.mxu0 %v7091_v1  ;;  %5611 = vmatpush3.msra.mxu1 %v7168_v49 }
 0x37b   : > { %1951 = vmatprep.subr.mxu0 %v7097_v5  ;;  %5612 = vmatprep.subr.mxu1 %v9055_v12 }
 0x37c   : > { %1952 = vmatpush1.msra.mxu0 %v7102_v29  ;;  %5613 = vmatpush3.msra.mxu1 %v7189_v56 }
 0x37d   : > { %1953 = vmatprep.subr.mxu0 %v7109_v17  ;;  %5614 = vmatprep.subr.mxu1 %v9055_v12 }
 0x37e   : > { %1954 = vmatpush1.msra.mxu0 %v7115_v34  ;;  %5615 = vmatpush3.msra.mxu1 %v7195_v58  ;;  %v9072_v34 = vld [vmem:[#allocation22_spill] sm:$0xff] }
 0x37f   : > { %1955 = vmatprep.subr.mxu0 %v7119_v21  ;;  %5616 = vmatprep.subr.mxu1 %v9055_v12 }
 0x380   : > { %1956 = vmatpush1.msra.mxu0 %v7128_v35  ;;  %5617 = vmatpush3.msra.mxu1 %v7200_v59 }
 0x381   : > { %1957 = vmatprep.subr.mxu0 %v7132_v36  ;;  %5618 = vmatprep.subr.mxu1 %v9055_v12 }
 0x382   : > { %1958 = vmatpush1.msra.mxu0 %v7139_v42  ;;  %5619 = vmatpush3.msra.mxu1 %v7206_v60 }
 0x383   : > { %1959 = vmatprep.subr.mxu0 %v7143_v43  ;;  %5620 = vmatprep.subr.mxu1 %v9055_v12 }
 0x384   : > { %1960 = vmatpush1.msra.mxu0 %v7150_v50  ;;  %5621 = vmatpush3.msra.mxu1 %v7214_v62 }
 0x385   : > { %1961 = vmatprep.subr.mxu0 %v7157_v46  ;;  %5622 = vmatprep.subr.mxu1 %v9055_v12 }
 0x386   : > { %1962 = vmatpush1.msra.mxu0 %v7162_v47  ;;  %5623 = vmatpush3.msra.mxu1 %v7219_v0 }
 0x387   : > { %1963 = vmatprep.subr.mxu0 %v7166_v39  ;;  %5624 = vmatprep.subr.mxu1 %v9055_v12 }
 0x388   : > { %1964 = vmatpush1.msra.mxu0 %v7172_v41  ;;  %5625 = vmatpush3.msra.mxu1 %v9065_v63 }
 0x389   : > { %1965 = vmatprep.subr.mxu0 %v9066_v2  ;;  %5626 = vmatprep.subr.mxu1 %v9055_v12 }
 0x38a   : > { %1966 = vmatpush1.msra.mxu0 %v9067_v6  ;;  %1999 = vmatprep.mubr.f32.mxu0 %v9055_v12 }
 0x38b   : > { %5627 = vmatpush3.msra.mxu1 %v9068_v7  ;;  %5628 = vmatprep.mubr.msk.f32.mxu1 %vm6720_vm2, %v9055_v12 }
 0x38c   : > { %2099 = vmatprep.subr.mxu0 %v9069_v14  ;;  %5631 = vmatprep.subr.mxu1 %v9055_v12 }
 0x42b   : > { %v1837_v16 = vpop.f32.mrf.mxu0  ;;  %v1908_v19 = vpop.f32.mrf.mxu1 }
 0x42c   : > { %v1912_v25 = vadd.f32 %v1837_v16, %v9070_v24  ;;  %v1926_v5 = vadd.f32 %v7459_v4, %v1908_v19  ;;  %v7662_v16 = vld [vmem:[#allocation11 + $0x110] sm:$0xff]  ;;  %v7666_v19 = vld [vmem:[#allocation11 + $0x108] sm:$0xff]  ;;  %v7670_v24 = vld [vmem:[#allocation11 + $0xf8] sm:$0xff] }
 0x42d   : > { %v5595_v38 = vpop.f32.mrf.mxu1  ;;  %v1839_v26 = vpop.f32.mrf.mxu0 }
 0x42e   : > { %v4977_v23 = vmul.f32 -1.442695, %v1912_v25  ;;  %v1919_v28 = vadd.f32 %v1839_v26, %v9071_v48  ;;  %v7674_v25 = vld [vmem:[#allocation11 + $0xf0] sm:$0xff]  ;;  %v7678_v38 = vld [vmem:[#allocation11 + $0xe0] sm:$0xff]  ;;  %v7698_v48 = vld [vmem:[#allocation11 + $0xa8] sm:$0xff] }
 0x42f   : > { %v7690_v26 = vld [vmem:[#allocation11 + $0xc0] sm:$0xff] }
 0x430   : > { %6227 = vpow2.f32 %v4977_v23  ;;  %v4978_v51 = vmul.f32 -1.442695, %v1919_v28  ;;  %v7682_v23 = vld [vmem:[#allocation11 + $0xd8] sm:$0xff]  ;;  %v7706_v28 = vld [vmem:[#allocation11 + $0x90] sm:$0xff] }
 0x432   : > { %6229 = vpow2.f32 %v4978_v51 }
 0x43d   : > { %v6228_v53 = vpop.eup %6227 }
 0x43e   : > { %v1916_v57 = vadd.f32 1.0, %v6228_v53 }
 0x43f   : > { %v6230_v61 = vpop.eup %6229 }
 0x440   : > { %6231 = vrcp.f32 %v1916_v57  ;;  %v1923_v1 = vadd.f32 1.0, %v6230_v61 }
 0x442   : > { %6233 = vrcp.f32 %v1923_v1 }
 0x44d   : > { %v6232_v29 = vpop.eup %6231 }
 0x44e   : > { %v1927_v17 = vmul.f32 %v6232_v29, %v1926_v5  ;;  %v7767_v29 = vld [vmem:[#allocation11 + $0x118] sm:$0xff] }
 0x44f   : > { %v6234_v8 = vpop.eup %6233 }
 0x450   : > { %v1928_v21 = vadd.f32 %v1927_v17, %v9072_v34  ;;  %v1930_v9 = vsub.f32 1.0, %v6234_v8  ;;  %v1932_v27 = vmul.f32 %v6234_v8, %v7546_v31  ;;  %v7773_v17 = vld [vmem:[#allocation11 + $0x100] sm:$0xff]  ;;  %v7779_v34 = vld [vmem:[#allocation11 + $0xe8] sm:$0xff]  ;;  %v7791_v8 = vld [vmem:[#allocation11 + $0xb8] sm:$0xff] }
 0x452   : > { %6235 = vtanh.f32 %v1928_v21  ;;  %v7785_v21 = vld [vmem:[#allocation11 + $0xd0] sm:$0xff] }
 0x45f   : > { %v6236_v55 = vpop.eup %6235 }
 0x460   : > { %v1931_v37 = vmul.f32 %v6236_v55, %v1930_v9  ;;  %v7797_v9 = vld [vmem:[#allocation11 + $0xa0] sm:$0xff]  ;;  %v7802_v55 = vld [vmem:[#allocation11 + $0x78] sm:$0xff] }
 0x462   : > { %v7622_v3 = vadd.f32 %v1932_v27, %v1931_v37  ;;  %v7805_v37 = vld [vmem:[#allocation11 + $0x88] sm:$0xff] }
 0x463   : > { %v7808_v27 = vld [vmem:[#allocation11 + $0x68] sm:$0xff] }
 0x464   : > { %9073 = vst [vmem:[#allocation25_spill] sm:$0xff] %v7622_v3  ;;  %2000 = vmatmul.mubr.f32.vlgmr.msra.gmra.mxu0 %v7622_v3  ;;  %5629 = vmatmul.mubr.f32.vlgmr.msra.gmra.mxu1 %v7622_v3 }
 0x465   : > { %2100 = vmatpush1.msra.mxu0 %v7626_v18  ;;  %5632 = vmatpush3.msra.mxu1 %v7629_v32 }
 0x466   : > { %2101 = vmatprep.subr.mxu0 %v7632_v33  ;;  %5633 = vmatprep.subr.mxu1 %v9055_v12 }
 0x467   : > { %2102 = vmatpush1.msra.mxu0 %v7636_v10  ;;  %5634 = vmatpush3.msra.mxu1 %v7639_v44 }
 0x468   : > { %2103 = vmatprep.subr.mxu0 %v7642_v52  ;;  %5635 = vmatprep.subr.mxu1 %v9055_v12 }
 0x469   : > { %2104 = vmatpush1.msra.mxu0 %v7646_v54  ;;  %5636 = vmatpush3.msra.mxu1 %v7649_v11 }
 0x46a   : > { %2105 = vmatprep.subr.mxu0 %v7652_v40  ;;  %5637 = vmatprep.subr.mxu1 %v9055_v12 }
 0x46b   : > { %2106 = vmatpush1.msra.mxu0 %v7656_v13  ;;  %5638 = vmatpush3.msra.mxu1 %v7659_v30 }
 0x46c   : > { %2107 = vmatprep.subr.mxu0 %v7662_v16  ;;  %5639 = vmatprep.subr.mxu1 %v9055_v12 }
 0x46d   : > { %2108 = vmatpush1.msra.mxu0 %v7666_v19  ;;  %5640 = vmatpush3.msra.mxu1 %v7107_v15  ;;  %v7686_v15 = vld [vmem:[#allocation11 + $0xc8] sm:$0xff] }
 0x46e   : > { %2109 = vmatprep.subr.mxu0 %v7670_v24  ;;  %5641 = vmatprep.subr.mxu1 %v9055_v12 }
 0x46f   : > { %2110 = vmatpush1.msra.mxu0 %v7674_v25  ;;  %5642 = vmatpush3.msra.mxu1 %v7121_v22  ;;  %v7694_v22 = vld [vmem:[#allocation11 + $0xb0] sm:$0xff] }
 0x470   : > { %2111 = vmatprep.subr.mxu0 %v7678_v38  ;;  %5643 = vmatprep.subr.mxu1 %v9055_v12 }
 0x471   : > { %2112 = vmatpush1.msra.mxu0 %v7682_v23  ;;  %5644 = vmatpush3.msra.mxu1 %v7155_v45  ;;  %v7702_v45 = vld [vmem:[#allocation11 + $0x98] sm:$0xff] }
 0x472   : > { %2113 = vmatprep.subr.mxu0 %v7686_v15  ;;  %5645 = vmatprep.subr.mxu1 %v9055_v12 }
 0x473   : > { %2114 = vmatpush1.msra.mxu0 %v7690_v26  ;;  %5646 = vmatpush3.msra.mxu1 %v7168_v49  ;;  %v7710_v49 = vld [vmem:[#allocation11 + $0x80] sm:$0xff] }
 0x474   : > { %2115 = vmatprep.subr.mxu0 %v7694_v22  ;;  %5647 = vmatprep.subr.mxu1 %v9055_v12 }
 0x475   : > { %2116 = vmatpush1.msra.mxu0 %v7698_v48  ;;  %5648 = vmatpush3.msra.mxu1 %v7189_v56 }
 0x476   : > { %2117 = vmatprep.subr.mxu0 %v7702_v45  ;;  %5649 = vmatprep.subr.mxu1 %v9055_v12 }
 0x477   : > { %2118 = vmatpush1.msra.mxu0 %v7706_v28  ;;  %5650 = vmatpush3.msra.mxu1 %v7195_v58 }
 0x478   : > { %2119 = vmatprep.subr.mxu0 %v7710_v49  ;;  %5651 = vmatprep.subr.mxu1 %v9055_v12 }
 0x479   : > { %2120 = vmatpush1.msra.mxu0 %v7128_v35  ;;  %5652 = vmatpush3.msra.mxu1 %v7200_v59 }
 0x47a   : > { %2121 = vmatprep.subr.mxu0 %v7132_v36  ;;  %5653 = vmatprep.subr.mxu1 %v9055_v12 }
 0x47b   : > { %2122 = vmatpush1.msra.mxu0 %v7139_v42  ;;  %5654 = vmatpush3.msra.mxu1 %v7206_v60  ;;  %v9074_v42 = vld [vmem:[#allocation31_spill] sm:$0xff] }
 0x47c   : > { %2123 = vmatprep.subr.mxu0 %v7143_v43  ;;  %5655 = vmatprep.subr.mxu1 %v9055_v12 }
 0x47d   : > { %2124 = vmatpush1.msra.mxu0 %v7150_v50  ;;  %5656 = vmatpush3.msra.mxu1 %v7214_v62 }
 0x47e   : > { %2125 = vmatprep.subr.mxu0 %v7157_v46  ;;  %5657 = vmatprep.subr.mxu1 %v9055_v12 }
 0x47f   : > { %2126 = vmatpush1.msra.mxu0 %v7162_v47  ;;  %5658 = vmatpush3.msra.mxu1 %v7219_v0 }
 0x480   : > { %2127 = vmatprep.subr.mxu0 %v7166_v39  ;;  %5659 = vmatprep.subr.mxu1 %v9055_v12  ;;  %v9075_v39 = vld [vmem:[#allocation33_spill] sm:$0xff] }
 0x481   : > { %2128 = vmatpush1.msra.mxu0 %v7172_v41  ;;  %5660 = vmatpush3.msra.mxu1 %v9065_v63 }
 0x482   : > { %2129 = vmatprep.subr.mxu0 %v9066_v2  ;;  %5661 = vmatprep.subr.mxu1 %v9055_v12 }
 0x483   : > { %2130 = vmatpush1.msra.mxu0 %v9067_v6  ;;  %2163 = vmatprep.mubr.f32.mxu0 %v9055_v12  ;;  %v9076_v6 = vld [vmem:[#allocation24_spill] sm:$0xff] }
 0x484   : > { %5662 = vmatpush3.msra.mxu1 %v9068_v7  ;;  %5663 = vmatprep.mubr.msk.f32.mxu1 %vm6720_vm2, %v9055_v12 }
 0x485   : > { %2263 = vmatprep.subr.mxu0 %v9069_v14  ;;  %5666 = vmatprep.subr.mxu1 %v9055_v12 }
 0x524   : > { %v2001_v35 = vpop.f32.mrf.mxu0  ;;  %v2072_v36 = vpop.f32.mrf.mxu1 }
 0x525   : > { %v2076_v43 = vadd.f32 %v2001_v35, %v9074_v42  ;;  %v2090_v0 = vadd.f32 %v7459_v4, %v2072_v36  ;;  %v7812_v35 = vld [vmem:[#allocation11 + $0x60] sm:$0xff]  ;;  %v7815_v36 = vld [vmem:[#allocation11 + $0x70] sm:$0xff] }
 0x526   : > { %v5630_v50 = vpop.f32.mrf.mxu1  ;;  %v2003_v47 = vpop.f32.mrf.mxu0  ;;  %v7818_v42 = vld [vmem:[#allocation11 + $0x50] sm:$0xff] }
 0x527   : > { %v4979_v46 = vmul.f32 -1.442695, %v2076_v43  ;;  %v2083_v41 = vadd.f32 %v2003_v47, %v9075_v39  ;;  %v7822_v43 = vld [vmem:[#allocation11 + $0x48] sm:$0xff]  ;;  %v7825_v50 = vld [vmem:[#allocation11 + $0x58] sm:$0xff]  ;;  %v7832_v47 = vld [vmem:[#allocation11 + $0x30] sm:$0xff] }
 0x528   : > { %v7835_v39 = vld [vmem:[#allocation11 + $0x40] sm:$0xff] }
 0x529   : > { %6237 = vpow2.f32 %v4979_v46  ;;  %v4980_v56 = vmul.f32 -1.442695, %v2083_v41  ;;  %v7828_v46 = vld [vmem:[#allocation11 + $0x38] sm:$0xff]  ;;  %v7838_v41 = vld [vmem:[#allocation11 + $0x20] sm:$0xff] }
 0x52b   : > { %6239 = vpow2.f32 %v4980_v56  ;;  %v7842_v56 = vld [vmem:[#allocation11 + $0x18] sm:$0xff] }
 0x536   : > { %v6238_v58 = vpop.eup %6237 }
 0x537   : > { %v2080_v59 = vadd.f32 1.0, %v6238_v58  ;;  %v7845_v58 = vld [vmem:[#allocation11 + $0x28] sm:$0xff] }
 0x538   : > { %v6240_v60 = vpop.eup %6239  ;;  %9078 = vst [vmem:[#allocation20_spill] sm:$0xff] %v7845_v58 }
 0x539   : > { %6241 = vrcp.f32 %v2080_v59  ;;  %v2087_v62 = vadd.f32 1.0, %v6240_v60  ;;  %v7848_v59 = vld [vmem:[#allocation11 + $0x8] sm:$0xff]  ;;  %v7852_v60 = vld [vmem:[#allocation11] sm:$0xff] }
 0x53a   : > { %9079 = vst [vmem:[#allocation18_spill] sm:$0xff] %v7848_v59  ;;  %9080 = vst [vmem:[#allocation19_spill] sm:$0xff] %v7852_v60 }
 0x53b   : > { %6243 = vrcp.f32 %v2087_v62  ;;  %v7856_v62 = vld [vmem:[#allocation11 + $0x10] sm:$0xff] }
 0x53c   : > { %9081 = vst [vmem:[#allocation21_spill] sm:$0xff] %v7856_v62 }
 0x546   : > { %v6242_v63 = vpop.eup %6241 }
 0x547   : > { %v2091_v2 = vmul.f32 %v6242_v63, %v2090_v0 }
 0x548   : > { %v6244_v51 = vpop.eup %6243 }
 0x549   : > { %v2092_v7 = vadd.f32 %v2091_v2, %v9076_v6  ;;  %v2094_v53 = vsub.f32 1.0, %v6244_v51  ;;  %v2096_v1 = vmul.f32 %v6244_v51, %v7622_v3  ;;  %v9082_v2 = vld [vmem:[#allocation35_spill] sm:$0xff] }
 0x54b   : > { %6245 = vtanh.f32 %v2092_v7 }
 0x558   : > { %v6246_v57 = vpop.eup %6245 }
 0x559   : > { %v2095_v61 = vmul.f32 %v6246_v57, %v2094_v53  ;;  %v9083_v57 = vld [vmem:[#allocation37_spill] sm:$0xff] }
 0x55b   : > { %v7746_v5 = vadd.f32 %v2096_v1, %v2095_v61 }
 0x55d   : > { %9077 = vst [vmem:[#allocation26_spill] sm:$0xff] %v7746_v5  ;;  %2164 = vmatmul.mubr.f32.vlgmr.msra.gmra.mxu0 %v7746_v5  ;;  %5664 = vmatmul.mubr.f32.vlgmr.msra.gmra.mxu1 %v7746_v5 }
 0x55e   : > { %2264 = vmatpush1.msra.mxu0 %v7626_v18  ;;  %5667 = vmatpush3.msra.mxu1 %v7629_v32 }
 0x55f   : > { %2265 = vmatprep.subr.mxu0 %v7632_v33  ;;  %5668 = vmatprep.subr.mxu1 %v9055_v12 }
 0x560   : > { %2266 = vmatpush1.msra.mxu0 %v7636_v10  ;;  %5669 = vmatpush3.msra.mxu1 %v7639_v44 }
 0x561   : > { %2267 = vmatprep.subr.mxu0 %v7642_v52  ;;  %5670 = vmatprep.subr.mxu1 %v9055_v12 }
 0x562   : > { %2268 = vmatpush1.msra.mxu0 %v7646_v54  ;;  %5671 = vmatpush3.msra.mxu1 %v7649_v11 }
 0x563   : > { %2269 = vmatprep.subr.mxu0 %v7652_v40  ;;  %5672 = vmatprep.subr.mxu1 %v9055_v12 }
 0x564   : > { %2270 = vmatpush1.msra.mxu0 %v7656_v13  ;;  %5673 = vmatpush3.msra.mxu1 %v7659_v30 }
 0x565   : > { %2271 = vmatprep.subr.mxu0 %v7662_v16  ;;  %5674 = vmatprep.subr.mxu1 %v9055_v12 }
 0x566   : > { %2272 = vmatpush1.msra.mxu0 %v7666_v19  ;;  %5675 = vmatpush3.msra.mxu1 %v7767_v29 }
 0x567   : > { %2273 = vmatprep.subr.mxu0 %v7670_v24  ;;  %5676 = vmatprep.subr.mxu1 %v9055_v12 }
 0x568   : > { %2274 = vmatpush1.msra.mxu0 %v7674_v25  ;;  %5677 = vmatpush3.msra.mxu1 %v7773_v17 }
 0x569   : > { %2275 = vmatprep.subr.mxu0 %v7678_v38  ;;  %5678 = vmatprep.subr.mxu1 %v9055_v12 }
 0x56a   : > { %2276 = vmatpush1.msra.mxu0 %v7682_v23  ;;  %5679 = vmatpush3.msra.mxu1 %v7779_v34 }
 0x56b   : > { %2277 = vmatprep.subr.mxu0 %v7686_v15  ;;  %5680 = vmatprep.subr.mxu1 %v9055_v12 }
 0x56c   : > { %2278 = vmatpush1.msra.mxu0 %v7690_v26  ;;  %5681 = vmatpush3.msra.mxu1 %v7785_v21 }
 0x56d   : > { %2279 = vmatprep.subr.mxu0 %v7694_v22  ;;  %5682 = vmatprep.subr.mxu1 %v9055_v12 }
 0x56e   : > { %2280 = vmatpush1.msra.mxu0 %v7698_v48  ;;  %5683 = vmatpush3.msra.mxu1 %v7791_v8 }
 0x56f   : > { %2281 = vmatprep.subr.mxu0 %v7702_v45  ;;  %5684 = vmatprep.subr.mxu1 %v9055_v12 }
 0x570   : > { %2282 = vmatpush1.msra.mxu0 %v7706_v28  ;;  %5685 = vmatpush3.msra.mxu1 %v7797_v9 }
 0x571   : > { %2283 = vmatprep.subr.mxu0 %v7710_v49  ;;  %5686 = vmatprep.subr.mxu1 %v9055_v12 }
 0x572   : > { %2284 = vmatpush1.msra.mxu0 %v7802_v55  ;;  %5687 = vmatpush3.msra.mxu1 %v7805_v37 }
 0x573   : > { %2285 = vmatprep.subr.mxu0 %v7808_v27  ;;  %5688 = vmatprep.subr.mxu1 %v9055_v12 }
 0x574   : > { %2286 = vmatpush1.msra.mxu0 %v7812_v35  ;;  %5689 = vmatpush3.msra.mxu1 %v7815_v36 }
 0x575   : > { %2287 = vmatprep.subr.mxu0 %v7818_v42  ;;  %5690 = vmatprep.subr.mxu1 %v9055_v12 }
 0x576   : > { %2288 = vmatpush1.msra.mxu0 %v7822_v43  ;;  %5691 = vmatpush3.msra.mxu1 %v7825_v50 }
 0x577   : > { %2289 = vmatprep.subr.mxu0 %v7828_v46  ;;  %5692 = vmatprep.subr.mxu1 %v9055_v12 }
 0x578   : > { %2290 = vmatpush1.msra.mxu0 %v7832_v47  ;;  %5693 = vmatpush3.msra.mxu1 %v7835_v39 }
 0x579   : > { %2291 = vmatprep.subr.mxu0 %v7838_v41  ;;  %5694 = vmatprep.subr.mxu1 %v9055_v12 }
 0x57a   : > { %2292 = vmatpush1.msra.mxu0 %v7842_v56  ;;  %5695 = vmatpush3.msra.mxu1 %v7845_v58  ;;  %v9084_v58 = vld [vmem:[#allocation30_spill] sm:$0xff] }
 0x57b   : > { %2293 = vmatprep.subr.mxu0 %v7848_v59  ;;  %5696 = vmatprep.subr.mxu1 %v9055_v12 }
 0x57c   : > { %2294 = vmatpush1.msra.mxu0 %v7852_v60  ;;  %2327 = vmatprep.mubr.f32.mxu0 %v9055_v12 }
 0x57d   : > { %5697 = vmatpush3.msra.mxu1 %v7856_v62  ;;  %5698 = vmatprep.mubr.msk.f32.mxu1 %vm6720_vm2, %v9055_v12 }
 0x57e   : > { %2427 = vmatprep.subr.mxu0 %v9069_v14  ;;  %5701 = vmatprep.subr.mxu1 %v9055_v12 }
 0x61d   : > { %v2165_v0 = vpop.f32.mrf.mxu0  ;;  %v2236_v63 = vpop.f32.mrf.mxu1 }
 0x61e   : > { %v2240_v6 = vadd.f32 %v2165_v0, %v9082_v2  ;;  %v2254_v14 = vadd.f32 %v7459_v4, %v2236_v63 }
 0x61f   : > { %v5665_v7 = vpop.f32.mrf.mxu1  ;;  %v2167_v53 = vpop.f32.mrf.mxu0 }
 0x620   : > { %v4981_v51 = vmul.f32 -1.442695, %v2240_v6  ;;  %v2247_v61 = vadd.f32 %v2167_v53, %v9083_v57 }
 0x622   : > { %6247 = vpow2.f32 %v4981_v51  ;;  %v4982_v1 = vmul.f32 -1.442695, %v2247_v61 }
 0x624   : > { %6249 = vpow2.f32 %v4982_v1 }
 0x62f   : > { %v6248_v3 = vpop.eup %6247 }
 0x630   : > { %v2244_v31 = vadd.f32 1.0, %v6248_v3  ;;  %v9089_v3 = vld [vmem:[#allocation21_spill] sm:$0xff] }
 0x631   : > { %v6250_v20 = vpop.eup %6249 }
 0x632   : > { %6251 = vrcp.f32 %v2244_v31  ;;  %v2251_v62 = vadd.f32 1.0, %v6250_v20  ;;  %v9086_v20 = vld [vmem:[#allocation20_spill] sm:$0xff]  ;;  %v9087_v31 = vld [vmem:[#allocation18_spill] sm:$0xff] }
 0x634   : > { %6253 = vrcp.f32 %v2251_v62  ;;  %v9091_v62 = vld [vmem:[#allocation39_spill] sm:$0xff] }
 0x63f   : > { %v6252_v60 = vpop.eup %6251 }
 0x640   : > { %v2255_v59 = vmul.f32 %v6252_v60, %v2254_v14  ;;  %v9088_v14 = vld [vmem:[#allocation19_spill] sm:$0xff] }
 0x641   : > { %v6254_v2 = vpop.eup %6253 }
 0x642   : > { %v2256_v0 = vadd.f32 %v2255_v59, %v9084_v58  ;;  %v2258_v6 = vsub.f32 1.0, %v6254_v2  ;;  %v2260_v53 = vmul.f32 %v6254_v2, %v7746_v5  ;;  %v9090_v58 = vld [vmem:[#allocation68_spill] sm:$0xff]  ;;  %v9092_v2 = vld [vmem:[#allocation41_spill] sm:$0xff] }
 0x644   : > { %6255 = vtanh.f32 %v2256_v0 }
 0x651   : > { %v6256_v7 = vpop.eup %6255 }
 0x652   : > { %v2259_v51 = vmul.f32 %v6256_v7, %v2258_v6 }
 0x654   : > { %v7868_v57 = vadd.f32 %v2260_v53, %v2259_v51 }
 0x656   : > { %9085 = vst [vmem:[#allocation27_spill] sm:$0xff] %v7868_v57  ;;  %2328 = vmatmul.mubr.f32.vlgmr.msra.gmra.mxu0 %v7868_v57  ;;  %5699 = vmatmul.mubr.f32.vlgmr.msra.gmra.mxu1 %v7868_v57 }
 0x657   : > { %2428 = vmatpush1.msra.mxu0 %v7626_v18  ;;  %5702 = vmatpush3.msra.mxu1 %v7629_v32 }
 0x658   : > { %2429 = vmatprep.subr.mxu0 %v7632_v33  ;;  %5703 = vmatprep.subr.mxu1 %v9055_v12 }
 0x659   : > { %2430 = vmatpush1.msra.mxu0 %v7636_v10  ;;  %5704 = vmatpush3.msra.mxu1 %v7639_v44 }
 0x65a   : > { %2431 = vmatprep.subr.mxu0 %v7642_v52  ;;  %5705 = vmatprep.subr.mxu1 %v9055_v12 }
 0x65b   : > { %2432 = vmatpush1.msra.mxu0 %v7646_v54  ;;  %5706 = vmatpush3.msra.mxu1 %v7649_v11 }
 0x65c   : > { %2433 = vmatprep.subr.mxu0 %v7652_v40  ;;  %5707 = vmatprep.subr.mxu1 %v9055_v12 }
 0x65d   : > { %2434 = vmatpush1.msra.mxu0 %v7656_v13  ;;  %5708 = vmatpush3.msra.mxu1 %v7659_v30 }
 0x65e   : > { %2435 = vmatprep.subr.mxu0 %v7662_v16  ;;  %5709 = vmatprep.subr.mxu1 %v9055_v12 }
 0x65f   : > { %2436 = vmatpush1.msra.mxu0 %v7666_v19  ;;  %5710 = vmatpush3.msra.mxu1 %v7767_v29 }
 0x660   : > { %2437 = vmatprep.subr.mxu0 %v7670_v24  ;;  %5711 = vmatprep.subr.mxu1 %v9055_v12 }
 0x661   : > { %2438 = vmatpush1.msra.mxu0 %v7674_v25  ;;  %5712 = vmatpush3.msra.mxu1 %v7773_v17 }
 0x662   : > { %2439 = vmatprep.subr.mxu0 %v7678_v38  ;;  %5713 = vmatprep.subr.mxu1 %v9055_v12 }
 0x663   : > { %2440 = vmatpush1.msra.mxu0 %v7682_v23  ;;  %5714 = vmatpush3.msra.mxu1 %v7779_v34 }
 0x664   : > { %2441 = vmatprep.subr.mxu0 %v7686_v15  ;;  %5715 = vmatprep.subr.mxu1 %v9055_v12 }
 0x665   : > { %2442 = vmatpush1.msra.mxu0 %v7690_v26  ;;  %5716 = vmatpush3.msra.mxu1 %v7785_v21 }
 0x666   : > { %2443 = vmatprep.subr.mxu0 %v7694_v22  ;;  %5717 = vmatprep.subr.mxu1 %v9055_v12 }
 0x667   : > { %2444 = vmatpush1.msra.mxu0 %v7698_v48  ;;  %5718 = vmatpush3.msra.mxu1 %v7791_v8 }
 0x668   : > { %2445 = vmatprep.subr.mxu0 %v7702_v45  ;;  %5719 = vmatprep.subr.mxu1 %v9055_v12 }
 0x669   : > { %2446 = vmatpush1.msra.mxu0 %v7706_v28  ;;  %5720 = vmatpush3.msra.mxu1 %v7797_v9 }
 0x66a   : > { %2447 = vmatprep.subr.mxu0 %v7710_v49  ;;  %5721 = vmatprep.subr.mxu1 %v9055_v12 }
 0x66b   : > { %2448 = vmatpush1.msra.mxu0 %v7802_v55  ;;  %5722 = vmatpush3.msra.mxu1 %v7805_v37 }
 0x66c   : > { %2449 = vmatprep.subr.mxu0 %v7808_v27  ;;  %5723 = vmatprep.subr.mxu1 %v9055_v12 }
 0x66d   : > { %2450 = vmatpush1.msra.mxu0 %v7812_v35  ;;  %5724 = vmatpush3.msra.mxu1 %v7815_v36 }
 0x66e   : > { %2451 = vmatprep.subr.mxu0 %v7818_v42  ;;  %5725 = vmatprep.subr.mxu1 %v9055_v12 }
 0x66f   : > { %2452 = vmatpush1.msra.mxu0 %v7822_v43  ;;  %5726 = vmatpush3.msra.mxu1 %v7825_v50 }
 0x670   : > { %2453 = vmatprep.subr.mxu0 %v7828_v46  ;;  %5727 = vmatprep.subr.mxu1 %v9055_v12 }
 0x671   : > { %2454 = vmatpush1.msra.mxu0 %v7832_v47  ;;  %5728 = vmatpush3.msra.mxu1 %v7835_v39 }
 0x672   : > { %2455 = vmatprep.subr.mxu0 %v7838_v41  ;;  %5729 = vmatprep.subr.mxu1 %v9055_v12 }
 0x673   : > { %2456 = vmatpush1.msra.mxu0 %v7842_v56  ;;  %5730 = vmatpush3.msra.mxu1 %v9086_v20  ;;  %v9093_v20 = vld [vmem:[#allocation34_spill] sm:$0xff] }
 0x674   : > { %2457 = vmatprep.subr.mxu0 %v9087_v31  ;;  %5731 = vmatprep.subr.mxu1 %v9055_v12 }
 0x675   : > { %2458 = vmatpush1.msra.mxu0 %v9088_v14  ;;  %2491 = vmatprep.mubr.f32.mxu0 %v9055_v12 }
 0x676   : > { %5732 = vmatpush3.msra.mxu1 %v9089_v3  ;;  %5733 = vmatprep.mubr.msk.f32.mxu1 %vm6720_vm2, %v9055_v12 }
 0x677   : > { %2591 = vmatprep.subr.mxu0 %v9090_v58  ;;  %5736 = vmatprep.subr.mxu1 %v9055_v12 }
 0x716   : > { %v2329_v59 = vpop.f32.mrf.mxu0  ;;  %v2400_v60 = vpop.f32.mrf.mxu1 }
 0x717   : > { %v2404_v63 = vadd.f32 %v2329_v59, %v9091_v62  ;;  %v2418_v58 = vadd.f32 %v7459_v4, %v2400_v60  ;;  %v9095_v4 = vld [vmem:[#allocation20_spill] sm:$0xff]  ;;  %v9100_v60 = vld [vmem:[#allocation43_spill] sm:$0xff] }
 0x718   : > { %v5700_v61 = vpop.f32.mrf.mxu1  ;;  %v2331_v0 = vpop.f32.mrf.mxu0 }
 0x719   : > { %v4983_v1 = vmul.f32 -1.442695, %v2404_v63  ;;  %v2411_v6 = vadd.f32 %v2331_v0, %v9092_v2 }
 0x71b   : > { %6257 = vpow2.f32 %v4983_v1  ;;  %v4984_v7 = vmul.f32 -1.442695, %v2411_v6 }
 0x71d   : > { %6259 = vpow2.f32 %v4984_v7 }
 0x728   : > { %v6258_v51 = vpop.eup %6257 }
 0x729   : > { %v2408_v53 = vadd.f32 1.0, %v6258_v51 }
 0x72a   : > { %v6260_v5 = vpop.eup %6259 }
 0x72b   : > { %6261 = vrcp.f32 %v2408_v53  ;;  %v2415_v3 = vadd.f32 1.0, %v6260_v5  ;;  %v9096_v5 = vld [vmem:[#allocation18_spill] sm:$0xff] }
 0x72d   : > { %6263 = vrcp.f32 %v2415_v3 }
 0x738   : > { %v6262_v14 = vpop.eup %6261 }
 0x739   : > { %v2419_v31 = vmul.f32 %v6262_v14, %v2418_v58  ;;  %v9099_v14 = vld [vmem:[#allocation68_spill] sm:$0xff] }
 0x73a   : > { %v6264_v62 = vpop.eup %6263 }
 0x73b   : > { %v2420_v59 = vadd.f32 %v2419_v31, %v9093_v20  ;;  %v2422_v63 = vsub.f32 1.0, %v6264_v62  ;;  %v2424_v0 = vmul.f32 %v6264_v62, %v7868_v57  ;;  %v9097_v20 = vld [vmem:[#allocation19_spill] sm:$0xff]  ;;  %v9098_v31 = vld [vmem:[#allocation21_spill] sm:$0xff] }
 0x73d   : > { %6265 = vtanh.f32 %v2420_v59  ;;  %v9101_v59 = vld [vmem:[#allocation45_spill] sm:$0xff] }
 0x74a   : > { %v6266_v61 = vpop.eup %6265 }
 0x74b   : > { %v2423_v1 = vmul.f32 %v6266_v61, %v2422_v63 }
 0x74d   : > { %v7944_v2 = vadd.f32 %v2424_v0, %v2423_v1 }
 0x74f   : > { %9094 = vst [vmem:[#allocation29_spill] sm:$0xff] %v7944_v2  ;;  %2492 = vmatmul.mubr.f32.vlgmr.msra.gmra.mxu0 %v7944_v2  ;;  %5734 = vmatmul.mubr.f32.vlgmr.msra.gmra.mxu1 %v7944_v2 }
 0x750   : > { %2592 = vmatpush1.msra.mxu0 %v7626_v18  ;;  %5737 = vmatpush3.msra.mxu1 %v7629_v32 }
 0x751   : > { %2593 = vmatprep.subr.mxu0 %v7632_v33  ;;  %5738 = vmatprep.subr.mxu1 %v9055_v12 }
 0x752   : > { %2594 = vmatpush1.msra.mxu0 %v7636_v10  ;;  %5739 = vmatpush3.msra.mxu1 %v7639_v44 }
 0x753   : > { %2595 = vmatprep.subr.mxu0 %v7642_v52  ;;  %5740 = vmatprep.subr.mxu1 %v9055_v12 }
 0x754   : > { %2596 = vmatpush1.msra.mxu0 %v7646_v54  ;;  %5741 = vmatpush3.msra.mxu1 %v7649_v11 }
 0x755   : > { %2597 = vmatprep.subr.mxu0 %v7652_v40  ;;  %5742 = vmatprep.subr.mxu1 %v9055_v12 }
 0x756   : > { %2598 = vmatpush1.msra.mxu0 %v7656_v13  ;;  %5743 = vmatpush3.msra.mxu1 %v7659_v30 }
 0x757   : > { %2599 = vmatprep.subr.mxu0 %v7662_v16  ;;  %5744 = vmatprep.subr.mxu1 %v9055_v12 }
 0x758   : > { %2600 = vmatpush1.msra.mxu0 %v7666_v19  ;;  %5745 = vmatpush3.msra.mxu1 %v7767_v29 }
 0x759   : > { %2601 = vmatprep.subr.mxu0 %v7670_v24  ;;  %5746 = vmatprep.subr.mxu1 %v9055_v12 }
 0x75a   : > { %2602 = vmatpush1.msra.mxu0 %v7674_v25  ;;  %5747 = vmatpush3.msra.mxu1 %v7773_v17 }
 0x75b   : > { %2603 = vmatprep.subr.mxu0 %v7678_v38  ;;  %5748 = vmatprep.subr.mxu1 %v9055_v12 }
 0x75c   : > { %2604 = vmatpush1.msra.mxu0 %v7682_v23  ;;  %5749 = vmatpush3.msra.mxu1 %v7779_v34 }
 0x75d   : > { %2605 = vmatprep.subr.mxu0 %v7686_v15  ;;  %5750 = vmatprep.subr.mxu1 %v9055_v12 }
 0x75e   : > { %2606 = vmatpush1.msra.mxu0 %v7690_v26  ;;  %5751 = vmatpush3.msra.mxu1 %v7785_v21 }
 0x75f   : > { %2607 = vmatprep.subr.mxu0 %v7694_v22  ;;  %5752 = vmatprep.subr.mxu1 %v9055_v12 }
 0x760   : > { %2608 = vmatpush1.msra.mxu0 %v7698_v48  ;;  %5753 = vmatpush3.msra.mxu1 %v7791_v8 }
 0x761   : > { %2609 = vmatprep.subr.mxu0 %v7702_v45  ;;  %5754 = vmatprep.subr.mxu1 %v9055_v12 }
 0x762   : > { %2610 = vmatpush1.msra.mxu0 %v7706_v28  ;;  %5755 = vmatpush3.msra.mxu1 %v7797_v9 }
 0x763   : > { %2611 = vmatprep.subr.mxu0 %v7710_v49  ;;  %5756 = vmatprep.subr.mxu1 %v9055_v12 }
 0x764   : > { %2612 = vmatpush1.msra.mxu0 %v7802_v55  ;;  %5757 = vmatpush3.msra.mxu1 %v7805_v37 }
 0x765   : > { %2613 = vmatprep.subr.mxu0 %v7808_v27  ;;  %5758 = vmatprep.subr.mxu1 %v9055_v12 }
 0x766   : > { %2614 = vmatpush1.msra.mxu0 %v7812_v35  ;;  %5759 = vmatpush3.msra.mxu1 %v7815_v36 }
 0x767   : > { %2615 = vmatprep.subr.mxu0 %v7818_v42  ;;  %5760 = vmatprep.subr.mxu1 %v9055_v12 }
 0x768   : > { %2616 = vmatpush1.msra.mxu0 %v7822_v43  ;;  %5761 = vmatpush3.msra.mxu1 %v7825_v50 }
 0x769   : > { %2617 = vmatprep.subr.mxu0 %v7828_v46  ;;  %5762 = vmatprep.subr.mxu1 %v9055_v12 }
 0x76a   : > { %2618 = vmatpush1.msra.mxu0 %v7832_v47  ;;  %5763 = vmatpush3.msra.mxu1 %v7835_v39 }
 0x76b   : > { %2619 = vmatprep.subr.mxu0 %v7838_v41  ;;  %5764 = vmatprep.subr.mxu1 %v9055_v12 }
 0x76c   : > { %2620 = vmatpush1.msra.mxu0 %v7842_v56  ;;  %5765 = vmatpush3.msra.mxu1 %v9095_v4 }
 0x76d   : > { %2621 = vmatprep.subr.mxu0 %v9096_v5  ;;  %5766 = vmatprep.subr.mxu1 %v9055_v12 }
 0x76e   : > { %2622 = vmatpush1.msra.mxu0 %v9097_v20  ;;  %2655 = vmatprep.mubr.f32.mxu0 %v9055_v12 }
 0x76f   : > { %5767 = vmatpush3.msra.mxu1 %v9098_v31  ;;  %5768 = vmatprep.mubr.msk.f32.mxu1 %vm6720_vm2, %v9055_v12 }
 0x770   : > { %2755 = vmatprep.subr.mxu0 %v9099_v14  ;;  %5771 = vmatprep.subr.mxu1 %v9055_v12  ;;  %v8020_v14 = vld [vmem:[%s8931_s6] ss:$0 sm:$0xff] }
 0x80f   : > { %v2493_v3 = vpop.f32.mrf.mxu0  ;;  %v2564_v58 = vpop.f32.mrf.mxu1 }
 0x810   : > { %v2568_v6 = vadd.f32 %v2493_v3, %v9100_v60  ;;  %v2582_v3 = vadd.f32 %v8020_v14, %v2564_v58 }
 0x811   : > { %v5735_v7 = vpop.f32.mrf.mxu1  ;;  %v2495_v53 = vpop.f32.mrf.mxu0 }
 0x812   : > { %v4985_v51 = vmul.f32 -1.442695, %v2568_v6  ;;  %v2575_v62 = vadd.f32 %v2495_v53, %v9101_v59  ;;  %v9102_v7 = vld [vmem:[#allocation28_spill] sm:$0xff] }
 0x814   : > { %6267 = vpow2.f32 %v4985_v51  ;;  %v4986_v63 = vmul.f32 -1.442695, %v2575_v62 }
 0x816   : > { %6269 = vpow2.f32 %v4986_v63 }
 0x821   : > { %v6268_v61 = vpop.eup %6267 }
 0x822   : > { %v2572_v1 = vadd.f32 1.0, %v6268_v61 }
 0x823   : > { %v6270_v0 = vpop.eup %6269 }
 0x824   : > { %6271 = vrcp.f32 %v2572_v1  ;;  %v2579_v57 = vadd.f32 1.0, %v6270_v0 }
 0x826   : > { %6273 = vrcp.f32 %v2579_v57  ;;  %v8094_v57 = vld [vmem:[#allocation11 + $0x170] sm:$0xff] }
 0x827   : > { %9104 = vst [vmem:[#allocation31_spill] sm:$0xff] %v8094_v57 }
 0x831   : > { %v6272_v60 = vpop.eup %6271 }
 0x832   : > { %v2583_v6 = vmul.f32 %v6272_v60, %v2582_v3  ;;  %v9105_v3 = vld [vmem:[#allocation47_spill] sm:$0xff] }
 0x833   : > { %v6274_v53 = vpop.eup %6273 }
 0x834   : > { %v2584_v51 = vadd.f32 %v2583_v6, %v9102_v7  ;;  %v2586_v59 = vsub.f32 1.0, %v6274_v53  ;;  %v2588_v61 = vmul.f32 %v6274_v53, %v7944_v2  ;;  %v9106_v53 = vld [vmem:[#allocation49_spill] sm:$0xff] }
 0x836   : > { %6275 = vtanh.f32 %v2584_v51 }
 0x843   : > { %v6276_v62 = vpop.eup %6275 }
 0x844   : > { %v2587_v63 = vmul.f32 %v6276_v62, %v2586_v59 }
 0x846   : > { %v8025_v1 = vadd.f32 %v2588_v61, %v2587_v63 }
 0x848   : > { %9103 = vst [vmem:[#allocation22_spill] sm:$0xff] %v8025_v1  ;;  %2656 = vmatmul.mubr.f32.vlgmr.msra.gmra.mxu0 %v8025_v1  ;;  %5769 = vmatmul.mubr.f32.vlgmr.msra.gmra.mxu1 %v8025_v1 }
 0x849   : > { %2756 = vmatpush1.msra.mxu0 %v7626_v18  ;;  %5772 = vmatpush3.msra.mxu1 %v7629_v32 }
 0x84a   : > { %2757 = vmatprep.subr.mxu0 %v7632_v33  ;;  %5773 = vmatprep.subr.mxu1 %v9055_v12 }
 0x84b   : > { %2758 = vmatpush1.msra.mxu0 %v7636_v10  ;;  %5774 = vmatpush3.msra.mxu1 %v7639_v44 }
 0x84c   : > { %2759 = vmatprep.subr.mxu0 %v7642_v52  ;;  %5775 = vmatprep.subr.mxu1 %v9055_v12 }
 0x84d   : > { %2760 = vmatpush1.msra.mxu0 %v7646_v54  ;;  %5776 = vmatpush3.msra.mxu1 %v7649_v11 }
 0x84e   : > { %2761 = vmatprep.subr.mxu0 %v7652_v40  ;;  %5777 = vmatprep.subr.mxu1 %v9055_v12 }
 0x84f   : > { %2762 = vmatpush1.msra.mxu0 %v7656_v13  ;;  %5778 = vmatpush3.msra.mxu1 %v7659_v30 }
 0x850   : > { %2763 = vmatprep.subr.mxu0 %v7662_v16  ;;  %5779 = vmatprep.subr.mxu1 %v9055_v12 }
 0x851   : > { %2764 = vmatpush1.msra.mxu0 %v7666_v19  ;;  %5780 = vmatpush3.msra.mxu1 %v7767_v29 }
 0x852   : > { %2765 = vmatprep.subr.mxu0 %v7670_v24  ;;  %5781 = vmatprep.subr.mxu1 %v9055_v12 }
 0x853   : > { %2766 = vmatpush1.msra.mxu0 %v7674_v25  ;;  %5782 = vmatpush3.msra.mxu1 %v7773_v17 }
 0x854   : > { %2767 = vmatprep.subr.mxu0 %v7678_v38  ;;  %5783 = vmatprep.subr.mxu1 %v9055_v12 }
 0x855   : > { %2768 = vmatpush1.msra.mxu0 %v7682_v23  ;;  %5784 = vmatpush3.msra.mxu1 %v7779_v34 }
 0x856   : > { %2769 = vmatprep.subr.mxu0 %v7686_v15  ;;  %5785 = vmatprep.subr.mxu1 %v9055_v12 }
 0x857   : > { %2770 = vmatpush1.msra.mxu0 %v7690_v26  ;;  %5786 = vmatpush3.msra.mxu1 %v7785_v21 }
 0x858   : > { %2771 = vmatprep.subr.mxu0 %v7694_v22  ;;  %5787 = vmatprep.subr.mxu1 %v9055_v12 }
 0x859   : > { %2772 = vmatpush1.msra.mxu0 %v7698_v48  ;;  %5788 = vmatpush3.msra.mxu1 %v7791_v8 }
 0x85a   : > { %2773 = vmatprep.subr.mxu0 %v7702_v45  ;;  %5789 = vmatprep.subr.mxu1 %v9055_v12 }
 0x85b   : > { %2774 = vmatpush1.msra.mxu0 %v7706_v28  ;;  %5790 = vmatpush3.msra.mxu1 %v7797_v9 }
 0x85c   : > { %2775 = vmatprep.subr.mxu0 %v7710_v49  ;;  %5791 = vmatprep.subr.mxu1 %v9055_v12 }
 0x85d   : > { %2776 = vmatpush1.msra.mxu0 %v7802_v55  ;;  %5792 = vmatpush3.msra.mxu1 %v7805_v37 }
 0x85e   : > { %2777 = vmatprep.subr.mxu0 %v7808_v27  ;;  %5793 = vmatprep.subr.mxu1 %v9055_v12 }
 0x85f   : > { %2778 = vmatpush1.msra.mxu0 %v7812_v35  ;;  %5794 = vmatpush3.msra.mxu1 %v7815_v36 }
 0x860   : > { %2779 = vmatprep.subr.mxu0 %v7818_v42  ;;  %5795 = vmatprep.subr.mxu1 %v9055_v12 }
 0x861   : > { %2780 = vmatpush1.msra.mxu0 %v7822_v43  ;;  %5796 = vmatpush3.msra.mxu1 %v7825_v50 }
 0x862   : > { %2781 = vmatprep.subr.mxu0 %v7828_v46  ;;  %5797 = vmatprep.subr.mxu1 %v9055_v12 }
 0x863   : > { %2782 = vmatpush1.msra.mxu0 %v7832_v47  ;;  %5798 = vmatpush3.msra.mxu1 %v7835_v39 }
 0x864   : > { %2783 = vmatprep.subr.mxu0 %v7838_v41  ;;  %5799 = vmatprep.subr.mxu1 %v9055_v12 }
 0x865   : > { %2784 = vmatpush1.msra.mxu0 %v7842_v56  ;;  %5800 = vmatpush3.msra.mxu1 %v9095_v4  ;;  %v9107_v4 = vld [vmem:[#allocation32_spill] sm:$0xff] }
 0x866   : > { %2785 = vmatprep.subr.mxu0 %v9096_v5  ;;  %5801 = vmatprep.subr.mxu1 %v9055_v12 }
 0x867   : > { %2786 = vmatpush1.msra.mxu0 %v9097_v20  ;;  %2819 = vmatprep.mubr.f32.mxu0 %v9055_v12 }
 0x868   : > { %5802 = vmatpush3.msra.mxu1 %v9098_v31  ;;  %5803 = vmatprep.mubr.msk.f32.mxu1 %vm6720_vm2, %v9055_v12 }
 0x869   : > { %2919 = vmatprep.subr.mxu0 %v8094_v57  ;;  %5806 = vmatprep.subr.mxu1 %v9055_v12 }
 0x908   : > { %v2657_v58 = vpop.f32.mrf.mxu0  ;;  %v2728_v0 = vpop.f32.mrf.mxu1 }
 0x909   : > { %v2732_v60 = vadd.f32 %v2657_v58, %v9105_v3  ;;  %v2746_v57 = vadd.f32 %v8020_v14, %v2728_v0  ;;  %v8183_v0 = vld [vmem:[#allocation11 + $0x168] sm:$0xff] }
 0x90a   : > { %v5770_v6 = vpop.f32.mrf.mxu1  ;;  %v2659_v51 = vpop.f32.mrf.mxu0 }
 0x90b   : > { %v4987_v7 = vmul.f32 -1.442695, %v2732_v60  ;;  %v2739_v59 = vadd.f32 %v2659_v51, %v9106_v53 }
 0x90d   : > { %6277 = vpow2.f32 %v4987_v7  ;;  %v4988_v62 = vmul.f32 -1.442695, %v2739_v59  ;;  %v8186_v59 = vld [vmem:[#allocation11 + $0x178] sm:$0xff] }
 0x90f   : > { %6279 = vpow2.f32 %v4988_v62  ;;  %v8189_v62 = vld [vmem:[#allocation11 + $0x158] sm:$0xff] }
 0x91a   : > { %v6278_v63 = vpop.eup %6277 }
 0x91b   : > { %v2736_v61 = vadd.f32 1.0, %v6278_v63  ;;  %v8193_v63 = vld [vmem:[#allocation11 + $0x150] sm:$0xff] }
 0x91c   : > { %v6280_v2 = vpop.eup %6279 }
 0x91d   : > { %6281 = vrcp.f32 %v2736_v61  ;;  %v2743_v31 = vadd.f32 1.0, %v6280_v2  ;;  %v8196_v61 = vld [vmem:[#allocation11 + $0x160] sm:$0xff] }
 0x91f   : > { %6283 = vrcp.f32 %v2743_v31 }
 0x92a   : > { %v6282_v20 = vpop.eup %6281 }
 0x92b   : > { %v2747_v5 = vmul.f32 %v6282_v20, %v2746_v57 }
 0x92c   : > { %v6284_v3 = vpop.eup %6283 }
 0x92d   : > { %v2748_v58 = vadd.f32 %v2747_v5, %v9107_v4  ;;  %v2750_v60 = vsub.f32 1.0, %v6284_v3  ;;  %v2752_v51 = vmul.f32 %v6284_v3, %v8025_v1  ;;  %v8203_v3 = vld [vmem:[#allocation11 + $0x138] sm:$0xff] }
 0x92f   : > { %6285 = vtanh.f32 %v2748_v58  ;;  %v8199_v58 = vld [vmem:[#allocation11 + $0x140] sm:$0xff] }
 0x93c   : > { %v6286_v6 = vpop.eup %6285 }
 0x93d   : > { %v2751_v7 = vmul.f32 %v6286_v6, %v2750_v60  ;;  %v8206_v60 = vld [vmem:[#allocation11 + $0x148] sm:$0xff] }
 0x93e   : > { %v8209_v6 = vld [vmem:[#allocation11 + $0x128] sm:$0xff] }
 0x93f   : > { %v8103_v53 = vadd.f32 %v2752_v51, %v2751_v7  ;;  %v8213_v7 = vld [vmem:[#allocation11 + $0x120] sm:$0xff]  ;;  %v8216_v51 = vld [vmem:[#allocation11 + $0x130] sm:$0xff] }
 0x941   : > { %9108 = vst [vmem:[#allocation33_spill] sm:$0xff] %v8103_v53  ;;  %2820 = vmatmul.mubr.f32.vlgmr.msra.gmra.mxu0 %v8103_v53  ;;  %5804 = vmatmul.mubr.f32.vlgmr.msra.gmra.mxu1 %v8103_v53 }
 0x942   : > { %2920 = vmatpush1.msra.mxu0 %v7626_v18  ;;  %5807 = vmatpush3.msra.mxu1 %v7629_v32  ;;  %v9109_v18 = vld [vmem:[#allocation20_spill] sm:$0xff]  ;;  %v9110_v32 = vld [vmem:[#allocation18_spill] sm:$0xff] }
 0x943   : > { %2921 = vmatprep.subr.mxu0 %v7632_v33  ;;  %5808 = vmatprep.subr.mxu1 %v9055_v12  ;;  %v9111_v33 = vld [vmem:[#allocation19_spill] sm:$0xff] }
 0x944   : > { %2922 = vmatpush1.msra.mxu0 %v7636_v10  ;;  %5809 = vmatpush3.msra.mxu1 %v7639_v44  ;;  %v9112_v10 = vld [vmem:[#allocation21_spill] sm:$0xff]  ;;  %v9113_v44 = vld [vmem:[#allocation31_spill] sm:$0xff] }
 0x945   : > { %2923 = vmatprep.subr.mxu0 %v7642_v52  ;;  %5810 = vmatprep.subr.mxu1 %v9055_v12 }
 0x946   : > { %2924 = vmatpush1.msra.mxu0 %v7646_v54  ;;  %5811 = vmatpush3.msra.mxu1 %v7649_v11  ;;  %v9114_v11 = vld [vmem:[#allocation51_spill] sm:$0xff] }
 0x947   : > { %2925 = vmatprep.subr.mxu0 %v7652_v40  ;;  %5812 = vmatprep.subr.mxu1 %v9055_v12 }
 0x948   : > { %2926 = vmatpush1.msra.mxu0 %v7656_v13  ;;  %5813 = vmatpush3.msra.mxu1 %v7659_v30 }
 0x949   : > { %2927 = vmatprep.subr.mxu0 %v7662_v16  ;;  %5814 = vmatprep.subr.mxu1 %v9055_v12 }
 0x94a   : > { %2928 = vmatpush1.msra.mxu0 %v7666_v19  ;;  %5815 = vmatpush3.msra.mxu1 %v7767_v29  ;;  %v9115_v19 = vld [vmem:[#allocation52_spill] sm:$0xff] }
 0x94b   : > { %2929 = vmatprep.subr.mxu0 %v7670_v24  ;;  %5816 = vmatprep.subr.mxu1 %v9055_v12 }
 0x94c   : > { %2930 = vmatpush1.msra.mxu0 %v7674_v25  ;;  %5817 = vmatpush3.msra.mxu1 %v7773_v17 }
 0x94d   : > { %2931 = vmatprep.subr.mxu0 %v7678_v38  ;;  %5818 = vmatprep.subr.mxu1 %v9055_v12 }
 0x94e   : > { %2932 = vmatpush1.msra.mxu0 %v7682_v23  ;;  %5819 = vmatpush3.msra.mxu1 %v7779_v34 }
 0x94f   : > { %2933 = vmatprep.subr.mxu0 %v7686_v15  ;;  %5820 = vmatprep.subr.mxu1 %v9055_v12 }
 0x950   : > { %2934 = vmatpush1.msra.mxu0 %v7690_v26  ;;  %5821 = vmatpush3.msra.mxu1 %v7785_v21 }
 0x951   : > { %2935 = vmatprep.subr.mxu0 %v7694_v22  ;;  %5822 = vmatprep.subr.mxu1 %v9055_v12 }
 0x952   : > { %2936 = vmatpush1.msra.mxu0 %v7698_v48  ;;  %5823 = vmatpush3.msra.mxu1 %v7791_v8 }
 0x953   : > { %2937 = vmatprep.subr.mxu0 %v7702_v45  ;;  %5824 = vmatprep.subr.mxu1 %v9055_v12 }
 0x954   : > { %2938 = vmatpush1.msra.mxu0 %v7706_v28  ;;  %5825 = vmatpush3.msra.mxu1 %v7797_v9  ;;  %v9116_v28 = vld [vmem:[#allocation38_spill] sm:$0xff] }
 0x955   : > { %2939 = vmatprep.subr.mxu0 %v7710_v49  ;;  %5826 = vmatprep.subr.mxu1 %v9055_v12 }
 0x956   : > { %2940 = vmatpush1.msra.mxu0 %v7802_v55  ;;  %5827 = vmatpush3.msra.mxu1 %v7805_v37 }
 0x957   : > { %2941 = vmatprep.subr.mxu0 %v7808_v27  ;;  %5828 = vmatprep.subr.mxu1 %v9055_v12 }
 0x958   : > { %2942 = vmatpush1.msra.mxu0 %v7812_v35  ;;  %5829 = vmatpush3.msra.mxu1 %v7815_v36 }
 0x959   : > { %2943 = vmatprep.subr.mxu0 %v7818_v42  ;;  %5830 = vmatprep.subr.mxu1 %v9055_v12 }
 0x95a   : > { %2944 = vmatpush1.msra.mxu0 %v7822_v43  ;;  %5831 = vmatpush3.msra.mxu1 %v7825_v50 }
 0x95b   : > { %2945 = vmatprep.subr.mxu0 %v7828_v46  ;;  %5832 = vmatprep.subr.mxu1 %v9055_v12 }
 0x95c   : > { %2946 = vmatpush1.msra.mxu0 %v7832_v47  ;;  %5833 = vmatpush3.msra.mxu1 %v7835_v39 }
 0x95d   : > { %2947 = vmatprep.subr.mxu0 %v7838_v41  ;;  %5834 = vmatprep.subr.mxu1 %v9055_v12 }
 0x95e   : > { %2948 = vmatpush1.msra.mxu0 %v7842_v56  ;;  %5835 = vmatpush3.msra.mxu1 %v9109_v18 }
 0x95f   : > { %2949 = vmatprep.subr.mxu0 %v9110_v32  ;;  %5836 = vmatprep.subr.mxu1 %v9055_v12 }
 0x960   : > { %2950 = vmatpush1.msra.mxu0 %v9111_v33  ;;  %2983 = vmatprep.mubr.f32.mxu0 %v9055_v12 }
 0x961   : > { %5837 = vmatpush3.msra.mxu1 %v9112_v10  ;;  %5838 = vmatprep.mubr.msk.f32.mxu1 %vm6720_vm2, %v9055_v12 }
 0x962   : > { %3083 = vmatprep.subr.mxu0 %v9113_v44  ;;  %5841 = vmatprep.subr.mxu1 %v9055_v12 }
 0xa01   : > { %v2821_v52 = vpop.f32.mrf.mxu0  ;;  %v2892_v54 = vpop.f32.mrf.mxu1 }
 0xa02   : > { %v2896_v40 = vadd.f32 %v2821_v52, %v9114_v11  ;;  %v2910_v22 = vadd.f32 %v8020_v14, %v2892_v54  ;;  %v8219_v52 = vld [vmem:[#allocation11 + $0x110] sm:$0xff]  ;;  %v8223_v54 = vld [vmem:[#allocation11 + $0x108] sm:$0xff]  ;;  %v8227_v11 = vld [vmem:[#allocation11 + $0xf8] sm:$0xff] }
 0xa03   : > { %v5805_v13 = vpop.f32.mrf.mxu1  ;;  %v2823_v16 = vpop.f32.mrf.mxu0 }
 0xa04   : > { %v4989_v30 = vmul.f32 -1.442695, %v2896_v40  ;;  %v2903_v24 = vadd.f32 %v2823_v16, %v9115_v19  ;;  %v8231_v40 = vld [vmem:[#allocation11 + $0xf0] sm:$0xff]  ;;  %v8235_v13 = vld [vmem:[#allocation11 + $0xe0] sm:$0xff]  ;;  %v8255_v19 = vld [vmem:[#allocation11 + $0xa8] sm:$0xff] }
 0xa05   : > { %v8247_v16 = vld [vmem:[#allocation11 + $0xc0] sm:$0xff] }
 0xa06   : > { %6287 = vpow2.f32 %v4989_v30  ;;  %v4990_v25 = vmul.f32 -1.442695, %v2903_v24  ;;  %v8239_v30 = vld [vmem:[#allocation11 + $0xd8] sm:$0xff]  ;;  %v8263_v24 = vld [vmem:[#allocation11 + $0x90] sm:$0xff] }
 0xa08   : > { %6289 = vpow2.f32 %v4990_v25 }
 0xa13   : > { %v6288_v38 = vpop.eup %6287 }
 0xa14   : > { %v2900_v23 = vadd.f32 1.0, %v6288_v38 }
 0xa15   : > { %v6290_v15 = vpop.eup %6289 }
 0xa16   : > { %6291 = vrcp.f32 %v2900_v23  ;;  %v2907_v26 = vadd.f32 1.0, %v6290_v15 }
 0xa18   : > { %6293 = vrcp.f32 %v2907_v26 }
 0xa23   : > { %v6292_v48 = vpop.eup %6291 }
 0xa24   : > { %v2911_v45 = vmul.f32 %v6292_v48, %v2910_v22  ;;  %v8324_v48 = vld [vmem:[#allocation11 + $0x118] sm:$0xff] }
 0xa25   : > { %v6294_v2 = vpop.eup %6293 }
 0xa26   : > { %v2912_v49 = vadd.f32 %v2911_v45, %v9116_v28  ;;  %v2914_v4 = vsub.f32 1.0, %v6294_v2  ;;  %v2916_v31 = vmul.f32 %v6294_v2, %v8103_v53  ;;  %v8330_v45 = vld [vmem:[#allocation11 + $0x100] sm:$0xff]  ;;  %v8336_v28 = vld [vmem:[#allocation11 + $0xe8] sm:$0xff]  ;;  %v8348_v2 = vld [vmem:[#allocation11 + $0xb8] sm:$0xff] }
 0xa28   : > { %6295 = vtanh.f32 %v2912_v49  ;;  %v8342_v49 = vld [vmem:[#allocation11 + $0xd0] sm:$0xff] }
 0xa35   : > { %v6296_v5 = vpop.eup %6295 }
 0xa36   : > { %v2915_v20 = vmul.f32 %v6296_v5, %v2914_v4  ;;  %v8354_v4 = vld [vmem:[#allocation11 + $0xa0] sm:$0xff]  ;;  %v8359_v5 = vld [vmem:[#allocation11 + $0x78] sm:$0xff] }
 0xa38   : > { %v8179_v57 = vadd.f32 %v2916_v31, %v2915_v20  ;;  %v8362_v20 = vld [vmem:[#allocation11 + $0x88] sm:$0xff] }
 0xa39   : > { %v8365_v31 = vld [vmem:[#allocation11 + $0x68] sm:$0xff] }
 0xa3a   : > { %9117 = vst [vmem:[#allocation24_spill] sm:$0xff] %v8179_v57  ;;  %2984 = vmatmul.mubr.f32.vlgmr.msra.gmra.mxu0 %v8179_v57  ;;  %5839 = vmatmul.mubr.f32.vlgmr.msra.gmra.mxu1 %v8179_v57 }
 0xa3b   : > { %3084 = vmatpush1.msra.mxu0 %v8183_v0  ;;  %5842 = vmatpush3.msra.mxu1 %v8186_v59 }
 0xa3c   : > { %3085 = vmatprep.subr.mxu0 %v8189_v62  ;;  %5843 = vmatprep.subr.mxu1 %v9055_v12 }
 0xa3d   : > { %3086 = vmatpush1.msra.mxu0 %v8193_v63  ;;  %5844 = vmatpush3.msra.mxu1 %v8196_v61 }
 0xa3e   : > { %3087 = vmatprep.subr.mxu0 %v8199_v58  ;;  %5845 = vmatprep.subr.mxu1 %v9055_v12 }
 0xa3f   : > { %3088 = vmatpush1.msra.mxu0 %v8203_v3  ;;  %5846 = vmatpush3.msra.mxu1 %v8206_v60 }
 0xa40   : > { %3089 = vmatprep.subr.mxu0 %v8209_v6  ;;  %5847 = vmatprep.subr.mxu1 %v9055_v12 }
 0xa41   : > { %3090 = vmatpush1.msra.mxu0 %v8213_v7  ;;  %5848 = vmatpush3.msra.mxu1 %v8216_v51 }
 0xa42   : > { %3091 = vmatprep.subr.mxu0 %v8219_v52  ;;  %5849 = vmatprep.subr.mxu1 %v9055_v12 }
 0xa43   : > { %3092 = vmatpush1.msra.mxu0 %v8223_v54  ;;  %5850 = vmatpush3.msra.mxu1 %v7767_v29  ;;  %v8243_v29 = vld [vmem:[#allocation11 + $0xc8] sm:$0xff] }
 0xa44   : > { %3093 = vmatprep.subr.mxu0 %v8227_v11  ;;  %5851 = vmatprep.subr.mxu1 %v9055_v12 }
 0xa45   : > { %3094 = vmatpush1.msra.mxu0 %v8231_v40  ;;  %5852 = vmatpush3.msra.mxu1 %v7773_v17  ;;  %v8251_v17 = vld [vmem:[#allocation11 + $0xb0] sm:$0xff] }
 0xa46   : > { %3095 = vmatprep.subr.mxu0 %v8235_v13  ;;  %5853 = vmatprep.subr.mxu1 %v9055_v12 }
 0xa47   : > { %3096 = vmatpush1.msra.mxu0 %v8239_v30  ;;  %5854 = vmatpush3.msra.mxu1 %v7779_v34  ;;  %v8259_v34 = vld [vmem:[#allocation11 + $0x98] sm:$0xff] }
 0xa48   : > { %3097 = vmatprep.subr.mxu0 %v8243_v29  ;;  %5855 = vmatprep.subr.mxu1 %v9055_v12 }
 0xa49   : > { %3098 = vmatpush1.msra.mxu0 %v8247_v16  ;;  %5856 = vmatpush3.msra.mxu1 %v7785_v21  ;;  %v8267_v21 = vld [vmem:[#allocation11 + $0x80] sm:$0xff] }
 0xa4a   : > { %3099 = vmatprep.subr.mxu0 %v8251_v17  ;;  %5857 = vmatprep.subr.mxu1 %v9055_v12 }
 0xa4b   : > { %3100 = vmatpush1.msra.mxu0 %v8255_v19  ;;  %5858 = vmatpush3.msra.mxu1 %v7791_v8 }
 0xa4c   : > { %3101 = vmatprep.subr.mxu0 %v8259_v34  ;;  %5859 = vmatprep.subr.mxu1 %v9055_v12 }
 0xa4d   : > { %3102 = vmatpush1.msra.mxu0 %v8263_v24  ;;  %5860 = vmatpush3.msra.mxu1 %v7797_v9 }
 0xa4e   : > { %3103 = vmatprep.subr.mxu0 %v8267_v21  ;;  %5861 = vmatprep.subr.mxu1 %v9055_v12 }
 0xa4f   : > { %3104 = vmatpush1.msra.mxu0 %v7802_v55  ;;  %5862 = vmatpush3.msra.mxu1 %v7805_v37  ;;  %v9118_v55 = vld [vmem:[#allocation53_spill] sm:$0xff] }
 0xa50   : > { %3105 = vmatprep.subr.mxu0 %v7808_v27  ;;  %5863 = vmatprep.subr.mxu1 %v9055_v12 }
 0xa51   : > { %3106 = vmatpush1.msra.mxu0 %v7812_v35  ;;  %5864 = vmatpush3.msra.mxu1 %v7815_v36 }
 0xa52   : > { %3107 = vmatprep.subr.mxu0 %v7818_v42  ;;  %5865 = vmatprep.subr.mxu1 %v9055_v12  ;;  %v9119_v42 = vld [vmem:[#allocation54_spill] sm:$0xff] }
 0xa53   : > { %3108 = vmatpush1.msra.mxu0 %v7822_v43  ;;  %5866 = vmatpush3.msra.mxu1 %v7825_v50 }
 0xa54   : > { %3109 = vmatprep.subr.mxu0 %v7828_v46  ;;  %5867 = vmatprep.subr.mxu1 %v9055_v12 }
 0xa55   : > { %3110 = vmatpush1.msra.mxu0 %v7832_v47  ;;  %5868 = vmatpush3.msra.mxu1 %v7835_v39 }
 0xa56   : > { %3111 = vmatprep.subr.mxu0 %v7838_v41  ;;  %5869 = vmatprep.subr.mxu1 %v9055_v12 }
 0xa57   : > { %3112 = vmatpush1.msra.mxu0 %v7842_v56  ;;  %5870 = vmatpush3.msra.mxu1 %v9109_v18 }
 0xa58   : > { %3113 = vmatprep.subr.mxu0 %v9110_v32  ;;  %5871 = vmatprep.subr.mxu1 %v9055_v12 }
 0xa59   : > { %3114 = vmatpush1.msra.mxu0 %v9111_v33  ;;  %3147 = vmatprep.mubr.f32.mxu0 %v9055_v12  ;;  %v9120_v33 = vld [vmem:[#allocation42_spill] sm:$0xff] }
 0xa5a   : > { %5872 = vmatpush3.msra.mxu1 %v9112_v10  ;;  %5873 = vmatprep.mubr.msk.f32.mxu1 %vm6720_vm2, %v9055_v12 }
 0xa5b   : > { %3247 = vmatprep.subr.mxu0 %v9113_v44  ;;  %5876 = vmatprep.subr.mxu1 %v9055_v12 }
 0xafa   : > { %v2985_v8 = vpop.f32.mrf.mxu0  ;;  %v3056_v9 = vpop.f32.mrf.mxu1 }
 0xafb   : > { %v3060_v37 = vadd.f32 %v2985_v8, %v9118_v55  ;;  %v3074_v56 = vadd.f32 %v8020_v14, %v3056_v9  ;;  %v8369_v8 = vld [vmem:[#allocation11 + $0x60] sm:$0xff]  ;;  %v8372_v9 = vld [vmem:[#allocation11 + $0x70] sm:$0xff] }
 0xafc   : > { %v5840_v27 = vpop.f32.mrf.mxu1  ;;  %v2987_v36 = vpop.f32.mrf.mxu0  ;;  %v8375_v55 = vld [vmem:[#allocation11 + $0x50] sm:$0xff] }
 0xafd   : > { %v4991_v35 = vmul.f32 -1.442695, %v3060_v37  ;;  %v3067_v43 = vadd.f32 %v2987_v36, %v9119_v42  ;;  %v8379_v37 = vld [vmem:[#allocation11 + $0x48] sm:$0xff]  ;;  %v8382_v27 = vld [vmem:[#allocation11 + $0x58] sm:$0xff]  ;;  %v8389_v36 = vld [vmem:[#allocation11 + $0x30] sm:$0xff] }
 0xafe   : > { %v8392_v42 = vld [vmem:[#allocation11 + $0x40] sm:$0xff] }
 0xaff   : > { %6297 = vpow2.f32 %v4991_v35  ;;  %v4992_v50 = vmul.f32 -1.442695, %v3067_v43  ;;  %v8385_v35 = vld [vmem:[#allocation11 + $0x38] sm:$0xff]  ;;  %v8395_v43 = vld [vmem:[#allocation11 + $0x20] sm:$0xff] }
 0xb01   : > { %6299 = vpow2.f32 %v4992_v50  ;;  %v8399_v50 = vld [vmem:[#allocation11 + $0x18] sm:$0xff] }
 0xb0c   : > { %v6298_v46 = vpop.eup %6297 }
 0xb0d   : > { %v3064_v47 = vadd.f32 1.0, %v6298_v46  ;;  %v8402_v46 = vld [vmem:[#allocation11 + $0x28] sm:$0xff] }
 0xb0e   : > { %v6300_v39 = vpop.eup %6299  ;;  %9122 = vst [vmem:[#allocation37_spill] sm:$0xff] %v8402_v46 }
 0xb0f   : > { %6301 = vrcp.f32 %v3064_v47  ;;  %v3071_v41 = vadd.f32 1.0, %v6300_v39  ;;  %v8405_v47 = vld [vmem:[#allocation11 + $0x8] sm:$0xff]  ;;  %v8409_v39 = vld [vmem:[#allocation11] sm:$0xff] }
 0xb10   : > { %9123 = vst [vmem:[#allocation30_spill] sm:$0xff] %v8405_v47  ;;  %9124 = vst [vmem:[#allocation39_spill] sm:$0xff] %v8409_v39 }
 0xb11   : > { %6303 = vrcp.f32 %v3071_v41  ;;  %v8413_v41 = vld [vmem:[#allocation11 + $0x10] sm:$0xff] }
 0xb12   : > { %9125 = vst [vmem:[#allocation41_spill] sm:$0xff] %v8413_v41 }
 0xb1c   : > { %v6302_v18 = vpop.eup %6301 }
 0xb1d   : > { %v3075_v32 = vmul.f32 %v6302_v18, %v3074_v56 }
 0xb1e   : > { %v6304_v25 = vpop.eup %6303 }
 0xb1f   : > { %v3076_v10 = vadd.f32 %v3075_v32, %v9120_v33  ;;  %v3078_v38 = vsub.f32 1.0, %v6304_v25  ;;  %v3080_v26 = vmul.f32 %v6304_v25, %v8179_v57  ;;  %v9126_v32 = vld [vmem:[#allocation55_spill] sm:$0xff] }
 0xb21   : > { %6305 = vtanh.f32 %v3076_v10 }
 0xb2e   : > { %v6306_v23 = vpop.eup %6305 }
 0xb2f   : > { %v3079_v15 = vmul.f32 %v6306_v23, %v3078_v38  ;;  %v9127_v23 = vld [vmem:[#allocation56_spill] sm:$0xff] }
 0xb31   : > { %v8303_v22 = vadd.f32 %v3080_v26, %v3079_v15 }
 0xb33   : > { %9121 = vst [vmem:[#allocation35_spill] sm:$0xff] %v8303_v22  ;;  %3148 = vmatmul.mubr.f32.vlgmr.msra.gmra.mxu0 %v8303_v22  ;;  %5874 = vmatmul.mubr.f32.vlgmr.msra.gmra.mxu1 %v8303_v22 }
 0xb34   : > { %3248 = vmatpush1.msra.mxu0 %v8183_v0  ;;  %5877 = vmatpush3.msra.mxu1 %v8186_v59 }
 0xb35   : > { %3249 = vmatprep.subr.mxu0 %v8189_v62  ;;  %5878 = vmatprep.subr.mxu1 %v9055_v12 }
 0xb36   : > { %3250 = vmatpush1.msra.mxu0 %v8193_v63  ;;  %5879 = vmatpush3.msra.mxu1 %v8196_v61 }
 0xb37   : > { %3251 = vmatprep.subr.mxu0 %v8199_v58  ;;  %5880 = vmatprep.subr.mxu1 %v9055_v12 }
 0xb38   : > { %3252 = vmatpush1.msra.mxu0 %v8203_v3  ;;  %5881 = vmatpush3.msra.mxu1 %v8206_v60 }
 0xb39   : > { %3253 = vmatprep.subr.mxu0 %v8209_v6  ;;  %5882 = vmatprep.subr.mxu1 %v9055_v12 }
 0xb3a   : > { %3254 = vmatpush1.msra.mxu0 %v8213_v7  ;;  %5883 = vmatpush3.msra.mxu1 %v8216_v51 }
 0xb3b   : > { %3255 = vmatprep.subr.mxu0 %v8219_v52  ;;  %5884 = vmatprep.subr.mxu1 %v9055_v12 }
 0xb3c   : > { %3256 = vmatpush1.msra.mxu0 %v8223_v54  ;;  %5885 = vmatpush3.msra.mxu1 %v8324_v48 }
 0xb3d   : > { %3257 = vmatprep.subr.mxu0 %v8227_v11  ;;  %5886 = vmatprep.subr.mxu1 %v9055_v12 }
 0xb3e   : > { %3258 = vmatpush1.msra.mxu0 %v8231_v40  ;;  %5887 = vmatpush3.msra.mxu1 %v8330_v45 }
 0xb3f   : > { %3259 = vmatprep.subr.mxu0 %v8235_v13  ;;  %5888 = vmatprep.subr.mxu1 %v9055_v12 }
 0xb40   : > { %3260 = vmatpush1.msra.mxu0 %v8239_v30  ;;  %5889 = vmatpush3.msra.mxu1 %v8336_v28 }
 0xb41   : > { %3261 = vmatprep.subr.mxu0 %v8243_v29  ;;  %5890 = vmatprep.subr.mxu1 %v9055_v12 }
 0xb42   : > { %3262 = vmatpush1.msra.mxu0 %v8247_v16  ;;  %5891 = vmatpush3.msra.mxu1 %v8342_v49 }
 0xb43   : > { %3263 = vmatprep.subr.mxu0 %v8251_v17  ;;  %5892 = vmatprep.subr.mxu1 %v9055_v12 }
 0xb44   : > { %3264 = vmatpush1.msra.mxu0 %v8255_v19  ;;  %5893 = vmatpush3.msra.mxu1 %v8348_v2 }
 0xb45   : > { %3265 = vmatprep.subr.mxu0 %v8259_v34  ;;  %5894 = vmatprep.subr.mxu1 %v9055_v12 }
 0xb46   : > { %3266 = vmatpush1.msra.mxu0 %v8263_v24  ;;  %5895 = vmatpush3.msra.mxu1 %v8354_v4 }
 0xb47   : > { %3267 = vmatprep.subr.mxu0 %v8267_v21  ;;  %5896 = vmatprep.subr.mxu1 %v9055_v12 }
 0xb48   : > { %3268 = vmatpush1.msra.mxu0 %v8359_v5  ;;  %5897 = vmatpush3.msra.mxu1 %v8362_v20 }
 0xb49   : > { %3269 = vmatprep.subr.mxu0 %v8365_v31  ;;  %5898 = vmatprep.subr.mxu1 %v9055_v12 }
 0xb4a   : > { %3270 = vmatpush1.msra.mxu0 %v8369_v8  ;;  %5899 = vmatpush3.msra.mxu1 %v8372_v9 }
 0xb4b   : > { %3271 = vmatprep.subr.mxu0 %v8375_v55  ;;  %5900 = vmatprep.subr.mxu1 %v9055_v12 }
 0xb4c   : > { %3272 = vmatpush1.msra.mxu0 %v8379_v37  ;;  %5901 = vmatpush3.msra.mxu1 %v8382_v27 }
 0xb4d   : > { %3273 = vmatprep.subr.mxu0 %v8385_v35  ;;  %5902 = vmatprep.subr.mxu1 %v9055_v12 }
 0xb4e   : > { %3274 = vmatpush1.msra.mxu0 %v8389_v36  ;;  %5903 = vmatpush3.msra.mxu1 %v8392_v42 }
 0xb4f   : > { %3275 = vmatprep.subr.mxu0 %v8395_v43  ;;  %5904 = vmatprep.subr.mxu1 %v9055_v12 }
 0xb50   : > { %3276 = vmatpush1.msra.mxu0 %v8399_v50  ;;  %5905 = vmatpush3.msra.mxu1 %v8402_v46  ;;  %v9128_v46 = vld [vmem:[#allocation36_spill] sm:$0xff] }
 0xb51   : > { %3277 = vmatprep.subr.mxu0 %v8405_v47  ;;  %5906 = vmatprep.subr.mxu1 %v9055_v12 }
 0xb52   : > { %3278 = vmatpush1.msra.mxu0 %v8409_v39  ;;  %3311 = vmatprep.mubr.f32.mxu0 %v9055_v12 }
 0xb53   : > { %5907 = vmatpush3.msra.mxu1 %v8413_v41  ;;  %5908 = vmatprep.mubr.msk.f32.mxu1 %vm6720_vm2, %v9055_v12 }
 0xb54   : > { %3411 = vmatprep.subr.mxu0 %v9113_v44  ;;  %5911 = vmatprep.subr.mxu1 %v9055_v12 }
 0xbf3   : > { %v3149_v56 = vpop.f32.mrf.mxu0  ;;  %v3220_v18 = vpop.f32.mrf.mxu1 }
 0xbf4   : > { %v3224_v33 = vadd.f32 %v3149_v56, %v9126_v32  ;;  %v3238_v44 = vadd.f32 %v8020_v14, %v3220_v18 }
 0xbf5   : > { %v5875_v10 = vpop.f32.mrf.mxu1  ;;  %v3151_v38 = vpop.f32.mrf.mxu0 }
 0xbf6   : > { %v4993_v25 = vmul.f32 -1.442695, %v3224_v33  ;;  %v3231_v15 = vadd.f32 %v3151_v38, %v9127_v23 }
 0xbf8   : > { %6307 = vpow2.f32 %v4993_v25  ;;  %v4994_v26 = vmul.f32 -1.442695, %v3231_v15 }
 0xbfa   : > { %6309 = vpow2.f32 %v4994_v26 }
 0xc05   : > { %v6308_v57 = vpop.eup %6307 }
 0xc06   : > { %v3228_v53 = vadd.f32 1.0, %v6308_v57  ;;  %v9133_v57 = vld [vmem:[#allocation41_spill] sm:$0xff] }
 0xc07   : > { %v6310_v1 = vpop.eup %6309 }
 0xc08   : > { %6311 = vrcp.f32 %v3228_v53  ;;  %v3235_v41 = vadd.f32 1.0, %v6310_v1  ;;  %v9130_v1 = vld [vmem:[#allocation37_spill] sm:$0xff]  ;;  %v9131_v53 = vld [vmem:[#allocation30_spill] sm:$0xff] }
 0xc0a   : > { %6313 = vrcp.f32 %v3235_v41  ;;  %v9135_v41 = vld [vmem:[#allocation57_spill] sm:$0xff] }
 0xc15   : > { %v6312_v39 = vpop.eup %6311 }
 0xc16   : > { %v3239_v47 = vmul.f32 %v6312_v39, %v3238_v44  ;;  %v9132_v44 = vld [vmem:[#allocation39_spill] sm:$0xff] }
 0xc17   : > { %v6314_v32 = vpop.eup %6313 }
 0xc18   : > { %v3240_v56 = vadd.f32 %v3239_v47, %v9128_v46  ;;  %v3242_v33 = vsub.f32 1.0, %v6314_v32  ;;  %v3244_v38 = vmul.f32 %v6314_v32, %v8303_v22  ;;  %v9134_v46 = vld [vmem:[#allocation31_spill] sm:$0xff]  ;;  %v9136_v32 = vld [vmem:[#allocation58_spill] sm:$0xff] }
 0xc1a   : > { %6315 = vtanh.f32 %v3240_v56 }
 0xc27   : > { %v6316_v10 = vpop.eup %6315 }
 0xc28   : > { %v3243_v25 = vmul.f32 %v6316_v10, %v3242_v33 }
 0xc2a   : > { %v8425_v23 = vadd.f32 %v3244_v38, %v3243_v25 }
 0xc2c   : > { %9129 = vst [vmem:[#allocation34_spill] sm:$0xff] %v8425_v23  ;;  %3312 = vmatmul.mubr.f32.vlgmr.msra.gmra.mxu0 %v8425_v23  ;;  %5909 = vmatmul.mubr.f32.vlgmr.msra.gmra.mxu1 %v8425_v23 }
 0xc2d   : > { %3412 = vmatpush1.msra.mxu0 %v8183_v0  ;;  %5912 = vmatpush3.msra.mxu1 %v8186_v59 }
 0xc2e   : > { %3413 = vmatprep.subr.mxu0 %v8189_v62  ;;  %5913 = vmatprep.subr.mxu1 %v9055_v12 }
 0xc2f   : > { %3414 = vmatpush1.msra.mxu0 %v8193_v63  ;;  %5914 = vmatpush3.msra.mxu1 %v8196_v61 }
 0xc30   : > { %3415 = vmatprep.subr.mxu0 %v8199_v58  ;;  %5915 = vmatprep.subr.mxu1 %v9055_v12 }
 0xc31   : > { %3416 = vmatpush1.msra.mxu0 %v8203_v3  ;;  %5916 = vmatpush3.msra.mxu1 %v8206_v60 }
 0xc32   : > { %3417 = vmatprep.subr.mxu0 %v8209_v6  ;;  %5917 = vmatprep.subr.mxu1 %v9055_v12 }
 0xc33   : > { %3418 = vmatpush1.msra.mxu0 %v8213_v7  ;;  %5918 = vmatpush3.msra.mxu1 %v8216_v51 }
 0xc34   : > { %3419 = vmatprep.subr.mxu0 %v8219_v52  ;;  %5919 = vmatprep.subr.mxu1 %v9055_v12 }
 0xc35   : > { %3420 = vmatpush1.msra.mxu0 %v8223_v54  ;;  %5920 = vmatpush3.msra.mxu1 %v8324_v48 }
 0xc36   : > { %3421 = vmatprep.subr.mxu0 %v8227_v11  ;;  %5921 = vmatprep.subr.mxu1 %v9055_v12 }
 0xc37   : > { %3422 = vmatpush1.msra.mxu0 %v8231_v40  ;;  %5922 = vmatpush3.msra.mxu1 %v8330_v45 }
 0xc38   : > { %3423 = vmatprep.subr.mxu0 %v8235_v13  ;;  %5923 = vmatprep.subr.mxu1 %v9055_v12 }
 0xc39   : > { %3424 = vmatpush1.msra.mxu0 %v8239_v30  ;;  %5924 = vmatpush3.msra.mxu1 %v8336_v28 }
 0xc3a   : > { %3425 = vmatprep.subr.mxu0 %v8243_v29  ;;  %5925 = vmatprep.subr.mxu1 %v9055_v12 }
 0xc3b   : > { %3426 = vmatpush1.msra.mxu0 %v8247_v16  ;;  %5926 = vmatpush3.msra.mxu1 %v8342_v49 }
 0xc3c   : > { %3427 = vmatprep.subr.mxu0 %v8251_v17  ;;  %5927 = vmatprep.subr.mxu1 %v9055_v12 }
 0xc3d   : > { %3428 = vmatpush1.msra.mxu0 %v8255_v19  ;;  %5928 = vmatpush3.msra.mxu1 %v8348_v2 }
 0xc3e   : > { %3429 = vmatprep.subr.mxu0 %v8259_v34  ;;  %5929 = vmatprep.subr.mxu1 %v9055_v12 }
 0xc3f   : > { %3430 = vmatpush1.msra.mxu0 %v8263_v24  ;;  %5930 = vmatpush3.msra.mxu1 %v8354_v4 }
 0xc40   : > { %3431 = vmatprep.subr.mxu0 %v8267_v21  ;;  %5931 = vmatprep.subr.mxu1 %v9055_v12 }
 0xc41   : > { %3432 = vmatpush1.msra.mxu0 %v8359_v5  ;;  %5932 = vmatpush3.msra.mxu1 %v8362_v20 }
 0xc42   : > { %3433 = vmatprep.subr.mxu0 %v8365_v31  ;;  %5933 = vmatprep.subr.mxu1 %v9055_v12 }
 0xc43   : > { %3434 = vmatpush1.msra.mxu0 %v8369_v8  ;;  %5934 = vmatpush3.msra.mxu1 %v8372_v9 }
 0xc44   : > { %3435 = vmatprep.subr.mxu0 %v8375_v55  ;;  %5935 = vmatprep.subr.mxu1 %v9055_v12 }
 0xc45   : > { %3436 = vmatpush1.msra.mxu0 %v8379_v37  ;;  %5936 = vmatpush3.msra.mxu1 %v8382_v27 }
 0xc46   : > { %3437 = vmatprep.subr.mxu0 %v8385_v35  ;;  %5937 = vmatprep.subr.mxu1 %v9055_v12 }
 0xc47   : > { %3438 = vmatpush1.msra.mxu0 %v8389_v36  ;;  %5938 = vmatpush3.msra.mxu1 %v8392_v42 }
 0xc48   : > { %3439 = vmatprep.subr.mxu0 %v8395_v43  ;;  %5939 = vmatprep.subr.mxu1 %v9055_v12 }
 0xc49   : > { %3440 = vmatpush1.msra.mxu0 %v8399_v50  ;;  %5940 = vmatpush3.msra.mxu1 %v9130_v1  ;;  %v9137_v1 = vld [vmem:[#allocation40_spill] sm:$0xff] }
 0xc4a   : > { %3441 = vmatprep.subr.mxu0 %v9131_v53  ;;  %5941 = vmatprep.subr.mxu1 %v9055_v12 }
 0xc4b   : > { %3442 = vmatpush1.msra.mxu0 %v9132_v44  ;;  %3475 = vmatprep.mubr.f32.mxu0 %v9055_v12 }
 0xc4c   : > { %5942 = vmatpush3.msra.mxu1 %v9133_v57  ;;  %5943 = vmatprep.mubr.msk.f32.mxu1 %vm6720_vm2, %v9055_v12 }
 0xc4d   : > { %3575 = vmatprep.subr.mxu0 %v9134_v46  ;;  %5946 = vmatprep.subr.mxu1 %v9055_v12 }
 0xcec   : > { %v3313_v47 = vpop.f32.mrf.mxu0  ;;  %v3384_v39 = vpop.f32.mrf.mxu1 }
 0xced   : > { %v3388_v18 = vadd.f32 %v3313_v47, %v9135_v41  ;;  %v3402_v46 = vadd.f32 %v8020_v14, %v3384_v39  ;;  %v9139_v14 = vld [vmem:[#allocation37_spill] sm:$0xff]  ;;  %v9144_v39 = vld [vmem:[#allocation59_spill] sm:$0xff] }
 0xcee   : > { %v5910_v15 = vpop.f32.mrf.mxu1  ;;  %v3315_v56 = vpop.f32.mrf.mxu0 }
 0xcef   : > { %v4995_v26 = vmul.f32 -1.442695, %v3388_v18  ;;  %v3395_v33 = vadd.f32 %v3315_v56, %v9136_v32 }
 0xcf1   : > { %6317 = vpow2.f32 %v4995_v26  ;;  %v4996_v10 = vmul.f32 -1.442695, %v3395_v33 }
 0xcf3   : > { %6319 = vpow2.f32 %v4996_v10 }
 0xcfe   : > { %v6318_v25 = vpop.eup %6317 }
 0xcff   : > { %v3392_v38 = vadd.f32 1.0, %v6318_v25 }
 0xd00   : > { %v6320_v22 = vpop.eup %6319 }
 0xd01   : > { %6321 = vrcp.f32 %v3392_v38  ;;  %v3399_v57 = vadd.f32 1.0, %v6320_v22  ;;  %v9140_v22 = vld [vmem:[#allocation30_spill] sm:$0xff] }
 0xd03   : > { %6323 = vrcp.f32 %v3399_v57 }
 0xd0e   : > { %v6322_v44 = vpop.eup %6321 }
 0xd0f   : > { %v3403_v53 = vmul.f32 %v6322_v44, %v3402_v46  ;;  %v9143_v44 = vld [vmem:[#allocation31_spill] sm:$0xff] }
 0xd10   : > { %v6324_v41 = vpop.eup %6323 }
 0xd11   : > { %v3404_v47 = vadd.f32 %v3403_v53, %v9137_v1  ;;  %v3406_v18 = vsub.f32 1.0, %v6324_v41  ;;  %v3408_v56 = vmul.f32 %v6324_v41, %v8425_v23  ;;  %v9141_v1 = vld [vmem:[#allocation39_spill] sm:$0xff]  ;;  %v9142_v53 = vld [vmem:[#allocation41_spill] sm:$0xff] }
 0xd13   : > { %6325 = vtanh.f32 %v3404_v47  ;;  %v9145_v47 = vld [vmem:[#allocation60_spill] sm:$0xff] }
 0xd20   : > { %v6326_v15 = vpop.eup %6325 }
 0xd21   : > { %v3407_v26 = vmul.f32 %v6326_v15, %v3406_v18 }
 0xd23   : > { %v8501_v32 = vadd.f32 %v3408_v56, %v3407_v26 }
 0xd25   : > { %9138 = vst [vmem:[#allocation68_spill] sm:$0xff] %v8501_v32  ;;  %3476 = vmatmul.mubr.f32.vlgmr.msra.gmra.mxu0 %v8501_v32  ;;  %5944 = vmatmul.mubr.f32.vlgmr.msra.gmra.mxu1 %v8501_v32 }
 0xd26   : > { %3576 = vmatpush1.msra.mxu0 %v8183_v0  ;;  %5947 = vmatpush3.msra.mxu1 %v8186_v59 }
 0xd27   : > { %3577 = vmatprep.subr.mxu0 %v8189_v62  ;;  %5948 = vmatprep.subr.mxu1 %v9055_v12 }
 0xd28   : > { %3578 = vmatpush1.msra.mxu0 %v8193_v63  ;;  %5949 = vmatpush3.msra.mxu1 %v8196_v61 }
 0xd29   : > { %3579 = vmatprep.subr.mxu0 %v8199_v58  ;;  %5950 = vmatprep.subr.mxu1 %v9055_v12 }
 0xd2a   : > { %3580 = vmatpush1.msra.mxu0 %v8203_v3  ;;  %5951 = vmatpush3.msra.mxu1 %v8206_v60 }
 0xd2b   : > { %3581 = vmatprep.subr.mxu0 %v8209_v6  ;;  %5952 = vmatprep.subr.mxu1 %v9055_v12 }
 0xd2c   : > { %3582 = vmatpush1.msra.mxu0 %v8213_v7  ;;  %5953 = vmatpush3.msra.mxu1 %v8216_v51 }
 0xd2d   : > { %3583 = vmatprep.subr.mxu0 %v8219_v52  ;;  %5954 = vmatprep.subr.mxu1 %v9055_v12 }
 0xd2e   : > { %3584 = vmatpush1.msra.mxu0 %v8223_v54  ;;  %5955 = vmatpush3.msra.mxu1 %v8324_v48 }
 0xd2f   : > { %3585 = vmatprep.subr.mxu0 %v8227_v11  ;;  %5956 = vmatprep.subr.mxu1 %v9055_v12 }
 0xd30   : > { %3586 = vmatpush1.msra.mxu0 %v8231_v40  ;;  %5957 = vmatpush3.msra.mxu1 %v8330_v45 }
 0xd31   : > { %3587 = vmatprep.subr.mxu0 %v8235_v13  ;;  %5958 = vmatprep.subr.mxu1 %v9055_v12 }
 0xd32   : > { %3588 = vmatpush1.msra.mxu0 %v8239_v30  ;;  %5959 = vmatpush3.msra.mxu1 %v8336_v28 }
 0xd33   : > { %3589 = vmatprep.subr.mxu0 %v8243_v29  ;;  %5960 = vmatprep.subr.mxu1 %v9055_v12 }
 0xd34   : > { %3590 = vmatpush1.msra.mxu0 %v8247_v16  ;;  %5961 = vmatpush3.msra.mxu1 %v8342_v49 }
 0xd35   : > { %3591 = vmatprep.subr.mxu0 %v8251_v17  ;;  %5962 = vmatprep.subr.mxu1 %v9055_v12 }
 0xd36   : > { %3592 = vmatpush1.msra.mxu0 %v8255_v19  ;;  %5963 = vmatpush3.msra.mxu1 %v8348_v2 }
 0xd37   : > { %3593 = vmatprep.subr.mxu0 %v8259_v34  ;;  %5964 = vmatprep.subr.mxu1 %v9055_v12 }
 0xd38   : > { %3594 = vmatpush1.msra.mxu0 %v8263_v24  ;;  %5965 = vmatpush3.msra.mxu1 %v8354_v4 }
 0xd39   : > { %3595 = vmatprep.subr.mxu0 %v8267_v21  ;;  %5966 = vmatprep.subr.mxu1 %v9055_v12 }
 0xd3a   : > { %3596 = vmatpush1.msra.mxu0 %v8359_v5  ;;  %5967 = vmatpush3.msra.mxu1 %v8362_v20 }
 0xd3b   : > { %3597 = vmatprep.subr.mxu0 %v8365_v31  ;;  %5968 = vmatprep.subr.mxu1 %v9055_v12 }
 0xd3c   : > { %3598 = vmatpush1.msra.mxu0 %v8369_v8  ;;  %5969 = vmatpush3.msra.mxu1 %v8372_v9 }
 0xd3d   : > { %3599 = vmatprep.subr.mxu0 %v8375_v55  ;;  %5970 = vmatprep.subr.mxu1 %v9055_v12 }
 0xd3e   : > { %3600 = vmatpush1.msra.mxu0 %v8379_v37  ;;  %5971 = vmatpush3.msra.mxu1 %v8382_v27 }
 0xd3f   : > { %3601 = vmatprep.subr.mxu0 %v8385_v35  ;;  %5972 = vmatprep.subr.mxu1 %v9055_v12 }
 0xd40   : > { %3602 = vmatpush1.msra.mxu0 %v8389_v36  ;;  %5973 = vmatpush3.msra.mxu1 %v8392_v42 }
 0xd41   : > { %3603 = vmatprep.subr.mxu0 %v8395_v43  ;;  %5974 = vmatprep.subr.mxu1 %v9055_v12 }
 0xd42   : > { %3604 = vmatpush1.msra.mxu0 %v8399_v50  ;;  %5975 = vmatpush3.msra.mxu1 %v9139_v14 }
 0xd43   : > { %3605 = vmatprep.subr.mxu0 %v9140_v22  ;;  %5976 = vmatprep.subr.mxu1 %v9055_v12 }
 0xd44   : > { %3606 = vmatpush1.msra.mxu0 %v9141_v1  ;;  %3639 = vmatprep.mubr.f32.mxu0 %v9055_v12 }
 0xd45   : > { %5977 = vmatpush3.msra.mxu1 %v9142_v53  ;;  %5978 = vmatprep.mubr.msk.f32.mxu1 %vm6720_vm2, %v9055_v12 }
 0xd46   : > { %3739 = vmatprep.subr.mxu0 %v9143_v44  ;;  %5981 = vmatprep.subr.mxu1 %v9055_v12  ;;  %v8577_v44 = vld [vmem:[%s8931_s6] ss:$0 sm:$0xff] }
 0xde5   : > { %v3477_v57 = vpop.f32.mrf.mxu0  ;;  %v3548_v46 = vpop.f32.mrf.mxu1 }
 0xde6   : > { %v3552_v33 = vadd.f32 %v3477_v57, %v9144_v39  ;;  %v3566_v57 = vadd.f32 %v8577_v44, %v3548_v46 }
 0xde7   : > { %v5945_v10 = vpop.f32.mrf.mxu1  ;;  %v3479_v38 = vpop.f32.mrf.mxu0 }
 0xde8   : > { %v4997_v25 = vmul.f32 -1.442695, %v3552_v33  ;;  %v3559_v41 = vadd.f32 %v3479_v38, %v9145_v47  ;;  %v9146_v10 = vld [vmem:[#allocation46_spill] sm:$0xff] }
 0xdea   : > { %6327 = vpow2.f32 %v4997_v25  ;;  %v4998_v18 = vmul.f32 -1.442695, %v3559_v41 }
 0xdec   : > { %6329 = vpow2.f32 %v4998_v18 }
 0xdf7   : > { %v6328_v15 = vpop.eup %6327 }
 0xdf8   : > { %v3556_v26 = vadd.f32 1.0, %v6328_v15 }
 0xdf9   : > { %v6330_v56 = vpop.eup %6329 }
 0xdfa   : > { %6331 = vrcp.f32 %v3556_v26  ;;  %v3563_v23 = vadd.f32 1.0, %v6330_v56 }
 0xdfc   : > { %6333 = vrcp.f32 %v3563_v23  ;;  %v6561_v23 = vld [vmem:[#allocation11 + $0x170] sm:$0xff] }
 0xe07   : > { %v6332_v39 = vpop.eup %6331 }
 0xe08   : > { %v3567_v33 = vmul.f32 %v6332_v39, %v3566_v57  ;;  %v9147_v57 = vld [vmem:[#allocation61_spill] sm:$0xff] }
 0xe09   : > { %v6334_v38 = vpop.eup %6333 }
 0xe0a   : > { %v3568_v25 = vadd.f32 %v3567_v33, %v9146_v10  ;;  %v3570_v47 = vsub.f32 1.0, %v6334_v38  ;;  %v3572_v15 = vmul.f32 %v6334_v38, %v8501_v32  ;;  %v9148_v38 = vld [vmem:[#allocation62_spill] sm:$0xff] }
 0xe0c   : > { %6335 = vtanh.f32 %v3568_v25 }
 0xe19   : > { %v6336_v41 = vpop.eup %6335 }
 0xe1a   : > { %v3571_v18 = vmul.f32 %v6336_v41, %v3570_v47 }
 0xe1c   : > { %v8582_v26 = vadd.f32 %v3572_v15, %v3571_v18 }
 0xe1e   : > { %3640 = vmatmul.mubr.f32.vlgmr.msra.gmra.mxu0 %v8582_v26  ;;  %5979 = vmatmul.mubr.f32.vlgmr.msra.gmra.mxu1 %v8582_v26 }
 0xe1f   : > { %3740 = vmatpush1.msra.mxu0 %v8183_v0  ;;  %5982 = vmatpush3.msra.mxu1 %v8186_v59 }
 0xe20   : > { %3741 = vmatprep.subr.mxu0 %v8189_v62  ;;  %5983 = vmatprep.subr.mxu1 %v9055_v12 }
 0xe21   : > { %3742 = vmatpush1.msra.mxu0 %v8193_v63  ;;  %5984 = vmatpush3.msra.mxu1 %v8196_v61 }
 0xe22   : > { %3743 = vmatprep.subr.mxu0 %v8199_v58  ;;  %5985 = vmatprep.subr.mxu1 %v9055_v12 }
 0xe23   : > { %3744 = vmatpush1.msra.mxu0 %v8203_v3  ;;  %5986 = vmatpush3.msra.mxu1 %v8206_v60 }
 0xe24   : > { %3745 = vmatprep.subr.mxu0 %v8209_v6  ;;  %5987 = vmatprep.subr.mxu1 %v9055_v12 }
 0xe25   : > { %3746 = vmatpush1.msra.mxu0 %v8213_v7  ;;  %5988 = vmatpush3.msra.mxu1 %v8216_v51 }
 0xe26   : > { %3747 = vmatprep.subr.mxu0 %v8219_v52  ;;  %5989 = vmatprep.subr.mxu1 %v9055_v12 }
 0xe27   : > { %3748 = vmatpush1.msra.mxu0 %v8223_v54  ;;  %5990 = vmatpush3.msra.mxu1 %v8324_v48 }
 0xe28   : > { %3749 = vmatprep.subr.mxu0 %v8227_v11  ;;  %5991 = vmatprep.subr.mxu1 %v9055_v12 }
 0xe29   : > { %3750 = vmatpush1.msra.mxu0 %v8231_v40  ;;  %5992 = vmatpush3.msra.mxu1 %v8330_v45 }
 0xe2a   : > { %3751 = vmatprep.subr.mxu0 %v8235_v13  ;;  %5993 = vmatprep.subr.mxu1 %v9055_v12 }
 0xe2b   : > { %3752 = vmatpush1.msra.mxu0 %v8239_v30  ;;  %5994 = vmatpush3.msra.mxu1 %v8336_v28 }
 0xe2c   : > { %3753 = vmatprep.subr.mxu0 %v8243_v29  ;;  %5995 = vmatprep.subr.mxu1 %v9055_v12 }
 0xe2d   : > { %3754 = vmatpush1.msra.mxu0 %v8247_v16  ;;  %5996 = vmatpush3.msra.mxu1 %v8342_v49 }
 0xe2e   : > { %3755 = vmatprep.subr.mxu0 %v8251_v17  ;;  %5997 = vmatprep.subr.mxu1 %v9055_v12 }
 0xe2f   : > { %3756 = vmatpush1.msra.mxu0 %v8255_v19  ;;  %5998 = vmatpush3.msra.mxu1 %v8348_v2 }
 0xe30   : > { %3757 = vmatprep.subr.mxu0 %v8259_v34  ;;  %5999 = vmatprep.subr.mxu1 %v9055_v12 }
 0xe31   : > { %3758 = vmatpush1.msra.mxu0 %v8263_v24  ;;  %6000 = vmatpush3.msra.mxu1 %v8354_v4 }
 0xe32   : > { %3759 = vmatprep.subr.mxu0 %v8267_v21  ;;  %6001 = vmatprep.subr.mxu1 %v9055_v12 }
 0xe33   : > { %3760 = vmatpush1.msra.mxu0 %v8359_v5  ;;  %6002 = vmatpush3.msra.mxu1 %v8362_v20 }
 0xe34   : > { %3761 = vmatprep.subr.mxu0 %v8365_v31  ;;  %6003 = vmatprep.subr.mxu1 %v9055_v12 }
 0xe35   : > { %3762 = vmatpush1.msra.mxu0 %v8369_v8  ;;  %6004 = vmatpush3.msra.mxu1 %v8372_v9 }
 0xe36   : > { %3763 = vmatprep.subr.mxu0 %v8375_v55  ;;  %6005 = vmatprep.subr.mxu1 %v9055_v12 }
 0xe37   : > { %3764 = vmatpush1.msra.mxu0 %v8379_v37  ;;  %6006 = vmatpush3.msra.mxu1 %v8382_v27 }
 0xe38   : > { %3765 = vmatprep.subr.mxu0 %v8385_v35  ;;  %6007 = vmatprep.subr.mxu1 %v9055_v12 }
 0xe39   : > { %3766 = vmatpush1.msra.mxu0 %v8389_v36  ;;  %6008 = vmatpush3.msra.mxu1 %v8392_v42 }
 0xe3a   : > { %3767 = vmatprep.subr.mxu0 %v8395_v43  ;;  %6009 = vmatprep.subr.mxu1 %v9055_v12 }
 0xe3b   : > { %3768 = vmatpush1.msra.mxu0 %v8399_v50  ;;  %6010 = vmatpush3.msra.mxu1 %v9139_v14  ;;  %v9149_v14 = vld [vmem:[#allocation50_spill] sm:$0xff] }
 0xe3c   : > { %3769 = vmatprep.subr.mxu0 %v9140_v22  ;;  %6011 = vmatprep.subr.mxu1 %v9055_v12 }
 0xe3d   : > { %3770 = vmatpush1.msra.mxu0 %v9141_v1  ;;  %3803 = vmatprep.mubr.f32.mxu0 %v9055_v12 }
 0xe3e   : > { %6012 = vmatpush3.msra.mxu1 %v9142_v53  ;;  %6013 = vmatprep.mubr.msk.f32.mxu1 %vm6720_vm2, %v9055_v12 }
 0xe3f   : > { %3903 = vmatprep.subr.mxu0 %v6561_v23  ;;  %6016 = vmatprep.subr.mxu1 %v9055_v12 }
 0xede   : > { %v3641_v46 = vpop.f32.mrf.mxu0  ;;  %v3712_v56 = vpop.f32.mrf.mxu1 }
 0xedf   : > { %v3716_v39 = vadd.f32 %v3641_v46, %v9147_v57  ;;  %v3730_v23 = vadd.f32 %v8577_v44, %v3712_v56  ;;  %v9165_v56 = vld [vmem:[#allocation24_spill] sm:$0xff] }
 0xee0   : > { %v5980_v33 = vpop.f32.mrf.mxu1  ;;  %v3643_v25 = vpop.f32.mrf.mxu0 }
 0xee1   : > { %v4999_v10 = vmul.f32 -1.442695, %v3716_v39  ;;  %v3723_v47 = vadd.f32 %v3643_v25, %v9148_v38 }
 0xee3   : > { %6337 = vpow2.f32 %v4999_v10  ;;  %v5000_v41 = vmul.f32 -1.442695, %v3723_v47  ;;  %v9166_v47 = vld [vmem:[#allocation35_spill] sm:$0xff] }
 0xee5   : > { %6339 = vpow2.f32 %v5000_v41  ;;  %v4088_v41 = vpack.c.bf16 %v9166_v47, %v9165_v56 }
 0xef0   : > { %v6338_v18 = vpop.eup %6337 }
 0xef1   : > { %v3720_v15 = vadd.f32 1.0, %v6338_v18  ;;  %v9167_v18 = vld [vmem:[#allocation34_spill] sm:$0xff] }
 0xef2   : > { %v6340_v32 = vpop.eup %6339 }
 0xef3   : > { %6341 = vrcp.f32 %v3720_v15  ;;  %v3727_v53 = vadd.f32 1.0, %v6340_v32  ;;  %v9162_v32 = vld [vmem:[#allocation29_spill] sm:$0xff]  ;;  %v9168_v15 = vld [vmem:[#allocation68_spill] sm:$0xff] }
 0xef5   : > { %6343 = vrcp.f32 %v3727_v53 }
 0xf00   : > { %v6342_v1 = vpop.eup %6341 }
 0xf01   : > { %v3731_v22 = vmul.f32 %v6342_v1, %v3730_v23  ;;  %v9164_v1 = vld [vmem:[#allocation33_spill] sm:$0xff]  ;;  %v4089_v23 = vpack.c.bf16 %v9168_v15, %v9167_v18 }
 0xf02   : > { %v6344_v57 = vpop.eup %6343 }
 0xf03   : > { %v3732_v46 = vadd.f32 %v3731_v22, %v9149_v14  ;;  %v3734_v39 = vsub.f32 1.0, %v6344_v57  ;;  %v3736_v25 = vmul.f32 %v6344_v57, %v8582_v26  ;;  %v9163_v22 = vld [vmem:[#allocation22_spill] sm:$0xff] }
 0xf04   : > { %v4087_v53 = vpack.c.bf16 %v9164_v1, %v9163_v22 }
 0xf05   : > { %6345 = vtanh.f32 %v3732_v46 }
 0xf12   : > { %v6346_v33 = vpop.eup %6345 }
 0xf13   : > { %v3735_v10 = vmul.f32 %v6346_v33, %v3734_v39  ;;  %v9169_v33 = vld [vmem:[#allocation65_spill] sm:$0xff] }
 0xf15   : > { %v8657_v38 = vadd.f32 %v3736_v25, %v3735_v10 }
 0xf17   : > { %3804 = vmatmul.mubr.f32.vlgmr.msra.gmra.mxu0 %v8657_v38  ;;  %6014 = vmatmul.mubr.f32.vlgmr.msra.gmra.mxu1 %v8657_v38  ;;  %v4090_v46 = vpack.c.bf16 %v8657_v38, %v8582_v26 }
 0xf18   : > { %3904 = vmatpush1.msra.mxu0 %v8183_v0  ;;  %6017 = vmatpush3.msra.mxu1 %v8186_v59  ;;  %v9150_v0 = vld [vmem:[#allocation37_spill] sm:$0xff]  ;;  %v9151_v59 = vld [vmem:[#allocation30_spill] sm:$0xff] }
 0xf19   : > { %3905 = vmatprep.subr.mxu0 %v8189_v62  ;;  %6018 = vmatprep.subr.mxu1 %v9055_v12  ;;  %v9152_v62 = vld [vmem:[#allocation39_spill] sm:$0xff] }
 0xf1a   : > { %3906 = vmatpush1.msra.mxu0 %v8193_v63  ;;  %6019 = vmatpush3.msra.mxu1 %v8196_v61  ;;  %v9153_v63 = vld [vmem:[#allocation41_spill] sm:$0xff]  ;;  %v6199_v61 = vld [vmem:[#allocation13 + $0x38] sm:$0xff]  }
 0xf1b   : > { %3907 = vmatprep.subr.mxu0 %v8199_v58  ;;  %6020 = vmatprep.subr.mxu1 %v9055_v12 }
 0xf1c   : > { %3908 = vmatpush1.msra.mxu0 %v8203_v3  ;;  %6021 = vmatpush3.msra.mxu1 %v8206_v60  ;;  %v9154_v60 = vld [vmem:[#allocation63_spill] sm:$0xff] }
 0xf1d   : > { %3909 = vmatprep.subr.mxu0 %v8209_v6  ;;  %6022 = vmatprep.subr.mxu1 %v9055_v12 }
 0xf1e   : > { %3910 = vmatpush1.msra.mxu0 %v8213_v7  ;;  %6023 = vmatpush3.msra.mxu1 %v8216_v51 }
 0xf1f   : > { %3911 = vmatprep.subr.mxu0 %v8219_v52  ;;  %6024 = vmatprep.subr.mxu1 %v9055_v12 }
 0xf20   : > { %3912 = vmatpush1.msra.mxu0 %v8223_v54  ;;  %6025 = vmatpush3.msra.mxu1 %v8324_v48  ;;  %v9155_v54 = vld [vmem:[#allocation64_spill] sm:$0xff] }
 0xf21   : > { %3913 = vmatprep.subr.mxu0 %v8227_v11  ;;  %6026 = vmatprep.subr.mxu1 %v9055_v12 }
 0xf22   : > { %3914 = vmatpush1.msra.mxu0 %v8231_v40  ;;  %6027 = vmatpush3.msra.mxu1 %v8330_v45 }
 0xf23   : > { %3915 = vmatprep.subr.mxu0 %v8235_v13  ;;  %6028 = vmatprep.subr.mxu1 %v9055_v12 }
 0xf24   : > { %3916 = vmatpush1.msra.mxu0 %v8239_v30  ;;  %6029 = vmatpush3.msra.mxu1 %v8336_v28 }
 0xf25   : > { %3917 = vmatprep.subr.mxu0 %v8243_v29  ;;  %6030 = vmatprep.subr.mxu1 %v9055_v12 }
 0xf26   : > { %3918 = vmatpush1.msra.mxu0 %v8247_v16  ;;  %6031 = vmatpush3.msra.mxu1 %v8342_v49 }
 0xf27   : > { %3919 = vmatprep.subr.mxu0 %v8251_v17  ;;  %6032 = vmatprep.subr.mxu1 %v9055_v12 }
 0xf28   : > { %3920 = vmatpush1.msra.mxu0 %v8255_v19  ;;  %6033 = vmatpush3.msra.mxu1 %v8348_v2 }
 0xf29   : > { %3921 = vmatprep.subr.mxu0 %v8259_v34  ;;  %6034 = vmatprep.subr.mxu1 %v9055_v12  ;;  %v9156_v34 = vld [vmem:[#allocation44_spill] sm:$0xff] }
 0xf2a   : > { %3922 = vmatpush1.msra.mxu0 %v8263_v24  ;;  %6035 = vmatpush3.msra.mxu1 %v8354_v4  ;;  %v6200_v4 = vld [vmem:[#allocation13 + $0x30] sm:$0xff]  }
 0xf2b   : > { %3923 = vmatprep.subr.mxu0 %v8267_v21  ;;  %6036 = vmatprep.subr.mxu1 %v9055_v12 }
 0xf2c   : > { %3924 = vmatpush1.msra.mxu0 %v8359_v5  ;;  %6037 = vmatpush3.msra.mxu1 %v8362_v20  ;;  %v9157_v5 = vld [vmem:[#allocation67_spill] sm:$0xff] }
 0xf2d   : > { %3925 = vmatprep.subr.mxu0 %v8365_v31  ;;  %6038 = vmatprep.subr.mxu1 %v9055_v12  ;;  %v9158_v20 = vld [vmem:[#allocation23_spill] sm:$0xff] }
 0xf2e   : > { %3926 = vmatpush1.msra.mxu0 %v8369_v8  ;;  %6039 = vmatpush3.msra.mxu1 %v8372_v9  ;;  %v4084_v31 = vpack.c.bf16 %v9158_v20, %v9157_v5  ;;  %v6201_v8 = vld [vmem:[#allocation13 + $0x28] sm:$0xff]   ;;  %v6202_v9 = vld [vmem:[#allocation13 + $0x20] sm:$0xff]  }
 0xf2f   : > { %3927 = vmatprep.subr.mxu0 %v8375_v55  ;;  %6040 = vmatprep.subr.mxu1 %v9055_v12  ;;  %v6203_v55 = vld [vmem:[#allocation13 + $0x18] sm:$0xff]  }
 0xf30   : > { %3928 = vmatpush1.msra.mxu0 %v8379_v37  ;;  %6041 = vmatpush3.msra.mxu1 %v8382_v27  ;;  %v6204_v37 = vld [vmem:[#allocation13 + $0x10] sm:$0xff]   ;;  %v6205_v27 = vld [vmem:[#allocation13 + $0x8] sm:$0xff]  }
 0xf31   : > { %3929 = vmatprep.subr.mxu0 %v8385_v35  ;;  %6042 = vmatprep.subr.mxu1 %v9055_v12  ;;  %v6206_v35 = vld [vmem:[#allocation13] sm:$0xff]  }
 0xf32   : > { %3930 = vmatpush1.msra.mxu0 %v8389_v36  ;;  %6043 = vmatpush3.msra.mxu1 %v8392_v42  ;;  %v9159_v36 = vld [vmem:[#allocation25_spill] sm:$0xff]  ;;  %v9160_v42 = vld [vmem:[#allocation26_spill] sm:$0xff] }
 0xf33   : > { %3931 = vmatprep.subr.mxu0 %v8395_v43  ;;  %6044 = vmatprep.subr.mxu1 %v9055_v12  ;;  %v4085_v43 = vpack.c.bf16 %v9160_v42, %v9159_v36 }
 0xf34   : > { %3932 = vmatpush1.msra.mxu0 %v8399_v50  ;;  %6045 = vmatpush3.msra.mxu1 %v9150_v0  ;;  %v9161_v50 = vld [vmem:[#allocation27_spill] sm:$0xff] }
 0xf35   : > { %3933 = vmatprep.subr.mxu0 %v9151_v59  ;;  %6046 = vmatprep.subr.mxu1 %v9055_v12  ;;  %v4086_v14 = vpack.c.bf16 %v9162_v32, %v9161_v50 }
 0xf36   : > { %3934 = vmatpush1.msra.mxu0 %v9152_v62  ;;  %3967 = vmatprep.mubr.f32.mxu0 %v9055_v12  ;;  %v9170_v62 = vld [vmem:[#allocation66_spill] sm:$0xff] }
 0xf37   : > { %6047 = vmatpush3.msra.mxu1 %v9153_v63  ;;  %6048 = vmatprep.mubr.msk.f32.mxu1 %vm6720_vm2, %v9055_v12 }
 0xf38   : > { %6051 = vmatprep.subr.bf16.mxu0 %v6199_v61 }
 0xfd7   : > { %v3805_v58 = vpop.f32.mrf.mxu0  ;;  %v3876_v3 = vpop.f32.mrf.mxu1 }
 0xfd8   : > { %v3880_v6 = vadd.f32 %v3805_v58, %v9154_v60  ;;  %v3894_v12 = vadd.f32 %v8577_v44, %v3876_v3 }
 0xfd9   : > { %v6015_v7 = vpop.f32.mrf.mxu1  ;;  %v3807_v52 = vpop.f32.mrf.mxu0 }
 0xfda   : > { %v5001_v51 = vmul.f32 -1.442695, %v3880_v6  ;;  %v3887_v11 = vadd.f32 %v3807_v52, %v9155_v54  ;;  %v8754_v7 = vld [vmem:[%s8933_s8] ss:$0 sm:$0xff] }
 0xfdc   : > { %6347 = vpow2.f32 %v5001_v51  ;;  %v5002_v40 = vmul.f32 -1.442695, %v3887_v11 }
 0xfde   : > { %6349 = vpow2.f32 %v5002_v40 }
 0xfe9   : > { %v6348_v13 = vpop.eup %6347 }
 0xfea   : > { %v3884_v30 = vadd.f32 1.0, %v6348_v13 }
 0xfeb   : > { %v6350_v29 = vpop.eup %6349 }
 0xfec   : > { %6351 = vrcp.f32 %v3884_v30  ;;  %v3891_v16 = vadd.f32 1.0, %v6350_v29 }
 0xfee   : > { %6353 = vrcp.f32 %v3891_v16  ;;  %v9171_v16 = vld [vmem:[#allocation48_spill] sm:$0xff] }
 0xff9   : > { %v6352_v17 = vpop.eup %6351 }
 0xffa   : > { %v3895_v19 = vmul.f32 %v6352_v17, %v3894_v12 }
 0xffb   : > { %v6354_v21 = vpop.eup %6353 }
 0xffc   : > { %v3896_v24 = vadd.f32 %v3895_v19, %v9156_v34  ;;  %v3898_v48 = vsub.f32 1.0, %v6354_v21  ;;  %v3900_v49 = vmul.f32 %v6354_v21, %v8657_v38 }
 0xffe   : > { %6355 = vtanh.f32 %v3896_v24 }
0x100b   : > { %v6356_v45 = vpop.eup %6355 }
0x100c   : > { %v3899_v28 = vmul.f32 %v6356_v45, %v3898_v48 }
0x100e   : > { %v8731_v2 = vadd.f32 %v3900_v49, %v3899_v28 }
0x1010   : > { %3968 = vmatmul.mubr.f32.vlgmr.msra.gmra.mxu0 %v8731_v2  ;;  %6049 = vmatmul.mubr.f32.vlgmr.msra.gmra.mxu1 %v8731_v2 }
0x1011   : > { %6052 = vmatpush3.bf16.msra.mxu0 %v6199_v61  ;;  %6067 = vmatprep.mubr.bf16.mxu0 %v4084_v31 }
0x1012   : > { %6053 = vmatprep.subr.bf16.mxu0 %v6200_v4 }
0x1015   : > { %6054 = vmatpush3.bf16.msra.mxu0 %v6200_v4  ;;  %v8768_v4 = vld [vmem:[%s8934_s9] ss:$0 sm:$0xff] }
0x1016   : > { %6055 = vmatprep.subr.bf16.mxu0 %v6201_v8 }
0x1019   : > { %6056 = vmatpush3.bf16.msra.mxu0 %v6201_v8 }
0x101a   : > { %6057 = vmatprep.subr.bf16.mxu0 %v6202_v9 }
0x101d   : > { %6058 = vmatpush3.bf16.msra.mxu0 %v6202_v9 }
0x101e   : > { %6059 = vmatprep.subr.bf16.mxu0 %v6203_v55 }
0x1021   : > { %6060 = vmatpush3.bf16.msra.mxu0 %v6203_v55 }
0x1022   : > { %6061 = vmatprep.subr.bf16.mxu0 %v6204_v37 }
0x1025   : > { %6062 = vmatpush3.bf16.msra.mxu0 %v6204_v37 }
0x1026   : > { %6063 = vmatprep.subr.bf16.mxu0 %v6205_v27 }
0x1029   : > { %6064 = vmatpush3.bf16.msra.mxu0 %v6205_v27 }
0x102a   : > { %6065 = vmatprep.subr.bf16.mxu0 %v6206_v35 }
0x102d   : > { %6066 = vmatpush3.bf16.msra.mxu0 %v6206_v35 }
0x1030   : > { %6068 = vmatmul.mubr.bf16.vlgmr.msra.gmra.mxu0 %v4085_v43 }
0x1031   : > { %6071 = vmatprep.mubr.bf16.mxu0 %v4086_v14 }
0x1038   : > { %6072 = vmatmul.mubr.bf16.gmra.mxu0 %v4087_v53 }
0x1039   : > { %6075 = vmatprep.mubr.bf16.mxu0 %v4088_v41 }
0x1040   : > { %6076 = vmatmul.mubr.bf16.gmra.mxu0 %v4089_v23 }
0x1041   : > { %6079 = vmatprep.mubr.bf16.mxu0 %v4090_v46 }
0x10d0   : > { %v3969_v57 = vpop.f32.mrf.mxu0  ;;  %v4040_v39 = vpop.f32.mrf.mxu1 }
0x10d1   : > { %v4044_v10 = vadd.f32 %v3969_v57, %v9169_v33  ;;  %v4058_v52 = vadd.f32 %v8577_v44, %v4040_v39 }
0x10d2   : > { %v6050_v25 = vpop.f32.mrf.mxu1  ;;  %v3971_v59 = vpop.f32.mrf.mxu0 }
0x10d3   : > { %v5003_v0 = vmul.f32 -1.442695, %v4044_v10  ;;  %v4051_v63 = vadd.f32 %v3971_v59, %v9170_v62 }
0x10d5   : > { %6357 = vpow2.f32 %v5003_v0  ;;  %v5004_v61 = vmul.f32 -1.442695, %v4051_v63 }
0x10d7   : > { %6359 = vpow2.f32 %v5004_v61 }
0x10e2   : > { %v6358_v58 = vpop.eup %6357 }
0x10e3   : > { %v4048_v3 = vadd.f32 1.0, %v6358_v58 }
0x10e4   : > { %v6360_v60 = vpop.eup %6359 }
0x10e5   : > { %6361 = vrcp.f32 %v4048_v3  ;;  %v4055_v6 = vadd.f32 1.0, %v6360_v60 }
0x10e7   : > { %6363 = vrcp.f32 %v4055_v6 }
0x10f0   : > { %v6069_v51 = vpop.f32.mrf.mxu0 }
0x10f1   : > { %v4206_v54 = vadd.f32 %v6069_v51, %v8754_v7 }
0x10f2   : > { %v6362_v11 = vpop.eup %6361  ;;  %v4197_v40 = vpop.f32.mrf.mxu0 }
0x10f3   : > { %v4059_v13 = vmul.f32 %v6362_v11, %v4058_v52  ;;  %6365 = vtanh.f32 %v4206_v54  ;;  %v4198_v30 = vadd.f32 %v8754_v7, %v4197_v40 }
0x10f4   : > { %v6070_v29 = vpop.f32.mrf.mxu0  ;;  %v6364_v31 = vpop.eup %6363 }
0x10f5   : > { %v4060_v12 = vadd.f32 %v4059_v13, %v9171_v16  ;;  %6367 = vtanh.f32 %v4198_v30  ;;  %v4209_v17 = vadd.f32 %v6070_v29, %v8754_v7  ;;  %v4062_v41 = vsub.f32 1.0, %v6364_v31 }
0x10f6   : > { %v4200_v19 = vpop.f32.mrf.mxu0  ;;  %v4064_v10 = vmul.f32 %v6364_v31, %v8731_v2 }
0x10f7   : > { %6369 = vtanh.f32 %v4060_v12  ;;  %v4201_v34 = vadd.f32 %v8754_v7, %v4200_v19 }
0x10f8   : > { %6371 = vtanh.f32 %v4209_v17  ;;  %v6073_v44 = vpop.f32.mrf.mxu0 }
0x10f9   : > { %6373 = vtanh.f32 %v4201_v34  ;;  %v4222_v24 = vadd.f32 %v6073_v44, %v8754_v7  ;;  %v8793_v44 = vstv %s4331_s29 }
0x10fa   : > { %v4213_v21 = vpop.f32.mrf.mxu0 }
0x10fb   : > { %v4214_v48 = vadd.f32 %v8754_v7, %v4213_v21 }
0x10fc   : > { %v6074_v45 = vpop.f32.mrf.mxu0 }
0x10fd   : > { %6375 = vtanh.f32 %v4214_v48  ;;  %v4225_v28 = vadd.f32 %v6074_v45, %v8754_v7 }
0x10fe   : > { %6377 = vtanh.f32 %v4222_v24  ;;  %v4216_v49 = vpop.f32.mrf.mxu0  ;;  %v4349_v24 = vld [vmem:[#allocation4] sm:$0xff] }
0x10ff   : > { %6379 = vtanh.f32 %v4225_v28  ;;  %v4217_v8 = vadd.f32 %v8754_v7, %v4216_v49 }
0x1100   : > { %v6366_v9 = vpop.eup %6365  ;;  %v6077_v55 = vpop.f32.mrf.mxu0 }
0x1101   : > { %6381 = vtanh.f32 %v4217_v8  ;;  %v4285_v37 = vmul.f32 %v6366_v9, %v8768_v4  ;;  %v4238_v35 = vadd.f32 %v6077_v55, %v8754_v7 }
0x1102   : > { %v6368_v27 = vpop.eup %6367  ;;  %v4229_v43 = vpop.f32.mrf.mxu0 }
0x1103   : > { %v4230_v14 = vadd.f32 %v8754_v7, %v4229_v43  ;;  %4303 = vadd.xlane.f32.xlu1 %v4285_v37  ;;  %v4283_v53 = vmul.f32 %v6368_v27, %v8768_v4 }
0x1104   : > { %v6370_v23 = vpop.eup %6369  ;;  %v6078_v46 = vpop.f32.mrf.mxu0 }
0x1105   : > { %v6372_v57 = vpop.eup %6371  ;;  %6383 = vtanh.f32 %v4230_v14  ;;  %v4241_v39 = vadd.f32 %v6078_v46, %v8754_v7  ;;  %4299 = vadd.xlane.f32.xlu0 %v4283_v53  ;;  %v4063_v33 = vmul.f32 %v6370_v23, %v4062_v41  ;;  %v4350_v14 = vld [vmem:[#allocation5] sm:$0xff] }
0x1106   : > { %v6374_v25 = vpop.eup %6373  ;;  %6385 = vtanh.f32 %v4238_v35  ;;  %v4232_v0 = vpop.f32.mrf.mxu0  ;;  %v4286_v59 = vmul.f32 %v6372_v57, %v8768_v4 }
0x1107   : > { %6387 = vtanh.f32 %v4241_v39  ;;  %v4233_v62 = vadd.f32 %v8754_v7, %v4232_v0  ;;  %v4284_v63 = vmul.f32 %v6374_v25, %v8768_v4  ;;  %v8780_v61 = vadd.f32 %v4064_v10, %v4063_v33 }
0x1108   : > { %4305 = vadd.xlane.f32.xlu1 %v4286_v59 }
0x1109   : > { %6389 = vtanh.f32 %v4233_v62  ;;  %4301 = vadd.xlane.f32.xlu0 %v4284_v63  ;;  %4067 = vst [vmem:[#allocation2] sm:$0xff] %v8780_v61  ;;  %v4091_v58 = vpack.c.bf16 %v8780_v61, %v8731_v2 }
0x110a   : > { %v6376_v3 = vpop.eup %6375 }
0x110b   : > { %v6378_v60 = vpop.eup %6377  ;;  %6080 = vmatmul.mubr.bf16.gmra.mxu0 %v4091_v58  ;;  %v4287_v6 = vmul.f32 %v6376_v3, %v8768_v4 }
0x110c   : > { %v6380_v51 = vpop.eup %6379  ;;  %v4289_v11 = vmul.f32 %v6378_v60, %v8768_v4 }
0x110d   : > { %4307 = vadd.xlane.f32.xlu0 %v4287_v6  ;;  %v4290_v52 = vmul.f32 %v6380_v51, %v8768_v4 }
0x110e   : > { %v6382_v54 = vpop.eup %6381 }
0x110f   : > { %4313 = vadd.xlane.f32.xlu1 %v4290_v52  ;;  %v4288_v40 = vmul.f32 %v6382_v54, %v8768_v4 }
0x1111   : > { %4311 = vadd.xlane.f32.xlu0 %v4289_v11 }
0x1112   : > { %v6384_v13 = vpop.eup %6383 }
0x1113   : > { %v6386_v30 = vpop.eup %6385  ;;  %4309 = vadd.xlane.f32.xlu1 %v4288_v40  ;;  %v4291_v29 = vmul.f32 %v6384_v13, %v8768_v4 }
0x1114   : > { %v6388_v16 = vpop.eup %6387  ;;  %v4293_v19 = vmul.f32 %v6386_v30, %v8768_v4 }
0x1115   : > { %4315 = vadd.xlane.f32.xlu0 %v4291_v29  ;;  %v4294_v12 = vmul.f32 %v6388_v16, %v8768_v4 }
0x1116   : > { %v6390_v17 = vpop.eup %6389 }
0x1117   : > { %4321 = vadd.xlane.f32.xlu1 %v4294_v12  ;;  %v4292_v34 = vmul.f32 %v6390_v17, %v8768_v4 }
0x1119   : > { %4319 = vadd.xlane.f32.xlu0 %v4293_v19 }
0x111b   : > { %4317 = vadd.xlane.f32.xlu1 %v4292_v34 }
0x118c   : > { %v4304_v63 = vpop.xlane.xlu1 %4303 }
0x118d   : > { %v4335_v6 = vadd.f32 %v8793_v44, %v4304_v63 }
0x118e   : > { %v4300_v21 = vpop.xlane.xlu0 %4299 }
0x118f   : > { %v4333_v48 = vadd.f32 %v8793_v44, %v4300_v21 }
0x1191   : > { %v4352_v45 = vmax.f32 %v4349_v24, %v4333_v48  ;;  %v4306_v60 = vpop.xlane.xlu1 %4305 }
0x1192   : > { %v4302_v28 = vpop.xlane.xlu0 %4301  ;;  %v4336_v40 = vadd.f32 %v8793_v44, %v4306_v60 }
0x1193   : > { %v4353_v49 = vsub.f32 %v4349_v24, %v4352_v45  ;;  %v4356_v31 = vsub.f32 %v4333_v48, %v4352_v45  ;;  %v4334_v8 = vadd.f32 %v8793_v44, %v4302_v28 }
0x1195   : > { %v4354_v9 = vmul.f32 1.442695, %v4353_v49  ;;  %v4357_v55 = vmul.f32 1.442695, %v4356_v31  ;;  %v4374_v37 = vmax.f32 %v4352_v45, %v4334_v8 }
0x1196   : > { %v4308_v29 = vpop.xlane.xlu0 %4307 }
0x1197   : > { %6391 = vpow2.f32 %v4354_v9  ;;  %v4375_v27 = vsub.f32 %v4352_v45, %v4374_v37  ;;  %v4378_v35 = vsub.f32 %v4334_v8, %v4374_v37  ;;  %v4396_v52 = vmax.f32 %v4374_v37, %v4335_v6 }
0x1198   : > { %6393 = vpow2.f32 %v4357_v55  ;;  %v4314_v51 = vpop.xlane.xlu1 %4313  ;;  %v4337_v19 = vadd.f32 %v8793_v44, %v4308_v29 }
0x1199   : > { %v4376_v43 = vmul.f32 1.442695, %v4375_v27  ;;  %v4418_v16 = vmax.f32 %v4396_v52, %v4336_v40  ;;  %v4379_v45 = vmul.f32 1.442695, %v4378_v35  ;;  %v4397_v28 = vsub.f32 %v4374_v37, %v4396_v52 }
0x119a   : > { %v4312_v49 = vpop.xlane.xlu0 %4311  ;;  %v4400_v55 = vsub.f32 %v4335_v6, %v4396_v52  ;;  %v4340_v35 = vadd.f32 %v8793_v44, %v4314_v51 }
0x119b   : > { %6395 = vpow2.f32 %v4376_v43  ;;  %v4440_v24 = vmax.f32 %v4418_v16, %v4337_v19  ;;  %v4398_v9 = vmul.f32 1.442695, %v4397_v28  ;;  %v4339_v27 = vadd.f32 %v8793_v44, %v4312_v49 }
0x119c   : > { %v4419_v37 = vsub.f32 %v4396_v52, %v4418_v16 }
0x119d   : > { %v4444_v31 = vsub.f32 %v4337_v19, %v4440_v24  ;;  %v4441_v51 = vsub.f32 %v4418_v16, %v4440_v24 }
0x11a4   : > { %v8797_v53 = vpop.eup %6391 }
0x11a5   : > { %v6394_v41 = vpop.eup %6393  ;;  %v4359_v23 = vmul.f32 %v8797_v53, %v4350_v14  ;;  %v4445_v14 = vmul.f32 1.442695, %v4444_v31 }
0x11a6   : > { %4369 = vperm.xlu1 %6158, %v6394_v41  }
0x11a7   : > { %v4360_v46 = vadd.f32 %v6394_v41, %v4359_v23 }
0x11a8   : > { %v6396_v57 = vpop.eup %6395 }
0x11a9   : > { %v8800_v39 = vmul.f32 %v6396_v57, %v4360_v46  ;;  %v4316_v46 = vpop.xlane.xlu0 %4315 }
0x11aa   : > { %4385 = vperm.xlu1 %6158, %v6396_v57  }
0x11cb   : > { %v6081_v33 = vpop.f32.mrf.mxu0 }
0x11cc   : > { %v4254_v10 = vadd.f32 %v6081_v33, %v8754_v7 }
0x11cd   : > { %v4245_v25 = vpop.f32.mrf.mxu0 }
0x11ce   : > { %v4246_v0 = vadd.f32 %v8754_v7, %v4245_v25 }
0x11cf   : > { %v6082_v59 = vpop.f32.mrf.mxu0 }
0x11d0   : > { %6397 = vtanh.f32 %v4246_v0  ;;  %v4257_v62 = vadd.f32 %v6082_v59, %v8754_v7  ;;  %v4420_v0 = vmul.f32 1.442695, %v4419_v37  ;;  %v4422_v59 = vsub.f32 %v4336_v40, %v4418_v16 }
0x11d1   : > { %6399 = vtanh.f32 %v4254_v10  ;;  %v4248_v58 = vpop.f32.mrf.mxu0 }
0x11d2   : > { %6401 = vtanh.f32 %v4257_v62  ;;  %v4249_v3 = vadd.f32 %v8754_v7, %v4248_v58  ;;  %v4310_v7 = vpop.xlane.xlu1 %4309  ;;  %v4341_v62 = vadd.f32 %v8793_v44, %v4316_v46  ;;  %v4423_v6 = vmul.f32 1.442695, %v4422_v59 }
0x11d3   : > { %v4338_v21 = vadd.f32 %v8793_v44, %v4310_v7 }
0x11d4   : > { %6403 = vtanh.f32 %v4249_v3 }
0x11d5   : > { %v8814_v8 = vmax.f32 %v4440_v24, %v4338_v21  ;;  %6405 = vpow2.f32 %v4379_v45 }
0x11d6   : > { %v4322_v43 = vpop.xlane.xlu1 %4321  ;;  %6407 = vpow2.f32 %v4398_v9 }
0x11d7   : > { %v4466_v41 = vsub.f32 %v4338_v21, %v8814_v8  ;;  %v8819_v23 = vmax.f32 %v8814_v8, %v4339_v27  ;;  %6409 = vpow2.f32 %v4445_v14  ;;  %v4463_v29 = vsub.f32 %v4440_v24, %v8814_v8 }
0x11d8   : > { %v4344_v45 = vadd.f32 %v8793_v44, %v4322_v43 }
0x11d9   : > { %v4467_v57 = vmul.f32 1.442695, %v4466_v41  ;;  %v4488_v33 = vsub.f32 %v4339_v27, %v8819_v23  ;;  %v8824_v10 = vmax.f32 %v8819_v23, %v4340_v35  ;;  %v4464_v21 = vmul.f32 1.442695, %v4463_v29 }
0x11da   : > { %v4318_v25 = vpop.xlane.xlu1 %4317 }
0x11db   : > { %v4342_v63 = vadd.f32 %v8793_v44, %v4318_v25  ;;  %v4489_v58 = vmul.f32 1.442695, %v4488_v33  ;;  %v4510_v3 = vsub.f32 %v4340_v35, %v8824_v10  ;;  %v8830_v60 = vmax.f32 %v8824_v10, %v4341_v62 }
0x11dd   : > { %v6398_v54 = vpop.eup %6397  ;;  %v4532_v40 = vsub.f32 %v4341_v62, %v8830_v60 }
0x11de   : > { %v6400_v11 = vpop.eup %6399  ;;  %v4295_v13 = vmul.f32 %v6398_v54, %v8768_v4  ;;  %v4320_v54 = vpop.xlane.xlu0 %4319 }
0x11df   : > { %v6402_v30 = vpop.eup %6401  ;;  %v4297_v34 = vmul.f32 %v6400_v11, %v8768_v4  ;;  %v4511_v11 = vmul.f32 1.442695, %v4510_v3  ;;  %v4533_v16 = vmul.f32 1.442695, %v4532_v40 }
0x11e0   : > { %4323 = vadd.xlane.f32.xlu0 %v4295_v13  ;;  %v4298_v12 = vmul.f32 %v6402_v30, %v8768_v4  ;;  %v4550_v13 = vmax.f32 %v8830_v60, %v4342_v63  ;;  %v4442_v30 = vmul.f32 1.442695, %v4441_v51 }
0x11e1   : > { %v6404_v17 = vpop.eup %6403 }
0x11e2   : > { %4329 = vadd.xlane.f32.xlu1 %v4298_v12  ;;  %v4296_v48 = vmul.f32 %v6404_v17, %v8768_v4  ;;  %v4401_v4 = vmul.f32 1.442695, %v4400_v55  ;;  %v8832_v52 = vpop.eup %6405  ;;  %v4343_v17 = vadd.f32 %v8793_v44, %v4320_v54  ;;  %v4554_v7 = vsub.f32 %v4342_v63, %v4550_v13 }
0x11e3   : > { %v8838_v12 = vpop.eup %6407  ;;  %v4382_v29 = vadd.f32 %v8832_v52, %v8800_v39 }
0x11e4   : > { %4327 = vadd.xlane.f32.xlu0 %v4297_v34  ;;  %6411 = vpow2.f32 %v4401_v4  ;;  %v4572_v19 = vmax.f32 %v4550_v13, %v4343_v17  ;;  %v8843_v34 = vpop.eup %6409  ;;  %v4529_v4 = vsub.f32 %v8824_v10, %v8830_v60 }
0x11e5   : > { %6413 = vpow2.f32 %v4467_v57  ;;  %v4551_v57 = vsub.f32 %v8830_v60, %v4550_v13 }
0x11e6   : > { %4325 = vadd.xlane.f32.xlu1 %v4296_v48  ;;  %6415 = vpow2.f32 %v4420_v0  ;;  %v4485_v48 = vsub.f32 %v8814_v8, %v8819_v23  ;;  %v4576_v28 = vsub.f32 %v4343_v17, %v4572_v19  ;;  %v8852_v49 = vmax.f32 %v4572_v19, %v4344_v45 }
0x11e7   : > { %6417 = vpow2.f32 %v4489_v58  ;;  %v4507_v8 = vsub.f32 %v8819_v23, %v8824_v10  ;;  %v4530_v46 = vmul.f32 1.442695, %v4529_v4  ;;  %v4552_v0 = vmul.f32 1.442695, %v4551_v57 }
0x11e8   : > { %6419 = vpow2.f32 %v4423_v6  ;;  %v4486_v9 = vmul.f32 1.442695, %v4485_v48  ;;  %v4577_v27 = vmul.f32 1.442695, %v4576_v28  ;;  %v4598_v43 = vsub.f32 %v4344_v45, %v8852_v49 }
0x11e9   : > { %6421 = vpow2.f32 %v4511_v11  ;;  %v4508_v41 = vmul.f32 1.442695, %v4507_v8  ;;  %v4573_v59 = vsub.f32 %v4550_v13, %v4572_v19  ;;  %v4595_v58 = vsub.f32 %v4572_v19, %v8852_v49 }
0x11ea   : > { %6423 = vpow2.f32 %v4442_v30  ;;  %v4599_v35 = vmul.f32 1.442695, %v4598_v43  ;;  %v4403_v17 = vmul.f32 %v8838_v12, %v4382_v29 }
0x11eb   : > { %6425 = vpow2.f32 %v4533_v16  ;;  %v4574_v63 = vmul.f32 1.442695, %v4573_v59  ;;  %v4596_v6 = vmul.f32 1.442695, %v4595_v58 }
0x11ec   : > { %6427 = vpow2.f32 %v4464_v21 }
0x11f1   : > { %v8847_v24 = vpop.eup %6411 }
0x11f2   : > { %v8854_v31 = vpop.eup %6413  ;;  %v4404_v16 = vadd.f32 %v8847_v24, %v4403_v17 }
0x11f3   : > { %v6416_v55 = vpop.eup %6415 }
0x11f4   : > { %v6418_v14 = vpop.eup %6417 }
0x11f5   : > { %v6420_v37 = vpop.eup %6419 }
0x11f6   : > { %v6422_v23 = vpop.eup %6421 }
0x11f7   : > { %4391 = vperm.xlu1 %6158, %v8832_v52   ;;  %v6424_v33 = vpop.eup %6423 }
0x11f8   : > { %v6426_v25 = vpop.eup %6425 }
0x11f9   : > { %v6428_v62 = vpop.eup %6427 }
0x11fa   : > { %4363 = vperm.xlu0 %6157, %v8797_v53   ;;  %v4555_v53 = vmul.f32 1.442695, %v4554_v7  ;;  %v4425_v7 = vmul.f32 %v6416_v55, %v4404_v16 }
0x11fb   : > { %4407 = vperm.xlu1 %6158, %v8838_v12  }
0x11fc   : > { %6429 = vpow2.f32 %v4555_v53  ;;  %v4426_v19 = vadd.f32 %v6420_v37, %v4425_v7 }
0x11fd   : > { %6431 = vpow2.f32 %v4486_v9 }
0x11fe   : > { %4457 = vperm.xlu0 %6157, %v8843_v34   ;;  %6433 = vpow2.f32 %v4577_v27  ;;  %v4447_v21 = vmul.f32 %v6424_v33, %v4426_v19 }
0x11ff   : > { %4413 = vperm.xlu1 %6158, %v8847_v24   ;;  %6435 = vpow2.f32 %v4508_v41 }
0x1200   : > { %6437 = vpow2.f32 %v4599_v35  ;;  %v4448_v48 = vadd.f32 %v8843_v34, %v4447_v21 }
0x1201   : > { %6439 = vpow2.f32 %v4530_v46 }
0x1202   : > { %4479 = vperm.xlu0 %6157, %v8854_v31   ;;  %6441 = vpow2.f32 %v4552_v0  ;;  %v4469_v45 = vmul.f32 %v6428_v62, %v4448_v48 }
0x1203   : > { %4429 = vperm.xlu1 %6158, %v6416_v55   ;;  %6443 = vpow2.f32 %v4574_v63 }
0x1204   : > { %6445 = vpow2.f32 %v4596_v6  ;;  %v4470_v53 = vadd.f32 %v8854_v31, %v4469_v45 }
0x1206   : > { %4501 = vperm.xlu0 %6157, %v6418_v14  }
0x1207   : > { %4435 = vperm.xlu1 %6158, %v6420_v37  }
0x1209   : > { %v6430_v10 = vpop.eup %6429 }
0x120a   : > { %4523 = vperm.xlu0 %6157, %v6422_v23   ;;  %v6432_v3 = vpop.eup %6431 }
0x120b   : > { %4451 = vperm.xlu1 %6158, %v6424_v33   ;;  %v6434_v60 = vpop.eup %6433  ;;  %v4491_v28 = vmul.f32 %v6432_v3, %v4470_v53 }
0x120c   : > { %v6436_v51 = vpop.eup %6435 }
0x120d   : > { %v8864_v54 = vpop.eup %6437  ;;  %v4492_v9 = vadd.f32 %v6418_v14, %v4491_v28 }
0x120e   : > { %4545 = vperm.xlu0 %6157, %v6426_v25   ;;  %v6440_v11 = vpop.eup %6439 }
0x120f   : > { %4473 = vperm.xlu1 %6158, %v6428_v62   ;;  %v6442_v40 = vpop.eup %6441  ;;  %v4513_v8 = vmul.f32 %v6436_v51, %v4492_v9 }
0x1210   : > { %v6444_v13 = vpop.eup %6443 }
0x1211   : > { %v6446_v30 = vpop.eup %6445  ;;  %v4514_v27 = vadd.f32 %v6422_v23, %v4513_v8 }
0x1212   : > { %4567 = vperm.xlu0 %6157, %v6430_v10  }
0x1213   : > { %4495 = vperm.xlu1 %6158, %v6432_v3   ;;  %v4535_v43 = vmul.f32 %v6440_v11, %v4514_v27  ;;  %v4351_v3 = vld [vmem:[#allocation6] sm:$0xff] }
0x1215   : > { %v4536_v4 = vadd.f32 %v6426_v25, %v4535_v43 }
0x1216   : > { %4589 = vperm.xlu0 %6157, %v6434_v60  }
0x1217   : > { %4517 = vperm.xlu1 %6158, %v6436_v51   ;;  %v4557_v52 = vmul.f32 %v6442_v40, %v4536_v4 }
0x1219   : > { %v4558_v35 = vadd.f32 %v6430_v10, %v4557_v52 }
0x121a   : > { %4611 = vperm.xlu0 %6157, %v8864_v54  }
0x121b   : > { %4539 = vperm.xlu1 %6158, %v6440_v11   ;;  %v4579_v0 = vmul.f32 %v6444_v13, %v4558_v35 }
0x121d   : > { %v4580_v10 = vadd.f32 %v6434_v60, %v4579_v0 }
0x121f   : > { %4561 = vperm.xlu1 %6158, %v6442_v40  }
0x1221   : > { %v4370_v41 = vpop.permute.xlu1 %4369 }
0x1223   : > { %4583 = vperm.xlu1 %6158, %v6444_v13   ;;  %v4372_v13 = vmul.f32 %v4370_v41, %v9157_v5 }
0x1225   : > { %v4386_v39 = vpop.permute.xlu1 %4385 }
0x1227   : > { %4605 = vperm.xlu1 %6158, %v6446_v30  }
0x1269   : > { %v4324_v12 = vpop.xlane.xlu0 %4323 }
0x126a   : > { %v4345_v24 = vadd.f32 %v8793_v44, %v4324_v12 }
0x126b   : > { %v4330_v55 = vpop.xlane.xlu1 %4329 }
0x126c   : > { %v4616_v37 = vmax.f32 %v8852_v49, %v4345_v24 }
0x126d   : > { %v4328_v31 = vpop.xlane.xlu0 %4327 }
0x126e   : > { %v4617_v34 = vsub.f32 %v8852_v49, %v4616_v37  ;;  %v4620_v46 = vsub.f32 %v4345_v24, %v4616_v37  ;;  %v4347_v25 = vadd.f32 %v8793_v44, %v4328_v31  ;;  %v4348_v49 = vadd.f32 %v8793_v44, %v4330_v55 }
0x126f   : > { %v4326_v57 = vpop.xlane.xlu1 %4325 }
0x1270   : > { %v4618_v14 = vmul.f32 1.442695, %v4617_v34  ;;  %v4621_v33 = vmul.f32 1.442695, %v4620_v46  ;;  %v4346_v23 = vadd.f32 %v8793_v44, %v4326_v57  ;;  %v4601_v44 = vmul.f32 %v6446_v30, %v4580_v10 }
0x1272   : > { %6447 = vpow2.f32 %v4618_v14  ;;  %v4638_v59 = vmax.f32 %v4616_v37, %v4346_v23  ;;  %v4602_v9 = vadd.f32 %v8864_v54, %v4601_v44 }
0x1273   : > { %6449 = vpow2.f32 %v4621_v33  ;;  %v4392_v46 = vpop.permute.xlu1 %4391 }
0x1274   : > { %v4639_v62 = vsub.f32 %v4616_v37, %v4638_v59  ;;  %v4642_v63 = vsub.f32 %v4346_v23, %v4638_v59  ;;  %v4660_v58 = vmax.f32 %v4638_v59, %v4347_v25  ;;  %v4394_v14 = vmul.f32 %v4392_v46, %v9158_v20 }
0x1275   : > { %v4364_v6 = vpop.permute.xlu0 %4363 }
0x1276   : > { %v4640_v51 = vmul.f32 1.442695, %v4639_v62  ;;  %v4643_v11 = vmul.f32 1.442695, %v4642_v63  ;;  %v4661_v40 = vsub.f32 %v4638_v59, %v4660_v58  ;;  %v4664_v29 = vsub.f32 %v4347_v25, %v4660_v58 }
0x1277   : > { %v4682_v17 = vmax.f32 %v4660_v58, %v4348_v49  ;;  %v4366_v16 = vmul.f32 %v4364_v6, %v4351_v3  ;;  %v4408_v31 = vpop.permute.xlu1 %4407 }
0x1278   : > { %6451 = vpow2.f32 %v4640_v51  ;;  %v4662_v7 = vmul.f32 1.442695, %v4661_v40  ;;  %v4665_v19 = vmul.f32 1.442695, %v4664_v29 }
0x1279   : > { %6453 = vpow2.f32 %v4643_v11  ;;  %v4683_v21 = vsub.f32 %v4660_v58, %v4682_v17  ;;  %v4686_v48 = vsub.f32 %v4348_v49, %v4682_v17  ;;  %4705 = vst.msk [vmem:[#allocation4] sm:$0xff] %vm4704_vm3, %v4682_v17  ;;  %v4373_v60 = vadd.f32 %v4372_v13, %v4366_v16  ;;  %v4458_v49 = vpop.permute.xlu0 %4457 }
0x127a   : > { %6455 = vpow2.f32 %v4662_v7  ;;  %v4460_v51 = vmul.f32 %v4458_v49, %v9161_v50 }
0x127b   : > { %v4388_v45 = vmul.f32 %v4386_v39, %v4373_v60  ;;  %v4684_v53 = vmul.f32 1.442695, %v4683_v21  ;;  %6457 = vpow2.f32 %v4665_v19  ;;  %v4687_v28 = vmul.f32 1.442695, %v4686_v48  ;;  %v4414_v57 = vpop.permute.xlu1 %4413 }
0x127c   : > { %v4416_v25 = vmul.f32 %v4414_v57, %v9159_v36 }
0x127d   : > { %6459 = vpow2.f32 %v4684_v53  ;;  %v4395_v33 = vadd.f32 %v4394_v14, %v4388_v45  ;;  %v4480_v29 = vpop.permute.xlu0 %4479 }
0x127e   : > { %6461 = vpow2.f32 %v4687_v28  ;;  %v4482_v13 = vmul.f32 %v4480_v29, %v9162_v32 }
0x127f   : > { %v6448_v5 = vpop.eup %6447  ;;  %v4430_v23 = vpop.permute.xlu1 %4429  ;;  %v4410_v0 = vmul.f32 %v4408_v31, %v4395_v33 }
0x1280   : > { %v6450_v8 = vpop.eup %6449  ;;  %v4623_v27 = vmul.f32 %v6448_v5, %v4602_v9  ;;  %4627 = vperm.xlu1 %6158, %v6448_v5  }
0x1281   : > { %4633 = vperm.xlu0 %6157, %v6450_v8   ;;  %v4417_v62 = vadd.f32 %v4416_v25, %v4410_v0  ;;  %v4502_v36 = vpop.permute.xlu0 %4501 }
0x1282   : > { %v4624_v43 = vadd.f32 %v6450_v8, %v4623_v27  ;;  %v4504_v19 = vmul.f32 %v4502_v36, %v9163_v22 }
0x1283   : > { %v4436_v59 = vpop.permute.xlu1 %4435  ;;  %v4432_v58 = vmul.f32 %v4430_v23, %v4417_v62 }
0x1284   : > { %v4438_v63 = vmul.f32 %v4436_v59, %v9160_v42 }
0x1285   : > { %v6452_v41 = vpop.eup %6451  ;;  %v4524_v48 = vpop.permute.xlu0 %4523 }
0x1286   : > { %v6454_v4 = vpop.eup %6453  ;;  %v4645_v52 = vmul.f32 %v6452_v41, %v4624_v43  ;;  %4649 = vperm.xlu1 %6158, %v6452_v41   ;;  %v4439_v3 = vadd.f32 %v4438_v63, %v4432_v58  ;;  %v4526_v44 = vmul.f32 %v4524_v48, %v9164_v1 }
0x1287   : > { %4655 = vperm.xlu0 %6157, %v6454_v4   ;;  %v6456_v39 = vpop.eup %6455  ;;  %v4452_v10 = vpop.permute.xlu1 %4451 }
0x1288   : > { %v4646_v30 = vadd.f32 %v6454_v4, %v4645_v52  ;;  %v6458_v12 = vpop.eup %6457  ;;  %v4454_v6 = vmul.f32 %v4452_v10, %v4439_v3 }
0x1289   : > { %v4546_v53 = vpop.permute.xlu0 %4545 }
0x128a   : > { %v4667_v24 = vmul.f32 %v6456_v39, %v4646_v30  ;;  %4671 = vperm.xlu1 %6158, %v6456_v39   ;;  %v6460_v55 = vpop.eup %6459  ;;  %v4461_v11 = vadd.f32 %v4460_v51, %v4454_v6  ;;  %v4548_v9 = vmul.f32 %v4546_v53, %v9165_v56 }
0x128b   : > { %4677 = vperm.xlu0 %6157, %v6458_v12   ;;  %v6462_v37 = vpop.eup %6461  ;;  %v4474_v40 = vpop.permute.xlu1 %4473 }
0x128c   : > { %v4668_v54 = vadd.f32 %v6458_v12, %v4667_v24  ;;  %v4476_v20 = vmul.f32 %v4474_v40, %v4461_v11 }
0x128d   : > { %v4568_v8 = vpop.permute.xlu0 %4567 }
0x128e   : > { %v4689_v35 = vmul.f32 %v6460_v55, %v4668_v54  ;;  %4693 = vperm.xlu1 %6158, %v6460_v55   ;;  %v4483_v17 = vadd.f32 %v4482_v13, %v4476_v20  ;;  %v4570_v43 = vmul.f32 %v4568_v8, %v9166_v47 }
0x128f   : > { %4699 = vperm.xlu0 %6157, %v6462_v37   ;;  %v4496_v16 = vpop.permute.xlu1 %4495 }
0x1290   : > { %v4690_v34 = vadd.f32 %v6462_v37, %v4689_v35  ;;  %v4498_v7 = vmul.f32 %v4496_v16, %v4483_v17 }
0x1291   : > { %v4590_v4 = vpop.permute.xlu0 %4589 }
0x1292   : > { %4706 = vst.msk [vmem:[#allocation5] sm:$0xff] %vm4704_vm3, %v4690_v34  ;;  %v4505_v42 = vadd.f32 %v4504_v19, %v4498_v7  ;;  %v4592_v30 = vmul.f32 %v4590_v4, %v9167_v18 }
0x1293   : > { %v4518_v21 = vpop.permute.xlu1 %4517 }
0x1294   : > { %v4520_v60 = vmul.f32 %v4518_v21, %v4505_v42 }
0x1295   : > { %v4612_v12 = vpop.permute.xlu0 %4611 }
0x1296   : > { %v4527_v45 = vadd.f32 %v4526_v44, %v4520_v60  ;;  %v4614_v54 = vmul.f32 %v4612_v12, %v9168_v15 }
0x1297   : > { %v4540_v50 = vpop.permute.xlu1 %4539 }
0x1298   : > { %v4542_v28 = vmul.f32 %v4540_v50, %v4527_v45 }
0x129a   : > { %v4549_v5 = vadd.f32 %v4548_v9, %v4542_v28 }
0x129b   : > { %v4562_v32 = vpop.permute.xlu1 %4561 }
0x129c   : > { %v4564_v27 = vmul.f32 %v4562_v32, %v4549_v5 }
0x129e   : > { %v4571_v41 = vadd.f32 %v4570_v43, %v4564_v27 }
0x129f   : > { %v4584_v22 = vpop.permute.xlu1 %4583 }
0x12a0   : > { %v4586_v52 = vmul.f32 %v4584_v22, %v4571_v41 }
0x12a2   : > { %v4593_v39 = vadd.f32 %v4592_v30, %v4586_v52 }
0x12a3   : > { %v4606_v1 = vpop.permute.xlu1 %4605 }
0x12a4   : > { %v4608_v24 = vmul.f32 %v4606_v1, %v4593_v39 }
0x12a6   : > { %v4615_v55 = vadd.f32 %v4614_v54, %v4608_v24 }
0x12fb   : > { %v4628_v56 = vpop.permute.xlu1 %4627 }
0x12fc   : > { %v4630_v37 = vmul.f32 %v4628_v56, %v4615_v55  ;;  %v4634_v35 = vpop.permute.xlu0 %4633 }
0x12fd   : > { %v4636_v34 = vmul.f32 %v4634_v35, %v8582_v26 }
0x12ff   : > { %v4637_v46 = vadd.f32 %v4636_v34, %v4630_v37 }
0x1301   : > { %v4650_v47 = vpop.permute.xlu1 %4649 }
0x1302   : > { %v4652_v31 = vmul.f32 %v4650_v47, %v4637_v46  ;;  %v4656_v57 = vpop.permute.xlu0 %4655 }
0x1303   : > { %v4658_v14 = vmul.f32 %v4656_v57, %v8657_v38 }
0x1305   : > { %v4672_v33 = vpop.permute.xlu1 %4671  ;;  %v4659_v18 = vadd.f32 %v4658_v14, %v4652_v31 }
0x1306   : > { %v4678_v23 = vpop.permute.xlu0 %4677 }
0x1307   : > { %v4674_v0 = vmul.f32 %v4672_v33, %v4659_v18  ;;  %v4680_v25 = vmul.f32 %v4678_v23, %v8731_v2 }
0x1309   : > { %v4694_v59 = vpop.permute.xlu1 %4693  ;;  %v4681_v15 = vadd.f32 %v4680_v25, %v4674_v0 }
0x130a   : > { %v4700_v62 = vpop.permute.xlu0 %4699 }
0x130b   : > { %v4696_v63 = vmul.f32 %v4694_v59, %v4681_v15  ;;  %v4702_v58 = vmul.f32 %v4700_v62, %v8780_v61  ;;  %4711 = sbr.rel (%p5015_p2) target bundleno = 5199 (0x144f), region = 84 }
0x130d   : > { %v4703_v3 = vadd.f32 %v4702_v58, %v4696_v63 }
0x130f   : > { %4707 = vst [vmem:[#allocation6] sm:$0xff] %v4703_v3 }
0x1310   : > { %v4713_v26 = vld [vmem:[#allocation5] sm:$0xff]  ;;  %v6721_v10 = vmov 0  }
0x1311   : > { %6562 = vset.pattern.permute.xlu0 %v6721_v10 }
0x1312   : > { %4716 = vperm.xlu0 %6562, %v4713_v26  }
0x1316   : > { %v4712_v49 = vld [vmem:[#allocation6] sm:$0xff] }
0x138d   : > { %v4717_v38 = vpop.permute.xlu0 %4716 }
0x138e   : > { %6563 = vrcp.f32 %v4717_v38 }
0x139b   : > { %v6564_v6 = vpop.eup %6563 }
0x139c   : > { %v4720_v2 = vmul.f32 %v6564_v6, %v4712_v49 }
0x139e   : > { %v4721_v51 = vmul.f32 %v4720_v2, %v4720_v2 }
0x13a0   : > { %4722 = vadd.xlane.f32.xlu0 %v4721_v51 }
0x1429   : > { %v4723_v11 = vpop.xlane.xlu0 %4722 }
0x142a   : > { %6565 = vrsqrt.f32 %v4723_v11  ;;  %vm4726_vm4 = vcmp.eq.f32.partialorder %v4723_v11, inf  ;;  %v4729_v29 = vand.u32 2147483648, %v4723_v11  ;;  %vm4728_vm5 = vcmp.eq.f32.partialorder %v4723_v11, 0.0 }
0x1437   : > { %v6566_v40 = vpop.eup %6565 }
0x1438   : > { %v4725_v61 = vmul.f32 %v6566_v40, %v4723_v11 }
0x143a   : > { %v4727_v20 = vsel %vm4726_vm4, %v4723_v11, %v4725_v61 }
0x143b   : > { %v4730_v13 = vsel %vm4728_vm5, %v4729_v29, %v4727_v20 }
0x143c   : > { %v4731_v17 = vmax.f32 %v4730_v13, 1e-12 }
0x143e   : > { %6567 = vrcp.f32 %v4731_v17 }
0x144b   : > { %v6568_v16 = vpop.eup %6567 }
0x144c   : > { %v4733_v36 = vmul.f32 %v6568_v16, %v4720_v2 }
0x144e   : > { %4734 = vst [vmem:[#allocation14] sm:$0xff] %v4733_v36 }
0x144f PF: > { %p8901_p3 = scmp.eq.s32.totalorder %s4838_s23, 1  ;;  %s6722_s12 = smov [#allocation14]  }
0x1450   : > { %s4744_s13 = sshll.u32 %s6722_s12, 4  ;;  %s4745_s13 = int_to_ptr.vmem [resolvable:$true] %s4744_s13 }
0x1451   : > { %s6647_s14 = scalar_lea.vmem %s4745_s13, 128  ;;  %p6654_p12 = scmp.lt.s32.totalorder %s4745_s13, %s4745_s13 }
0x1452   : > { %p6648_p5 = scmp.ne.s32.totalorder %s4745_s13, %s6647_s14  ;;  %p6655_p6 = scmp.lt.s32.totalorder %s6647_s14, %s6647_s14 }
0x1454   : > { %p6649_p10 = pnand %p6648_p5, %p8901_p3  ;;  %p6656_p13 = por %p6655_p6, %p6654_p12 }
0x1456   : > { %p6650_p11 = pneg %p6649_p10 }
0x1458   : > { %p6657_p0 = pnand %p6656_p13, %p6650_p11 }
0x145a   : > { %6660 = shalt.err (!%p6657_p0)
}
0x145b   : > { %6096 = dma.vmem_to_hbm [thread:$0]  (%p8901_p3), %s4745_s13, 128, %s8936_s11, [#allocation10]  }
0x145c   : > { %6692 = dma.done.wait (%p8901_p3), [#allocation10], 128  }
0x145d   : > { %6694 = vsyncadd (%p8901_p3), [#allocation10], 4294967168 }
0x145e PF: > { %s25_s21 = sadd.s32 1, %s6705_s21   ;;  %s9173_s19 = smov %s6701_s20 }
0x145f   : > { %p22_p1 = scmp.ge.s32.totalorder %s25_s21, 4   ;;  %s9174_s20 = smov %s9176_s27 }
0x1461   :  { %24 = sbr.rel (!%p22_p1) target bundleno = 6 (0x6), region = 118 }
0x1466   :  { %4757 = vsyncpa [#allocation9], 1 }
0x1467   :  { %4759 = vsyncpa [#allocation9 + $0x1], 1 }
0x1468   :  { %4760 = vsyncpa [#allocation12], 1 }
0x1469   :  { %4761 = vsyncpa [#allocation10], 1 }
0x146a   :  { %4763 = vsyncpa [#allocation10 + $0x1], 1 }

</bundles_post_ra>
